<compile_context>
chip_gen: v6e
topology: v6e:2x2x1
jax: 0.10.0
libtpu: 0.0.40
codegen_flags: <defaults>
</compile_context>

<pallas_src>
import functools
import math

import jax
import jax.numpy as jnp
from jax import lax
from jax.experimental import pallas as pl
from jax.experimental.pallas import tpu as pltpu


def _mhsa_kernel(q_ref, k_ref, v_ref, mask_ref,
                 wq_ref, bq_ref, wk_ref, bk_ref,
                 wv_ref, bv_ref, wo_ref, bo_ref,
                 out_ref, kc_ref, vc_ref, *, n_heads, dph):
    """One grid step = one (batch element, query tile).

    q_ref            : (1, TQ, D) bf16 VMEM  (query tile)
    k_ref / v_ref    : (1, S,  D) bf16 VMEM  (full padded sequence; used only at t == 0)
    mask_ref         : (1, 1,  S) f32  VMEM  (1.0 keep / 0.0 mask)
    w*_ref           : (D, D)     bf16 VMEM  (pre-transposed in x out; wq pre-scaled)
    b*_ref           : (1, D)     f32  VMEM  (bq pre-scaled)
    out_ref          : (1, TQ, D) f32  VMEM
    kc_ref / vc_ref  : (S, D)     bf16 VMEM scratch (per-batch K/V projection cache)
    """
    # K/V projections once per batch element (first query tile only); later
    # tiles of the same batch read the cache.  Requires the tile axis to be
    # "arbitrary" so the guard runs exactly once per batch element per core.
    @pl.when(pl.program_id(1) == 0)
    def _():
        k = jnp.dot(k_ref[0], wk_ref[...],
                    preferred_element_type=jnp.float32) + bk_ref[...]
        v = jnp.dot(v_ref[0], wv_ref[...],
                    preferred_element_type=jnp.float32) + bv_ref[...]
        kc_ref[...] = k.astype(jnp.bfloat16)
        vc_ref[...] = v.astype(jnp.bfloat16)

    # Query projection for this tile (1/sqrt(dph) already folded into wq/bq).
    q = (jnp.dot(q_ref[0], wq_ref[...], preferred_element_type=jnp.float32)
         + bq_ref[...]).astype(jnp.bfloat16)                      # (TQ, D)
    k = kc_ref[...]                                               # (S, D) bf16
    v = vc_ref[...]                                               # (S, D) bf16

    # Additive mask bias hoisted out of the head loop: 0 keep / -inf masked.
    mbias = jnp.where(mask_ref[0] == 0.0,
                      jnp.float32(-jnp.inf), jnp.float32(0.0))    # (1, S)

    # NT-form contraction: contract the last (head) dim of both operands.
    nt_dims = (((1,), (1,)), ((), ()))

    ctx_parts = []
    for h in range(n_heads):                                      # static unrolled loop
        sl = slice(h * dph, (h + 1) * dph)
        qh = q[:, sl]                                             # (TQ, dph) bf16
        kh = k[:, sl]                                             # (S,  dph) bf16
        vh = v[:, sl]                                             # (S,  dph) bf16

        scores = lax.dot_general(qh, kh, nt_dims,
                                 preferred_element_type=jnp.float32) + mbias  # (TQ, S)

        # Numerically-stable softmax over keys; reciprocal runs on the EUP.
        m = jnp.max(scores, axis=-1, keepdims=True)
        e = jnp.exp(scores - m)
        denom = jnp.sum(e, axis=-1, keepdims=True)
        p = e * pl.reciprocal(denom, approx=True)

        # TODO(synk): nn.Dropout(p=attention_dropout) in train mode omitted (eval semantics).
        ctx_parts.append(jnp.dot(p.astype(jnp.bfloat16), vh,
                                 preferred_element_type=jnp.float32)
                         .astype(jnp.bfloat16))

    # One lane-dense (TQ, D) context slab (no per-head masked partial stores).
    ctx = jnp.concatenate(ctx_parts, axis=-1)                     # (TQ, D) bf16
    out = jnp.dot(ctx, wo_ref[...],
                  preferred_element_type=jnp.float32) + bo_ref[...]
    out_ref[0] = out.astype(out_ref.dtype)


def multi_head_self_attention(query, key, value, mask, params, n_heads):
    bs, S, D = query.shape
    assert D % n_heads == 0
    dph = D // n_heads
    inv_sqrt = 1.0 / math.sqrt(dph)
    bf16 = jnp.bfloat16

    # Pad the sequence axis to a multiple of 128 (lane-aligned key axis and
    # (8,128)-aligned query tiles).  Padded keys are masked out; padded query
    # rows are sliced off at the end.
    S_pad = ((S + 127) // 128) * 128
    pad = S_pad - S
    if pad:
        query = jnp.pad(query, ((0, 0), (0, pad), (0, 0)))
        key = jnp.pad(key, ((0, 0), (0, pad), (0, 0)))
        value = jnp.pad(value, ((0, 0), (0, pad), (0, 0)))
        mask = jnp.pad(mask.astype(jnp.float32), ((0, 0), (0, pad)))

    # Query tile: 256 rows fills the 256-row MXU on v6e/v7x and halves the
    # grid-step count; fall back to 128 otherwise.
    TQ = 256 if S_pad % 256 == 0 else 128
    n_qt = S_pad // TQ

    mask3 = mask.reshape(bs, 1, S_pad).astype(jnp.float32)

    # nn.Linear stores W as (out, in); pre-transpose so the kernel does
    # x @ W_t + b.  Fold 1/sqrt(dim_per_head) into the query projection.
    wq_t = (params["wq"].T * inv_sqrt).astype(bf16)
    wk_t = params["wk"].T.astype(bf16)
    wv_t = params["wv"].T.astype(bf16)
    wo_t = params["wo"].T.astype(bf16)
    bq = (params["bq"] * inv_sqrt).reshape(1, D).astype(jnp.float32)
    bk = params["bk"].reshape(1, D).astype(jnp.float32)
    bv = params["bv"].reshape(1, D).astype(jnp.float32)
    bo = params["bo"].reshape(1, D).astype(jnp.float32)

    q_bf = query.astype(bf16)
    k_bf = key.astype(bf16)
    v_bf = value.astype(bf16)

    kernel = functools.partial(_mhsa_kernel, n_heads=n_heads, dph=dph)

    q_spec = pl.BlockSpec((1, TQ, D), lambda b, t: (b, t, 0))      # query / output tiles
    kv_spec = pl.BlockSpec((1, S_pad, D), lambda b, t: (b, 0, 0))  # constant over t -> 1 DMA per batch
    mask_spec = pl.BlockSpec((1, 1, S_pad), lambda b, t: (b, 0, 0))
    weight_spec = pl.BlockSpec((D, D), lambda b, t: (0, 0))        # constant -> fetched once
    bias_spec = pl.BlockSpec((1, D), lambda b, t: (0, 0))

    out = pl.pallas_call(
        kernel,
        out_shape=jax.ShapeDtypeStruct((bs, S_pad, D), jnp.float32),
        grid=(bs, n_qt),
        in_specs=[
            q_spec,                         # query
            kv_spec,                        # key
            kv_spec,                        # value
            mask_spec,                      # mask
            weight_spec, bias_spec,         # q_lin
            weight_spec, bias_spec,         # k_lin
            weight_spec, bias_spec,         # v_lin
            weight_spec, bias_spec,         # out_lin
        ],
        out_specs=q_spec,
        scratch_shapes=[pltpu.VMEM((S_pad, D), bf16),              # K projection cache
                        pltpu.VMEM((S_pad, D), bf16)],             # V projection cache
        compiler_params=pltpu.CompilerParams(
            # batch "parallel" keeps megacore sharding on v7x; the query-tile
            # axis must be "arbitrary" so the t == 0 K/V guard fires exactly
            # once per batch element per core.
            dimension_semantics=("parallel", "arbitrary"),
            vmem_limit_bytes=48 * 1024 * 1024),                    # < v7x 64 MiB physical
    )(q_bf, k_bf, v_bf, mask3,
      wq_t, bq, wk_t, bk, wv_t, bv, wo_t, bo)

    return out[:, :S, :]


def _reference(query, key, value, mask, params, n_heads):
    """Plain-JAX (f32) replica of the PyTorch forward, for verification."""
    bs, S, D = query.shape
    dph = D // n_heads

    def lin(x, w, b):
        return x @ w.T + b

    def shape(x):
        return x.reshape(bs, S, n_heads, dph).transpose(0, 2, 1, 3)

    q = shape(lin(query, params["wq"], params["bq"])) / math.sqrt(dph)
    k = shape(lin(key, params["wk"], params["bk"]))
    v = shape(lin(value, params["wv"], params["bv"]))

    scores = jnp.einsum("bhqd,bhkd->bhqk", q, k)
    pad = (mask == 0)[:, None, None, :]
    scores = jnp.where(pad, -jnp.inf, scores)
    weights = jax.nn.softmax(scores, axis=-1)
    ctx = jnp.einsum("bhqk,bhkd->bhqd", weights, v)
    ctx = ctx.transpose(0, 2, 1, 3).reshape(bs, S, D)
    return ctx @ params["wo"].T + params["bo"]


if __name__ == "__main__":
    bs, S, D, n_heads = 2, 8, 32, 4

    key0 = jax.random.PRNGKey(0)
    ks = jax.random.split(key0, 12)
    scale = 1.0 / math.sqrt(D)

    params = {
        "wq": jax.random.uniform(ks[0], (D, D), jnp.float32, -scale, scale),
        "bq": jax.random.uniform(ks[1], (D,), jnp.float32, -scale, scale),
        "wk": jax.random.uniform(ks[2], (D, D), jnp.float32, -scale, scale),
        "bk": jax.random.uniform(ks[3], (D,), jnp.float32, -scale, scale),
        "wv": jax.random.uniform(ks[4], (D, D), jnp.float32, -scale, scale),
        "bv": jax.random.uniform(ks[5], (D,), jnp.float32, -scale, scale),
        "wo": jax.random.uniform(ks[6], (D, D), jnp.float32, -scale, scale),
        "bo": jax.random.uniform(ks[7], (D,), jnp.float32, -scale, scale),
    }

    query = jax.random.normal(ks[8], (bs, S, D), jnp.float32)
    key_t = jax.random.normal(ks[9], (bs, S, D), jnp.float32)
    value = jax.random.normal(ks[10], (bs, S, D), jnp.float32)

    # Attention mask: 1 = attend, 0 = masked (pad last 3 keys of batch 1).
    mask = jnp.ones((bs, S), jnp.float32)
    mask = mask.at[1, S - 3:].set(0.0)

    out = multi_head_self_attention(query, key_t, value, mask, params, n_heads)
    out = jax.block_until_ready(out)

    ref = _reference(query, key_t, value, mask, params, n_heads)
    assert out.shape == (bs, S, D)
    # Tolerance relaxed vs. pure f32: matmul operands run in bf16 on the MXU.
    assert jnp.allclose(out, ref, atol=2e-2, rtol=2e-2), "mismatch vs reference"

    print("KERNEL_OK")
</pallas_src>

<mosaic_0001>
module attributes {stable_mosaic.version = 11 : i64} {
  func.func @_mhsa_kernel(%arg0: i32, %arg1: i32, %arg2: memref<1x128x32xbf16, #tpu.memory_space<vmem>>, %arg3: memref<1x128x32xbf16, #tpu.memory_space<vmem>>, %arg4: memref<1x128x32xbf16, #tpu.memory_space<vmem>>, %arg5: memref<1x1x128xf32, #tpu.memory_space<vmem>>, %arg6: memref<32x32xbf16, #tpu.memory_space<vmem>>, %arg7: memref<1x32xf32, #tpu.memory_space<vmem>>, %arg8: memref<32x32xbf16, #tpu.memory_space<vmem>>, %arg9: memref<1x32xf32, #tpu.memory_space<vmem>>, %arg10: memref<32x32xbf16, #tpu.memory_space<vmem>>, %arg11: memref<1x32xf32, #tpu.memory_space<vmem>>, %arg12: memref<32x32xbf16, #tpu.memory_space<vmem>>, %arg13: memref<1x32xf32, #tpu.memory_space<vmem>>, %arg14: memref<1x128x32xf32, #tpu.memory_space<vmem>>, %arg15: memref<128x32xbf16, #tpu.memory_space<vmem>>, %arg16: memref<128x32xbf16, #tpu.memory_space<vmem>>) attributes {dimension_semantics = [#tpu.dimension_semantics<parallel>, #tpu.dimension_semantics<arbitrary>], iteration_bounds = array<i64: 2, 1>, scalar_prefetch = 0 : i64, scratch_operands = 2 : i64, tpu.core_type = #tpu.core_type<tc>, window_params = [{transform_indices = @transform_0, window_bounds = array<i64: 1, 128, 32>}, {transform_indices = @transform_1, window_bounds = array<i64: 1, 128, 32>}, {transform_indices = @transform_2, window_bounds = array<i64: 1, 128, 32>}, {transform_indices = @transform_3, window_bounds = array<i64: 1, 1, 128>}, {pipeline_mode = #tpu.pipeline_mode<synchronous>, transform_indices = @transform_4, window_bounds = array<i64: 32, 32>}, {pipeline_mode = #tpu.pipeline_mode<synchronous>, transform_indices = @transform_5, window_bounds = array<i64: 1, 32>}, {pipeline_mode = #tpu.pipeline_mode<synchronous>, transform_indices = @transform_6, window_bounds = array<i64: 32, 32>}, {pipeline_mode = #tpu.pipeline_mode<synchronous>, transform_indices = @transform_7, window_bounds = array<i64: 1, 32>}, {pipeline_mode = #tpu.pipeline_mode<synchronous>, transform_indices = @transform_8, window_bounds = array<i64: 32, 32>}, {pipeline_mode = #tpu.pipeline_mode<synchronous>, transform_indices = @transform_9, window_bounds = array<i64: 1, 32>}, {pipeline_mode = #tpu.pipeline_mode<synchronous>, transform_indices = @transform_10, window_bounds = array<i64: 32, 32>}, {pipeline_mode = #tpu.pipeline_mode<synchronous>, transform_indices = @transform_11, window_bounds = array<i64: 1, 32>}, {transform_indices = @transform_12, window_bounds = array<i64: 1, 128, 32>}]} {
    %c0_i32 = arith.constant 0 : i32
    %0 = arith.cmpi eq, %arg1, %c0_i32 : i32
    %1 = arith.extui %0 : i1 to i32
    %c0_i32_0 = arith.constant 0 : i32
    %2 = arith.cmpi ne, %1, %c0_i32_0 : i32
    scf.if %2 {
      %c0_41 = arith.constant 0 : index
      %c0_42 = arith.constant 0 : index
      %c0_43 = arith.constant 0 : index
      %105 = vector.load %arg3[%c0_41, %c0_42, %c0_43] : memref<1x128x32xbf16, #tpu.memory_space<vmem>>, vector<1x128x32xbf16>
      %106 = vector.shape_cast %105 : vector<1x128x32xbf16> to vector<128x32xbf16>
      %c0_44 = arith.constant 0 : index
      %c0_45 = arith.constant 0 : index
      %107 = vector.load %arg8[%c0_44, %c0_45] : memref<32x32xbf16, #tpu.memory_space<vmem>>, vector<32x32xbf16>
      %cst_46 = arith.constant dense<0.000000e+00> : vector<128x32xf32>
      %108 = tpu.matmul %106, %107, %cst_46 {dimension_numbers = #tpu.dot_dimension_numbers<[1], [0], [0], [1], [0, 0, 1, 1], [], []>} : vector<128x32xbf16>, vector<32x32xbf16>, vector<128x32xf32> -> vector<128x32xf32>
      %c0_47 = arith.constant 0 : index
      %c0_48 = arith.constant 0 : index
      %109 = vector.load %arg9[%c0_47, %c0_48] : memref<1x32xf32, #tpu.memory_space<vmem>>, vector<1x32xf32>
      %110 = vector.broadcast %109 : vector<1x32xf32> to vector<128x32xf32>
      %111 = arith.addf %108, %110 : vector<128x32xf32>
      %c0_49 = arith.constant 0 : index
      %c0_50 = arith.constant 0 : index
      %c0_51 = arith.constant 0 : index
      %112 = vector.load %arg4[%c0_49, %c0_50, %c0_51] : memref<1x128x32xbf16, #tpu.memory_space<vmem>>, vector<1x128x32xbf16>
      %113 = vector.shape_cast %112 : vector<1x128x32xbf16> to vector<128x32xbf16>
      %c0_52 = arith.constant 0 : index
      %c0_53 = arith.constant 0 : index
      %114 = vector.load %arg10[%c0_52, %c0_53] : memref<32x32xbf16, #tpu.memory_space<vmem>>, vector<32x32xbf16>
      %cst_54 = arith.constant dense<0.000000e+00> : vector<128x32xf32>
      %115 = tpu.matmul %113, %114, %cst_54 {dimension_numbers = #tpu.dot_dimension_numbers<[1], [0], [0], [1], [0, 0, 1, 1], [], []>} : vector<128x32xbf16>, vector<32x32xbf16>, vector<128x32xf32> -> vector<128x32xf32>
      %c0_55 = arith.constant 0 : index
      %c0_56 = arith.constant 0 : index
      %116 = vector.load %arg11[%c0_55, %c0_56] : memref<1x32xf32, #tpu.memory_space<vmem>>, vector<1x32xf32>
      %117 = vector.broadcast %116 : vector<1x32xf32> to vector<128x32xf32>
      %118 = arith.addf %115, %117 : vector<128x32xf32>
      %119 = arith.truncf %111 : vector<128x32xf32> to vector<128x32xbf16>
      %c0_57 = arith.constant 0 : index
      %c0_58 = arith.constant 0 : index
      %120 = vector.load %arg15[%c0_57, %c0_58] : memref<128x32xbf16, #tpu.memory_space<vmem>>, vector<128x32xbf16>
      tpu.vector_store %arg15[%c0_57, %c0_58], %119 {strides = array<i32>} : memref<128x32xbf16, #tpu.memory_space<vmem>>, vector<128x32xbf16>,
      %121 = arith.truncf %118 : vector<128x32xf32> to vector<128x32xbf16>
      %c0_59 = arith.constant 0 : index
      %c0_60 = arith.constant 0 : index
      %122 = vector.load %arg16[%c0_59, %c0_60] : memref<128x32xbf16, #tpu.memory_space<vmem>>, vector<128x32xbf16>
      tpu.vector_store %arg16[%c0_59, %c0_60], %121 {strides = array<i32>} : memref<128x32xbf16, #tpu.memory_space<vmem>>, vector<128x32xbf16>,
    } else {
    }
    %c0 = arith.constant 0 : index
    %c0_1 = arith.constant 0 : index
    %c0_2 = arith.constant 0 : index
    %3 = vector.load %arg2[%c0, %c0_1, %c0_2] : memref<1x128x32xbf16, #tpu.memory_space<vmem>>, vector<1x128x32xbf16>
    %4 = vector.shape_cast %3 : vector<1x128x32xbf16> to vector<128x32xbf16>
    %c0_3 = arith.constant 0 : index
    %c0_4 = arith.constant 0 : index
    %5 = vector.load %arg6[%c0_3, %c0_4] : memref<32x32xbf16, #tpu.memory_space<vmem>>, vector<32x32xbf16>
    %cst = arith.constant dense<0.000000e+00> : vector<128x32xf32>
    %6 = tpu.matmul %4, %5, %cst {dimension_numbers = #tpu.dot_dimension_numbers<[1], [0], [0], [1], [0, 0, 1, 1], [], []>} : vector<128x32xbf16>, vector<32x32xbf16>, vector<128x32xf32> -> vector<128x32xf32>
    %c0_5 = arith.constant 0 : index
    %c0_6 = arith.constant 0 : index
    %7 = vector.load %arg7[%c0_5, %c0_6] : memref<1x32xf32, #tpu.memory_space<vmem>>, vector<1x32xf32>
    %8 = vector.broadcast %7 : vector<1x32xf32> to vector<128x32xf32>
    %9 = arith.addf %6, %8 : vector<128x32xf32>
    %10 = arith.truncf %9 : vector<128x32xf32> to vector<128x32xbf16>
    %c0_7 = arith.constant 0 : index
    %c0_8 = arith.constant 0 : index
    %11 = vector.load %arg15[%c0_7, %c0_8] : memref<128x32xbf16, #tpu.memory_space<vmem>>, vector<128x32xbf16>
    %c0_9 = arith.constant 0 : index
    %c0_10 = arith.constant 0 : index
    %12 = vector.load %arg16[%c0_9, %c0_10] : memref<128x32xbf16, #tpu.memory_space<vmem>>, vector<128x32xbf16>
    %c0_11 = arith.constant 0 : index
    %c0_12 = arith.constant 0 : index
    %c0_13 = arith.constant 0 : index
    %13 = vector.load %arg5[%c0_11, %c0_12, %c0_13] : memref<1x1x128xf32, #tpu.memory_space<vmem>>, vector<1x1x128xf32>
    %14 = vector.shape_cast %13 : vector<1x1x128xf32> to vector<1x128xf32>
    %cst_14 = arith.constant 0.000000e+00 : f32
    %15 = vector.broadcast %cst_14 : f32 to vector<1x128xf32>
    %16 = arith.cmpf oeq, %14, %15 : vector<1x128xf32>
    %cst_15 = arith.constant 0xFF800000 : f32
    %cst_16 = arith.constant 0.000000e+00 : f32
    %17 = vector.broadcast %cst_15 : f32 to vector<1x128xf32>
    %18 = vector.broadcast %cst_16 : f32 to vector<1x128xf32>
    %19 = arith.select %16, %17, %18 : vector<1x128xi1>, vector<1x128xf32>
    %20 = vector.extract_strided_slice %10 {offsets = [0, 0], sizes = [128, 8], strides = [1, 1]} : vector<128x32xbf16> to vector<128x8xbf16>
    %21 = vector.extract_strided_slice %11 {offsets = [0, 0], sizes = [128, 8], strides = [1, 1]} : vector<128x32xbf16> to vector<128x8xbf16>
    %22 = vector.extract_strided_slice %12 {offsets = [0, 0], sizes = [128, 8], strides = [1, 1]} : vector<128x32xbf16> to vector<128x8xbf16>
    %cst_17 = arith.constant dense<0.000000e+00> : vector<128x128xf32>
    %23 = tpu.matmul %20, %21, %cst_17 {dimension_numbers = #tpu.dot_dimension_numbers<[1], [1], [0], [0], [0, 0, 1, 0], [], []>} : vector<128x8xbf16>, vector<128x8xbf16>, vector<128x128xf32> -> vector<128x128xf32>
    %24 = vector.broadcast %19 : vector<1x128xf32> to vector<128x128xf32>
    %25 = arith.addf %23, %24 : vector<128x128xf32>
    %cst_18 = arith.constant dense<0xFF800000> : vector<128xf32>
    %26 = vector.multi_reduction <maximumf>, %25, %cst_18 [1] : vector<128x128xf32> to vector<128xf32>
    %27 = vector.shape_cast %26 : vector<128xf32> to vector<128x1xf32>
    %28 = vector.broadcast %27 : vector<128x1xf32> to vector<128x128xf32>
    %29 = arith.subf %25, %28 : vector<128x128xf32>
    %30 = math.exp %29 : vector<128x128xf32>
    %cst_19 = arith.constant dense<0.000000e+00> : vector<128xf32>
    %31 = vector.multi_reduction <add>, %30, %cst_19 [1] : vector<128x128xf32> to vector<128xf32>
    %32 = vector.shape_cast %31 : vector<128xf32> to vector<128x1xf32>
    %33 = tpu.reciprocal %32 {approx = true} : vector<128x1xf32> -> vector<128x1xf32>
    %34 = vector.broadcast %33 : vector<128x1xf32> to vector<128x128xf32>
    %35 = arith.mulf %30, %34 : vector<128x128xf32>
    %36 = arith.truncf %35 : vector<128x128xf32> to vector<128x128xbf16>
    %cst_20 = arith.constant dense<0.000000e+00> : vector<128x8xf32>
    %37 = tpu.matmul %36, %22, %cst_20 {dimension_numbers = #tpu.dot_dimension_numbers<[1], [0], [0], [1], [0, 0, 1, 1], [], []>} : vector<128x128xbf16>, vector<128x8xbf16>, vector<128x8xf32> -> vector<128x8xf32>
    %38 = arith.truncf %37 : vector<128x8xf32> to vector<128x8xbf16>
    %39 = vector.extract_strided_slice %10 {offsets = [0, 8], sizes = [128, 8], strides = [1, 1]} : vector<128x32xbf16> to vector<128x8xbf16>
    %40 = vector.extract_strided_slice %11 {offsets = [0, 8], sizes = [128, 8], strides = [1, 1]} : vector<128x32xbf16> to vector<128x8xbf16>
    %41 = vector.extract_strided_slice %12 {offsets = [0, 8], sizes = [128, 8], strides = [1, 1]} : vector<128x32xbf16> to vector<128x8xbf16>
    %cst_21 = arith.constant dense<0.000000e+00> : vector<128x128xf32>
    %42 = tpu.matmul %39, %40, %cst_21 {dimension_numbers = #tpu.dot_dimension_numbers<[1], [1], [0], [0], [0, 0, 1, 0], [], []>} : vector<128x8xbf16>, vector<128x8xbf16>, vector<128x128xf32> -> vector<128x128xf32>
    %43 = vector.broadcast %19 : vector<1x128xf32> to vector<128x128xf32>
    %44 = arith.addf %42, %43 : vector<128x128xf32>
    %cst_22 = arith.constant dense<0xFF800000> : vector<128xf32>
    %45 = vector.multi_reduction <maximumf>, %44, %cst_22 [1] : vector<128x128xf32> to vector<128xf32>
    %46 = vector.shape_cast %45 : vector<128xf32> to vector<128x1xf32>
    %47 = vector.broadcast %46 : vector<128x1xf32> to vector<128x128xf32>
    %48 = arith.subf %44, %47 : vector<128x128xf32>
    %49 = math.exp %48 : vector<128x128xf32>
    %cst_23 = arith.constant dense<0.000000e+00> : vector<128xf32>
    %50 = vector.multi_reduction <add>, %49, %cst_23 [1] : vector<128x128xf32> to vector<128xf32>
    %51 = vector.shape_cast %50 : vector<128xf32> to vector<128x1xf32>
    %52 = tpu.reciprocal %51 {approx = true} : vector<128x1xf32> -> vector<128x1xf32>
    %53 = vector.broadcast %52 : vector<128x1xf32> to vector<128x128xf32>
    %54 = arith.mulf %49, %53 : vector<128x128xf32>
    %55 = arith.truncf %54 : vector<128x128xf32> to vector<128x128xbf16>
    %cst_24 = arith.constant dense<0.000000e+00> : vector<128x8xf32>
    %56 = tpu.matmul %55, %41, %cst_24 {dimension_numbers = #tpu.dot_dimension_numbers<[1], [0], [0], [1], [0, 0, 1, 1], [], []>} : vector<128x128xbf16>, vector<128x8xbf16>, vector<128x8xf32> -> vector<128x8xf32>
    %57 = arith.truncf %56 : vector<128x8xf32> to vector<128x8xbf16>
    %58 = vector.extract_strided_slice %10 {offsets = [0, 16], sizes = [128, 8], strides = [1, 1]} : vector<128x32xbf16> to vector<128x8xbf16>
    %59 = vector.extract_strided_slice %11 {offsets = [0, 16], sizes = [128, 8], strides = [1, 1]} : vector<128x32xbf16> to vector<128x8xbf16>
    %60 = vector.extract_strided_slice %12 {offsets = [0, 16], sizes = [128, 8], strides = [1, 1]} : vector<128x32xbf16> to vector<128x8xbf16>
    %cst_25 = arith.constant dense<0.000000e+00> : vector<128x128xf32>
    %61 = tpu.matmul %58, %59, %cst_25 {dimension_numbers = #tpu.dot_dimension_numbers<[1], [1], [0], [0], [0, 0, 1, 0], [], []>} : vector<128x8xbf16>, vector<128x8xbf16>, vector<128x128xf32> -> vector<128x128xf32>
    %62 = vector.broadcast %19 : vector<1x128xf32> to vector<128x128xf32>
    %63 = arith.addf %61, %62 : vector<128x128xf32>
    %cst_26 = arith.constant dense<0xFF800000> : vector<128xf32>
    %64 = vector.multi_reduction <maximumf>, %63, %cst_26 [1] : vector<128x128xf32> to vector<128xf32>
    %65 = vector.shape_cast %64 : vector<128xf32> to vector<128x1xf32>
    %66 = vector.broadcast %65 : vector<128x1xf32> to vector<128x128xf32>
    %67 = arith.subf %63, %66 : vector<128x128xf32>
    %68 = math.exp %67 : vector<128x128xf32>
    %cst_27 = arith.constant dense<0.000000e+00> : vector<128xf32>
    %69 = vector.multi_reduction <add>, %68, %cst_27 [1] : vector<128x128xf32> to vector<128xf32>
    %70 = vector.shape_cast %69 : vector<128xf32> to vector<128x1xf32>
    %71 = tpu.reciprocal %70 {approx = true} : vector<128x1xf32> -> vector<128x1xf32>
    %72 = vector.broadcast %71 : vector<128x1xf32> to vector<128x128xf32>
    %73 = arith.mulf %68, %72 : vector<128x128xf32>
    %74 = arith.truncf %73 : vector<128x128xf32> to vector<128x128xbf16>
    %cst_28 = arith.constant dense<0.000000e+00> : vector<128x8xf32>
    %75 = tpu.matmul %74, %60, %cst_28 {dimension_numbers = #tpu.dot_dimension_numbers<[1], [0], [0], [1], [0, 0, 1, 1], [], []>} : vector<128x128xbf16>, vector<128x8xbf16>, vector<128x8xf32> -> vector<128x8xf32>
    %76 = arith.truncf %75 : vector<128x8xf32> to vector<128x8xbf16>
    %77 = vector.extract_strided_slice %10 {offsets = [0, 24], sizes = [128, 8], strides = [1, 1]} : vector<128x32xbf16> to vector<128x8xbf16>
    %78 = vector.extract_strided_slice %11 {offsets = [0, 24], sizes = [128, 8], strides = [1, 1]} : vector<128x32xbf16> to vector<128x8xbf16>
    %79 = vector.extract_strided_slice %12 {offsets = [0, 24], sizes = [128, 8], strides = [1, 1]} : vector<128x32xbf16> to vector<128x8xbf16>
    %cst_29 = arith.constant dense<0.000000e+00> : vector<128x128xf32>
    %80 = tpu.matmul %77, %78, %cst_29 {dimension_numbers = #tpu.dot_dimension_numbers<[1], [1], [0], [0], [0, 0, 1, 0], [], []>} : vector<128x8xbf16>, vector<128x8xbf16>, vector<128x128xf32> -> vector<128x128xf32>
    %81 = vector.broadcast %19 : vector<1x128xf32> to vector<128x128xf32>
    %82 = arith.addf %80, %81 : vector<128x128xf32>
    %cst_30 = arith.constant dense<0xFF800000> : vector<128xf32>
    %83 = vector.multi_reduction <maximumf>, %82, %cst_30 [1] : vector<128x128xf32> to vector<128xf32>
    %84 = vector.shape_cast %83 : vector<128xf32> to vector<128x1xf32>
    %85 = vector.broadcast %84 : vector<128x1xf32> to vector<128x128xf32>
    %86 = arith.subf %82, %85 : vector<128x128xf32>
    %87 = math.exp %86 : vector<128x128xf32>
    %cst_31 = arith.constant dense<0.000000e+00> : vector<128xf32>
    %88 = vector.multi_reduction <add>, %87, %cst_31 [1] : vector<128x128xf32> to vector<128xf32>
    %89 = vector.shape_cast %88 : vector<128xf32> to vector<128x1xf32>
    %90 = tpu.reciprocal %89 {approx = true} : vector<128x1xf32> -> vector<128x1xf32>
    %91 = vector.broadcast %90 : vector<128x1xf32> to vector<128x128xf32>
    %92 = arith.mulf %87, %91 : vector<128x128xf32>
    %93 = arith.truncf %92 : vector<128x128xf32> to vector<128x128xbf16>
    %cst_32 = arith.constant dense<0.000000e+00> : vector<128x8xf32>
    %94 = tpu.matmul %93, %79, %cst_32 {dimension_numbers = #tpu.dot_dimension_numbers<[1], [0], [0], [1], [0, 0, 1, 1], [], []>} : vector<128x128xbf16>, vector<128x8xbf16>, vector<128x8xf32> -> vector<128x8xf32>
    %95 = arith.truncf %94 : vector<128x8xf32> to vector<128x8xbf16>
    %96 = tpu.concatenate %38, %57, %76, %95 in 1 : vector<128x8xbf16>, vector<128x8xbf16>, vector<128x8xbf16>, vector<128x8xbf16> -> vector<128x32xbf16>
    %c0_33 = arith.constant 0 : index
    %c0_34 = arith.constant 0 : index
    %97 = vector.load %arg12[%c0_33, %c0_34] : memref<32x32xbf16, #tpu.memory_space<vmem>>, vector<32x32xbf16>
    %cst_35 = arith.constant dense<0.000000e+00> : vector<128x32xf32>
    %98 = tpu.matmul %96, %97, %cst_35 {dimension_numbers = #tpu.dot_dimension_numbers<[1], [0], [0], [1], [0, 0, 1, 1], [], []>} : vector<128x32xbf16>, vector<32x32xbf16>, vector<128x32xf32> -> vector<128x32xf32>
    %c0_36 = arith.constant 0 : index
    %c0_37 = arith.constant 0 : index
    %99 = vector.load %arg13[%c0_36, %c0_37] : memref<1x32xf32, #tpu.memory_space<vmem>>, vector<1x32xf32>
    %100 = vector.broadcast %99 : vector<1x32xf32> to vector<128x32xf32>
    %101 = arith.addf %98, %100 : vector<128x32xf32>
    %c0_38 = arith.constant 0 : index
    %c0_39 = arith.constant 0 : index
    %c0_40 = arith.constant 0 : index
    %102 = vector.load %arg14[%c0_38, %c0_39, %c0_40] : memref<1x128x32xf32, #tpu.memory_space<vmem>>, vector<1x128x32xf32>
    %103 = vector.shape_cast %102 : vector<1x128x32xf32> to vector<128x32xf32>
    %104 = vector.shape_cast %101 : vector<128x32xf32> to vector<1x128x32xf32>
    tpu.vector_store %arg14[%c0_38, %c0_39, %c0_40], %104 {strides = array<i32>} : memref<1x128x32xf32, #tpu.memory_space<vmem>>, vector<1x128x32xf32>,
    return
  }
  func.func @transform_0(%arg0: i32, %arg1: i32) -> (i32, i32, i32) {
    %c0_i32 = arith.constant 0 : i32
    %c0_i32_0 = arith.constant 0 : i32
    return %arg0, %arg1, %c0_i32 : i32, i32, i32
  }
  func.func @transform_1(%arg0: i32, %arg1: i32) -> (i32, i32, i32) {
    %c0_i32 = arith.constant 0 : i32
    %c0_i32_0 = arith.constant 0 : i32
    %c0_i32_1 = arith.constant 0 : i32
    return %arg0, %c0_i32, %c0_i32_0 : i32, i32, i32
  }
  func.func @transform_2(%arg0: i32, %arg1: i32) -> (i32, i32, i32) {
    %c0_i32 = arith.constant 0 : i32
    %c0_i32_0 = arith.constant 0 : i32
    %c0_i32_1 = arith.constant 0 : i32
    return %arg0, %c0_i32, %c0_i32_0 : i32, i32, i32
  }
  func.func @transform_3(%arg0: i32, %arg1: i32) -> (i32, i32, i32) {
    %c0_i32 = arith.constant 0 : i32
    %c0_i32_0 = arith.constant 0 : i32
    %c0_i32_1 = arith.constant 0 : i32
    return %arg0, %c0_i32, %c0_i32_0 : i32, i32, i32
  }
  func.func @transform_4(%arg0: i32, %arg1: i32) -> (i32, i32) {
    %c0_i32 = arith.constant 0 : i32
    %c0_i32_0 = arith.constant 0 : i32
    %c0_i32_1 = arith.constant 0 : i32
    return %c0_i32, %c0_i32_0 : i32, i32
  }
  func.func @transform_5(%arg0: i32, %arg1: i32) -> (i32, i32) {
    %c0_i32 = arith.constant 0 : i32
    %c0_i32_0 = arith.constant 0 : i32
    %c0_i32_1 = arith.constant 0 : i32
    return %c0_i32, %c0_i32_0 : i32, i32
  }
  func.func @transform_6(%arg0: i32, %arg1: i32) -> (i32, i32) {
    %c0_i32 = arith.constant 0 : i32
    %c0_i32_0 = arith.constant 0 : i32
    %c0_i32_1 = arith.constant 0 : i32
    return %c0_i32, %c0_i32_0 : i32, i32
  }
  func.func @transform_7(%arg0: i32, %arg1: i32) -> (i32, i32) {
    %c0_i32 = arith.constant 0 : i32
    %c0_i32_0 = arith.constant 0 : i32
    %c0_i32_1 = arith.constant 0 : i32
    return %c0_i32, %c0_i32_0 : i32, i32
  }
  func.func @transform_8(%arg0: i32, %arg1: i32) -> (i32, i32) {
    %c0_i32 = arith.constant 0 : i32
    %c0_i32_0 = arith.constant 0 : i32
    %c0_i32_1 = arith.constant 0 : i32
    return %c0_i32, %c0_i32_0 : i32, i32
  }
  func.func @transform_9(%arg0: i32, %arg1: i32) -> (i32, i32) {
    %c0_i32 = arith.constant 0 : i32
    %c0_i32_0 = arith.constant 0 : i32
    %c0_i32_1 = arith.constant 0 : i32
    return %c0_i32, %c0_i32_0 : i32, i32
  }
  func.func @transform_10(%arg0: i32, %arg1: i32) -> (i32, i32) {
    %c0_i32 = arith.constant 0 : i32
    %c0_i32_0 = arith.constant 0 : i32
    %c0_i32_1 = arith.constant 0 : i32
    return %c0_i32, %c0_i32_0 : i32, i32
  }
  func.func @transform_11(%arg0: i32, %arg1: i32) -> (i32, i32) {
    %c0_i32 = arith.constant 0 : i32
    %c0_i32_0 = arith.constant 0 : i32
    %c0_i32_1 = arith.constant 0 : i32
    return %c0_i32, %c0_i32_0 : i32, i32
  }
  func.func @transform_12(%arg0: i32, %arg1: i32) -> (i32, i32, i32) {
    %c0_i32 = arith.constant 0 : i32
    %c0_i32_0 = arith.constant 0 : i32
    return %arg0, %arg1, %c0_i32 : i32, i32, i32
  }
}

</mosaic_0001>

<bundles_post_ra>
// kernel: tpu_custom_call.1
= control target key start
LH: loop header
LB: loop body
LE: loop exit
PB: predicated region body
PF: predicated region fallthrough
CT: control target
= control target key end

     0   :  { %s4785_s21 = smov 0   ;;  %s4787_s22 = smov 0   ;;  %s6190_s0 = inlined_call_operand.vmem [shape: bf16[2,128,32], index: 0, kind: input, shape index: {}]   ;;  %s6191_s1 = inlined_call_operand.vmem [shape: bf16[2,128,32], index: 1, kind: input, shape index: {}]   ;;  %s6192_s2 = inlined_call_operand.vmem [shape: bf16[2,128,32], index: 2, kind: input, shape index: {}]   ;;  %s6193_s3 = inlined_call_operand.vmem [shape: f32[2,1,128], index: 3, kind: input, shape index: {}]   ;;  %s6194_s4 = inlined_call_operand.vmem [shape: bf16[32,32], index: 4, kind: input, shape index: {}]   ;;  %s6195_s5 = inlined_call_operand.vmem [shape: f32[1,32], index: 5, kind: input, shape index: {}]   ;;  %s6196_s6 = inlined_call_operand.vmem [shape: bf16[32,32], index: 6, kind: input, shape index: {}]   ;;  %s6197_s7 = inlined_call_operand.vmem [shape: f32[1,32], index: 7, kind: input, shape index: {}]   ;;  %s6198_s8 = inlined_call_operand.vmem [shape: bf16[32,32], index: 8, kind: input, shape index: {}]   ;;  %s6199_s9 = inlined_call_operand.vmem [shape: f32[1,32], index: 9, kind: input, shape index: {}]   ;;  %s6200_s10 = inlined_call_operand.vmem [shape: bf16[32,32], index: 10, kind: input, shape index: {}]   ;;  %s6201_s11 = inlined_call_operand.vmem [shape: f32[1,32], index: 11, kind: input, shape index: {}]   ;;  %s6202_s12 = inlined_call_operand.vmem [shape: f32[2,128,32], index: 12, kind: output, shape index: {}]  }
   0x1   :  { %s4789_s23 = smov 0  }
   0x2 LB: > { %s34_s24 = sadd.s32 1, %s4707_s22  ;;  %p3603_p0 = scmp.ge.s32.totalorder %s4711_s23, 1  ;;  %s4711_s23 = sphi %s4789_s23, %s22_s23   ;;  %s4707_s22 = sphi %s4787_s22, %s6285_s22   ;;  %s4703_s21 = sphi %s4785_s21, %s6284_s21  }
   0x3   : > { %p36_p1 = scmp.ge.s32.totalorder %s34_s24, 2  ;;  %p411_p2 = scmp.lt.s32.totalorder %s4711_s23, 3 }
   0x5   : > { %s6287_s24 = smov (%p36_p1, %s34_s24), 0  ;;  %p412_p3 = pnand %p3603_p0, %p411_p2 }
   0x7   : > { %415 = sbr.rel (%p412_p3) target bundleno = 3250 (0xcb2), region = 68 }
   0xc   : > { %v4365_v0 = vld [vmem:[%s6196_s6 + $0x8] sm:$0xff]   ;;  %p475_p4 = scmp.lt.s32.totalorder %s4703_s21, 1  ;;  %v4366_v1 = vld [vmem:[%s6196_s6] sm:$0xff]   ;;  %vm591_vm0 = vcmask 261120   ;;  %vm977_vm1 = vcmask 257024   ;;  %vm1364_vm2 = vcmask 64512  }
   0xd   : > { %3966 = vmatprep.subr.bf16.mxu0 %v4365_v0  ;;  %v4375_v2 = vld [vmem:[%s6194_s4 + $0x8] sm:$0xff]   ;;  %v4377_v5 = vld [vmem:[%s6194_s4] sm:$0xff]   ;;  %s4713_s25 = smov 120   ;;  %s4715_s30 = smov 112   ;;  %vm3293_vm4 = vcmask 130048   ;;  %vm3310_vm5 = vcmask 195584  }
   0xe   : > { %s6289_s21 = smov (!%p475_p4, %s4703_s21), 1  ;;  %3967 = vmatpush3.bf16.msra.mxu0 %v4365_v0  ;;  %v4376_v3 = vld [vmem:[%s6198_s8 + $0x8] sm:$0xff]   ;;  %v4378_v10 = vld [vmem:[%s6198_s8] sm:$0xff]   ;;  %s4716_s13 = smov 104  }
   0xf   : > { %3968 = vmatprep.subr.bf16.mxu0 %v4366_v1  ;;  %s3762_s29 = sshll.u32 %s6289_s21, 6  ;;  %3986 = vmatprep.subr.bf16.mxu1 %v4376_v3  ;;  %v4890_v30 = vld [vmem:[%s6197_s7] ss:$0 sm:$0xff]  ;;  %s496_s28 = scalar_lea.vmem %s6193_s3, %s6289_s21 }
  0x10   : > { %s4821_s18 = scalar_lea.vmem %s6191_s1, %s3762_s29  ;;  %3987 = vmatpush3.bf16.msra.mxu1 %v4376_v3  ;;  %s4836_s27 = scalar_lea.vmem %s6192_s2, %s3762_s29  ;;  %v4903_v47 = vld [vmem:[%s6199_s9] ss:$0 sm:$0xff] }
  0x11   : > { %v4367_v4 = vld [vmem:[%s4821_s18] sm:$0xff]   ;;  %v4368_v6 = vld [vmem:[%s4821_s18 + $0x8] sm:$0xff]   ;;  %v4369_v7 = vld [vmem:[%s4821_s18 + $0x10] sm:$0xff]   ;;  %s4845_s15 = scalar_lea.vmem %s6190_s0, %s3762_s29  ;;  %3988 = vmatprep.subr.bf16.mxu1 %v4378_v10  ;;  %s4717_s14 = smov 8  }
  0x12   : > { %3969 = vmatpush3.bf16.msra.mxu0 %v4366_v1  ;;  %3970 = vmatprep.mubr.msk.bf16.mxu0 %vm591_vm0, %v4367_v4  ;;  %v4370_v8 = vld [vmem:[%s4821_s18 + $0x18] sm:$0xff]   ;;  %v4371_v9 = vld [vmem:[%s4821_s18 + $0x20] sm:$0xff]   ;;  %v4380_v12 = vld [vmem:[%s4836_s27 + $0x8] sm:$0xff]   ;;  %s4719_s19 = smov 24   ;;  %s3765_s20 = sshll.u32 %s6289_s21, 7 }
  0x13   : > { %4006 = vmatprep.subr.bf16.mxu0 %v4375_v2  ;;  %v4379_v11 = vld [vmem:[%s4836_s27] sm:$0xff]   ;;  %v4383_v13 = vld [vmem:[%s4836_s27 + $0x10] sm:$0xff]   ;;  %v4372_v14 = vld [vmem:[%s4821_s18 + $0x28] sm:$0xff]  }
  0x14   : > { %3989 = vmatpush3.bf16.msra.mxu1 %v4378_v10  ;;  %3990 = vmatprep.mubr.msk.bf16.mxu1 %vm591_vm0, %v4379_v11  ;;  %v4373_v15 = vld [vmem:[%s4821_s18 + $0x30] sm:$0xff]   ;;  %v4384_v16 = vld [vmem:[%s4836_s27 + $0x18] sm:$0xff]   ;;  %v4385_v17 = vld [vmem:[%s4836_s27 + $0x20] sm:$0xff]  }
  0x15   : > { %3971 = vmatmul.mubr.msk.bf16.vlgmr.msra.gmra.mxu0 %vm591_vm0, %v4368_v6  ;;  %v4374_v18 = vld [vmem:[%s4821_s18 + $0x38] sm:$0xff]   ;;  %v4381_v19 = vld [vmem:[%s4845_s15] sm:$0xff]   ;;  %v4386_v20 = vld [vmem:[%s4836_s27 + $0x28] sm:$0xff]  }
  0x16   : > { %3974 = vmatprep.mubr.msk.bf16.mxu0 %vm591_vm0, %v4369_v7  ;;  %4007 = vmatpush3.bf16.msra.mxu0 %v4375_v2  ;;  %v4389_v21 = vld [vmem:[%s4836_s27 + $0x30] sm:$0xff]   ;;  %v4382_v22 = vld [vmem:[%s4845_s15 + $0x8] sm:$0xff]   ;;  %v4390_v24 = vld [vmem:[%s4836_s27 + $0x38] sm:$0xff]  }
  0x17   : > { %4008 = vmatprep.subr.bf16.mxu0 %v4377_v5  ;;  %3991 = vmatmul.mubr.msk.bf16.vlgmr.msra.gmra.mxu1 %vm591_vm0, %v4380_v12  ;;  %v4387_v23 = vld [vmem:[%s4845_s15 + $0x10] sm:$0xff]   ;;  %v4388_v25 = vld [vmem:[%s4845_s15 + $0x18] sm:$0xff]   ;;  %v4391_v26 = vld [vmem:[%s4845_s15 + $0x20] sm:$0xff]  }
  0x18   : > { %3994 = vmatprep.mubr.msk.bf16.mxu1 %vm591_vm0, %v4383_v13  ;;  %v4392_v27 = vld [vmem:[%s4845_s15 + $0x28] sm:$0xff]   ;;  %v4393_v28 = vld [vmem:[%s4845_s15 + $0x30] sm:$0xff]   ;;  %v4394_v29 = vld [vmem:[%s4845_s15 + $0x38] sm:$0xff]   ;;  %s4718_s15 = smov 16  }
  0x1a   : > { %4009 = vmatpush3.bf16.msra.mxu0 %v4377_v5 }
  0x1d   : > { %3975 = vmatmul.mubr.msk.bf16.gmra.mxu0 %vm591_vm0, %v4370_v8 }
  0x1e   : > { %3978 = vmatprep.mubr.msk.bf16.mxu0 %vm591_vm0, %v4371_v9 }
  0x1f   : > { %3995 = vmatmul.mubr.msk.bf16.gmra.mxu1 %vm591_vm0, %v4384_v16 }
  0x20   : > { %3998 = vmatprep.mubr.msk.bf16.mxu1 %vm591_vm0, %v4385_v17 }
  0x25   : > { %3979 = vmatmul.mubr.msk.bf16.gmra.mxu0 %vm591_vm0, %v4372_v14 }
  0x26   : > { %3982 = vmatprep.mubr.msk.bf16.mxu0 %vm591_vm0, %v4373_v15 }
  0x27   : > { %3999 = vmatmul.mubr.msk.bf16.gmra.mxu1 %vm591_vm0, %v4386_v20 }
  0x28   : > { %4002 = vmatprep.mubr.msk.bf16.mxu1 %vm591_vm0, %v4389_v21 }
  0x2d   : > { %3983 = vmatmul.mubr.msk.bf16.gmra.mxu0 %vm591_vm0, %v4374_v18 }
  0x2e   : > { %4010 = vmatprep.mubr.msk.bf16.mxu0 %vm591_vm0, %v4381_v19 }
  0x2f   : > { %4003 = vmatmul.mubr.msk.bf16.gmra.mxu1 %vm591_vm0, %v4390_v24 }
  0x35   : > { %4011 = vmatmul.mubr.msk.bf16.vlgmr.msra.gmra.mxu0 %vm591_vm0, %v4382_v22 }
  0x36   : > { %4014 = vmatprep.mubr.msk.bf16.mxu0 %vm591_vm0, %v4387_v23 }
  0x3d   : > { %4015 = vmatmul.mubr.msk.bf16.gmra.mxu0 %vm591_vm0, %v4388_v25 }
  0x3e   : > { %4018 = vmatprep.mubr.msk.bf16.mxu0 %vm591_vm0, %v4391_v26 }
  0x45   : > { %4019 = vmatmul.mubr.msk.bf16.gmra.mxu0 %vm591_vm0, %v4392_v27 }
  0x46   : > { %4022 = vmatprep.mubr.msk.bf16.mxu0 %vm591_vm0, %v4393_v28 }
  0x4d   : > { %4023 = vmatmul.mubr.msk.bf16.gmra.mxu0 %vm591_vm0, %v4394_v29 }
  0xd5   : > { %v3972_v31 = vpop.f32.mrf.mxu0 }
  0xd6   : > { %v659_v32 = vadd.f32 %v3972_v31, %v4890_v30 }
  0xd7   : > { %v650_v33 = vpop.f32.mrf.mxu0  ;;  %v3992_v46 = vpop.f32.mrf.mxu1 }
  0xd8   : > { %v3768_v34 = vpack.c.bf16 %v659_v32, %v659_v32  ;;  %v651_v35 = vadd.f32 %v4890_v30, %v650_v33  ;;  %v859_v50 = vadd.f32 %v3992_v46, %v4903_v47 }
  0xd9   : > { %v3973_v36 = vpop.f32.mrf.mxu0  ;;  %v850_v52 = vpop.f32.mrf.mxu1 }
  0xda   : > { %980 = vst.msk [vmem:[#allocation2 + $0x8] sm:$0xf] %vm977_vm1, %v3768_v34  ;;  %v3766_v37 = vpack.c.bf16 %v651_v35, %v651_v35  ;;  %v662_v38 = vadd.f32 %v3973_v36, %v4890_v30  ;;  %v3784_v55 = vpack.c.bf16 %v859_v50, %v859_v50  ;;  %v851_v56 = vadd.f32 %v4903_v47, %v850_v52  ;;  %v4950_v50 = vld [vmem:[%s6195_s5] ss:$0 sm:$0xff] }
  0xdb   : > { %v653_v39 = vpop.f32.mrf.mxu0  ;;  %v3993_v58 = vpop.f32.mrf.mxu1 }
  0xdc   : > { %978 = vst.msk [vmem:[#allocation2] sm:$0xf] %vm977_vm1, %v3766_v37  ;;  %v3769_v40 = vpack.c.bf16 %v662_v38, %v662_v38  ;;  %v654_v41 = vadd.f32 %v4890_v30, %v653_v39  ;;  %1060 = vst.msk [vmem:[#allocation3 + $0x8] sm:$0xf] %vm977_vm1, %v3784_v55  ;;  %v3782_v61 = vpack.c.bf16 %v851_v56, %v851_v56 }
  0xdd   : > { %v3976_v42 = vpop.f32.mrf.mxu0  ;;  %v862_v62 = vadd.f32 %v3993_v58, %v4903_v47  ;;  %v853_v0 = vpop.f32.mrf.mxu1 }
  0xde   : > { %981 = vst.msk [vmem:[#allocation2 + $0xc] sm:$0xf] %vm977_vm1, %v3769_v40  ;;  %v3767_v43 = vpack.c.bf16 %v654_v41, %v654_v41  ;;  %v675_v44 = vadd.f32 %v3976_v42, %v4890_v30  ;;  %1058 = vst.msk [vmem:[#allocation3] sm:$0xf] %vm977_vm1, %v3782_v61  ;;  %v854_v4 = vadd.f32 %v4903_v47, %v853_v0 }
  0xdf   : > { %v666_v45 = vpop.f32.mrf.mxu0  ;;  %v3785_v3 = vpack.c.bf16 %v862_v62, %v862_v62  ;;  %v3996_v6 = vpop.f32.mrf.mxu1 }
  0xe0   : > { %979 = vst.msk [vmem:[#allocation2 + $0x4] sm:$0xf] %vm977_vm1, %v3767_v43  ;;  %v3772_v48 = vpack.c.bf16 %v675_v44, %v675_v44  ;;  %v667_v49 = vadd.f32 %v4890_v30, %v666_v45  ;;  %v3783_v9 = vpack.c.bf16 %v854_v4, %v854_v4  ;;  %v875_v10 = vadd.f32 %v3996_v6, %v4903_v47 }
  0xe1   : > { %v3977_v51 = vpop.f32.mrf.mxu0  ;;  %1061 = vst.msk [vmem:[#allocation3 + $0xc] sm:$0xf] %vm977_vm1, %v3785_v3  ;;  %v866_v12 = vpop.f32.mrf.mxu1 }
  0xe2   : > { %984 = vst.msk [vmem:[#allocation2 + $0x18] sm:$0xf] %vm977_vm1, %v3772_v48  ;;  %v3770_v53 = vpack.c.bf16 %v667_v49, %v667_v49  ;;  %v678_v54 = vadd.f32 %v3977_v51, %v4890_v30  ;;  %1059 = vst.msk [vmem:[#allocation3 + $0x4] sm:$0xf] %vm977_vm1, %v3783_v9  ;;  %v3788_v15 = vpack.c.bf16 %v875_v10, %v875_v10 }
  0xe3   : > { %v669_v57 = vpop.f32.mrf.mxu0  ;;  %v867_v16 = vadd.f32 %v4903_v47, %v866_v12  ;;  %v3997_v18 = vpop.f32.mrf.mxu1 }
  0xe4   : > { %982 = vst.msk [vmem:[#allocation2 + $0x10] sm:$0xf] %vm977_vm1, %v3770_v53  ;;  %v3773_v59 = vpack.c.bf16 %v678_v54, %v678_v54  ;;  %v670_v60 = vadd.f32 %v4890_v30, %v669_v57  ;;  %1064 = vst.msk [vmem:[#allocation3 + $0x18] sm:$0xf] %vm977_vm1, %v3788_v15  ;;  %v878_v22 = vadd.f32 %v3997_v18, %v4903_v47 }
  0xe5   : > { %v3980_v63 = vpop.f32.mrf.mxu0  ;;  %v3786_v21 = vpack.c.bf16 %v867_v16, %v867_v16  ;;  %v869_v24 = vpop.f32.mrf.mxu1 }
  0xe6   : > { %985 = vst.msk [vmem:[#allocation2 + $0x1c] sm:$0xf] %vm977_vm1, %v3773_v59  ;;  %v3771_v1 = vpack.c.bf16 %v670_v60, %v670_v60  ;;  %v691_v2 = vadd.f32 %v3980_v63, %v4890_v30  ;;  %v3789_v27 = vpack.c.bf16 %v878_v22, %v878_v22  ;;  %v870_v28 = vadd.f32 %v4903_v47, %v869_v24 }
  0xe7   : > { %v682_v5 = vpop.f32.mrf.mxu0  ;;  %1062 = vst.msk [vmem:[#allocation3 + $0x10] sm:$0xf] %vm977_vm1, %v3786_v21  ;;  %v4000_v31 = vpop.f32.mrf.mxu1 }
  0xe8   : > { %983 = vst.msk [vmem:[#allocation2 + $0x14] sm:$0xf] %vm977_vm1, %v3771_v1  ;;  %v3776_v7 = vpack.c.bf16 %v691_v2, %v691_v2  ;;  %v683_v8 = vadd.f32 %v4890_v30, %v682_v5  ;;  %1065 = vst.msk [vmem:[#allocation3 + $0x1c] sm:$0xf] %vm977_vm1, %v3789_v27  ;;  %v3787_v34 = vpack.c.bf16 %v870_v28, %v870_v28  ;;  %v5031_v27 = vld [vmem:[#allocation3 + $0x8] sm:$0xff]  }
  0xe9   : > { %v3981_v11 = vpop.f32.mrf.mxu0  ;;  %v891_v35 = vadd.f32 %v4000_v31, %v4903_v47  ;;  %v882_v37 = vpop.f32.mrf.mxu1 }
  0xea   : > { %988 = vst.msk [vmem:[#allocation2 + $0x28] sm:$0xf] %vm977_vm1, %v3776_v7  ;;  %v3774_v13 = vpack.c.bf16 %v683_v8, %v683_v8  ;;  %v694_v14 = vadd.f32 %v3981_v11, %v4890_v30  ;;  %1063 = vst.msk [vmem:[#allocation3 + $0x14] sm:$0xf] %vm977_vm1, %v3787_v34  ;;  %v883_v41 = vadd.f32 %v4903_v47, %v882_v37 }
  0xeb   : > { %v685_v17 = vpop.f32.mrf.mxu0  ;;  %v3792_v40 = vpack.c.bf16 %v891_v35, %v891_v35  ;;  %v4001_v43 = vpop.f32.mrf.mxu1  ;;  %v5048_v35 = vld [vmem:[#allocation2 + $0x8] sm:$0xff]  }
  0xec   : > { %986 = vst.msk [vmem:[#allocation2 + $0x20] sm:$0xf] %vm977_vm1, %v3774_v13  ;;  %v3777_v19 = vpack.c.bf16 %v694_v14, %v694_v14  ;;  %v686_v20 = vadd.f32 %v4890_v30, %v685_v17  ;;  %v3790_v46 = vpack.c.bf16 %v883_v41, %v883_v41  ;;  %v894_v48 = vadd.f32 %v4001_v43, %v4903_v47 }
  0xed   : > { %v3984_v23 = vpop.f32.mrf.mxu0  ;;  %1068 = vst.msk [vmem:[#allocation3 + $0x28] sm:$0xf] %vm977_vm1, %v3792_v40  ;;  %v885_v51 = vpop.f32.mrf.mxu1  ;;  %v5022_v24 = vld [vmem:[#allocation2 + $0x18] sm:$0xff]  }
  0xee   : > { %989 = vst.msk [vmem:[#allocation2 + $0x2c] sm:$0xf] %vm977_vm1, %v3777_v19  ;;  %v3775_v25 = vpack.c.bf16 %v686_v20, %v686_v20  ;;  %v707_v26 = vadd.f32 %v3984_v23, %v4890_v30  ;;  %1066 = vst.msk [vmem:[#allocation3 + $0x20] sm:$0xf] %vm977_vm1, %v3790_v46  ;;  %v3793_v53 = vpack.c.bf16 %v894_v48, %v894_v48  ;;  %v1399_v28 = vsel %vm1364_vm2, %v5022_v24, 0 }
  0xef   : > { %v698_v29 = vpop.f32.mrf.mxu0  ;;  %v4004_v55 = vpop.f32.mrf.mxu1  ;;  %v5017_v22 = vld [vmem:[#allocation3 + $0x18] sm:$0xff]  }
  0xf0   : > { %987 = vst.msk [vmem:[#allocation2 + $0x24] sm:$0xf] %vm977_vm1, %v3775_v25  ;;  %v3780_v32 = vpack.c.bf16 %v707_v26, %v707_v26  ;;  %v699_v33 = vadd.f32 %v4890_v30, %v698_v29  ;;  %1069 = vst.msk [vmem:[#allocation3 + $0x2c] sm:$0xf] %vm977_vm1, %v3793_v53  ;;  %v907_v58 = vadd.f32 %v4004_v55, %v4903_v47  ;;  %v5036_v29 = vld [vmem:[#allocation2 + $0x10] sm:$0xff]  }
  0xf1   : > { %v3985_v36 = vpop.f32.mrf.mxu0  ;;  %v898_v60 = vpop.f32.mrf.mxu1  ;;  %v5025_v25 = vld [vmem:[#allocation3 + $0x10] sm:$0xff]   ;;  %v1396_v34 = vsel %vm1364_vm2, %v5036_v29, 0 }
  0xf2   : > { %992 = vst.msk [vmem:[#allocation2 + $0x38] sm:$0xf] %vm977_vm1, %v3780_v32  ;;  %v3778_v38 = vpack.c.bf16 %v699_v33, %v699_v33  ;;  %v710_v39 = vadd.f32 %v3985_v36, %v4890_v30  ;;  %v3796_v63 = vpack.c.bf16 %v907_v58, %v907_v58  ;;  %v899_v0 = vadd.f32 %v4903_v47, %v898_v60  ;;  %v5039_v32 = vld [vmem:[#allocation3] sm:$0xff]  }
  0xf3   : > { %v701_v42 = vpop.f32.mrf.mxu0  ;;  %v4005_v2 = vpop.f32.mrf.mxu1 }
  0xf4   : > { %990 = vst.msk [vmem:[#allocation2 + $0x30] sm:$0xf] %vm977_vm1, %v3778_v38  ;;  %v3781_v44 = vpack.c.bf16 %v710_v39, %v710_v39  ;;  %v702_v45 = vadd.f32 %v4890_v30, %v701_v42  ;;  %v886_v30 = vadd.f32 %v4903_v47, %v885_v51  ;;  %1072 = vst.msk [vmem:[#allocation3 + $0x38] sm:$0xf] %vm977_vm1, %v3796_v63  ;;  %v1393_v38 = vsel %vm1364_vm2, %v5048_v35, 0  ;;  %v5054_v39 = vld [vmem:[#allocation2] sm:$0xff]  }
  0xf5   : > { %v4012_v49 = vpop.f32.mrf.mxu0  ;;  %v3794_v5 = vpack.c.bf16 %v899_v0, %v899_v0  ;;  %v910_v6 = vadd.f32 %v4005_v2, %v4903_v47  ;;  %v901_v8 = vpop.f32.mrf.mxu1  ;;  %v4992_v15 = vld [vmem:[#allocation2 + $0x28] sm:$0xff]   ;;  %v1390_v42 = vsel %vm1364_vm2, %v5054_v39, 0 }
  0xf6   : > { %993 = vst.msk [vmem:[#allocation2 + $0x3c] sm:$0xf] %vm977_vm1, %v3781_v44  ;;  %v3779_v52 = vpack.c.bf16 %v702_v45, %v702_v45  ;;  %v1221_v56 = vadd.f32 %v4012_v49, %v4950_v50  ;;  %v3791_v57 = vpack.c.bf16 %v886_v30, %v886_v30  ;;  %v902_v11 = vadd.f32 %v4903_v47, %v901_v8 }
  0xf7   : > { %v1212_v54 = vpop.f32.mrf.mxu0  ;;  %1070 = vst.msk [vmem:[#allocation3 + $0x30] sm:$0xf] %vm977_vm1, %v3794_v5  ;;  %v3797_v10 = vpack.c.bf16 %v910_v6, %v910_v6  ;;  %v5003_v18 = vld [vmem:[#allocation3 + $0x28] sm:$0xff]   ;;  %v1405_v19 = vsel %vm1364_vm2, %v4992_v15, 0  ;;  %v5008_v20 = vld [vmem:[#allocation2 + $0x20] sm:$0xff]   ;;  %v1319_v5 = vlaneseq }
  0xf8   : > { %991 = vst.msk [vmem:[#allocation2 + $0x34] sm:$0xf] %vm977_vm1, %v3779_v52  ;;  %v1213_v61 = vadd.f32 %v4950_v50, %v1212_v54  ;;  %1067 = vst.msk [vmem:[#allocation3 + $0x24] sm:$0xf] %vm977_vm1, %v3791_v57  ;;  %v3795_v14 = vpack.c.bf16 %v902_v11, %v902_v11  ;;  %v1402_v23 = vsel %vm1364_vm2, %v5008_v20, 0 }
  0xf9   : > { %v4013_v59 = vpop.f32.mrf.mxu0  ;;  %1073 = vst.msk [vmem:[#allocation3 + $0x3c] sm:$0xf] %vm977_vm1, %v3797_v10  ;;  %v1315_v6 = vld [vmem:[%s496_s28] sm:$0x1]  ;;  %v4714_v10 = vmov 0.0  }
  0xfa   : > { %v1224_v62 = vadd.f32 %v4013_v59, %v4950_v50  ;;  %1071 = vst.msk [vmem:[#allocation3 + $0x34] sm:$0xf] %vm977_vm1, %v3795_v14  ;;  %vm1316_vm3 = vcmp.eq.f32.partialorder %v1315_v6, 0.0 }
  0xfb   : > { %v1215_v1 = vpop.f32.mrf.mxu0  ;;  %v1317_v11 = vsel %vm1316_vm3, -inf, %v4714_v10 }
  0xfc   : > { %v4963_v3 = vpack.c.bf16 %v1224_v62, %v1221_v56  ;;  %v1216_v4 = vadd.f32 %v4950_v50, %v1215_v1 }
  0xfd   : > { %v4968_v7 = vld [vmem:[#allocation2 + $0x38] sm:$0xff]   ;;  %v4016_v26 = vpop.f32.mrf.mxu0 }
  0xfe   : > { %v4970_v9 = vpack.c.bf16 %v1216_v4, %v1213_v61  ;;  %1853 = vrot.lane.b32.xlu0 %v4968_v7, %s4713_s25  ;;  %4302 = vmatprep.subr.msk.bf16.mxu1 %vm1364_vm2, %v4968_v7  ;;  %v1411_v12 = vsel %vm1364_vm2, %v4968_v7, 0  ;;  %v1237_v51 = vadd.f32 %v4016_v26, %v4950_v50 }
  0xff   : > { %v4980_v13 = vld [vmem:[#allocation2 + $0x30] sm:$0xff]   ;;  %4027 = vmatpush3.bf16.xpose.msra.mxu1 %v1411_v12  ;;  %v5011_v21 = vld [vmem:[#allocation3 + $0x20] sm:$0xff]   ;;  %v1228_v31 = vpop.f32.mrf.mxu0 }
 0x100   : > { %4042 = vmatprep.mubr.msk.bf16.mxu1 %vm1364_vm2, %v4970_v9  ;;  %1851 = vrot.lane.b32.xlu1 %v4980_v13, %s4713_s25  ;;  %v1408_v47 = vsel %vm1364_vm2, %v4980_v13, 0  ;;  %v4994_v16 = vld [vmem:[#allocation3 + $0x38] sm:$0xff]   ;;  %v1229_v44 = vadd.f32 %v4950_v50, %v1228_v31 }
 0x101   : > { %4303 = vmatprep.subr.msk.bf16.mxu1 %vm1364_vm2, %v4980_v13  ;;  %4058 = vmatprep.subr.bf16.mxu0 %v4994_v16  ;;  %v4999_v17 = vld [vmem:[#allocation3 + $0x30] sm:$0xff]   ;;  %v4017_v33 = vpop.f32.mrf.mxu0 }
 0x102   : > { %4059 = vmatpush3.bf16.msra.mxu0 %v4994_v16  ;;  %v1240_v52 = vadd.f32 %v4017_v33, %v4950_v50 }
 0x103   : > { %4060 = vmatprep.subr.bf16.mxu0 %v4999_v17  ;;  %v1231_v36 = vpop.f32.mrf.mxu0 }
 0x104   : > { %v1232_v45 = vadd.f32 %v4950_v50, %v1231_v36  ;;  %v5072_v55 = vpack.c.bf16 %v1240_v52, %v1237_v51 }
 0x105   : > { %v4020_v37 = vpop.f32.mrf.mxu0 }
 0x106   : > { %4061 = vmatpush3.bf16.msra.mxu0 %v4999_v17  ;;  %v5062_v48 = vpack.c.bf16 %v1232_v45, %v1229_v44  ;;  %v1253_v58 = vadd.f32 %v4020_v37, %v4950_v50 }
 0x107   : > { %4029 = vmatpush3.bf16.xpose.msra.mxu1 %v1408_v47  ;;  %4062 = vmatprep.subr.bf16.mxu0 %v5003_v18  ;;  %v1244_v40 = vpop.f32.mrf.mxu0 }
 0x108   : > { %4304 = vmatprep.subr.msk.bf16.mxu1 %vm1364_vm2, %v4992_v15  ;;  %v1245_v53 = vadd.f32 %v4950_v50, %v1244_v40 }
 0x109   : > { %v4021_v41 = vpop.f32.mrf.mxu0 }
 0x10a   : > { %4063 = vmatpush3.bf16.msra.mxu0 %v5003_v18  ;;  %v1256_v59 = vadd.f32 %v4021_v41, %v4950_v50 }
 0x10b   : > { %4064 = vmatprep.subr.bf16.mxu0 %v5011_v21  ;;  %v1247_v43 = vpop.f32.mrf.mxu0 }
 0x10c   : > { %v1248_v30 = vadd.f32 %v4950_v50, %v1247_v43  ;;  %v5084_v62 = vpack.c.bf16 %v1256_v59, %v1253_v58 }
 0x10d   : > { %v4024_v46 = vpop.f32.mrf.mxu0 }
 0x10e   : > { %4065 = vmatpush3.bf16.msra.mxu0 %v5011_v21  ;;  %v5074_v56 = vpack.c.bf16 %v1248_v30, %v1245_v53  ;;  %v1269_v0 = vadd.f32 %v4024_v46, %v4950_v50 }
 0x10f   : > { %4031 = vmatpush3.bf16.xpose.msra.mxu1 %v1405_v19  ;;  %4066 = vmatprep.subr.bf16.mxu0 %v5017_v22  ;;  %v1260_v49 = vpop.f32.mrf.mxu0 }
 0x110   : > { %4305 = vmatprep.subr.msk.bf16.mxu1 %vm1364_vm2, %v5008_v20  ;;  %v1261_v60 = vadd.f32 %v4950_v50, %v1260_v49 }
 0x111   : > { %v4025_v54 = vpop.f32.mrf.mxu0 }
 0x112   : > { %4067 = vmatpush3.bf16.msra.mxu0 %v5017_v22  ;;  %v1272_v1 = vadd.f32 %v4025_v54, %v4950_v50 }
 0x113   : > { %4068 = vmatprep.subr.bf16.mxu0 %v5025_v25  ;;  %v1263_v57 = vpop.f32.mrf.mxu0 }
 0x114   : > { %v1264_v61 = vadd.f32 %v4950_v50, %v1263_v57  ;;  %v5094_v2 = vpack.c.bf16 %v1272_v1, %v1269_v0  ;;  %v1320_v50 = vshrl.u32 %v1319_v5, 7 }
 0x116   : > { %4069 = vmatpush3.bf16.msra.mxu0 %v5025_v25  ;;  %v5086_v63 = vpack.c.bf16 %v1264_v61, %v1261_v60  ;;  %v1321_v8 = vsub.s32 0, %v1320_v50 }
 0x117   : > { %4033 = vmatpush3.bf16.xpose.msra.mxu1 %v1402_v23  ;;  %4070 = vmatprep.subr.bf16.mxu0 %v5031_v27 }
 0x118   : > { %4306 = vmatprep.subr.msk.bf16.mxu1 %vm1364_vm2, %v5022_v24  ;;  %v5106_v12 = vrot.slane %v1317_v11, %v1321_v8 }
 0x11a   : > { %4071 = vmatpush3.bf16.msra.mxu0 %v5031_v27 }
 0x11b   : > { %4072 = vmatprep.subr.bf16.mxu0 %v5039_v32 }
 0x11e   : > { %4073 = vmatpush3.bf16.msra.mxu0 %v5039_v32 }
 0x11f   : > { %4035 = vmatpush3.bf16.xpose.msra.mxu1 %v1399_v28 }
 0x120   : > { %4307 = vmatprep.subr.msk.bf16.mxu1 %vm1364_vm2, %v5036_v29 }
 0x127   : > { %4037 = vmatpush3.bf16.xpose.msra.mxu1 %v1396_v34 }
 0x128   : > { %4308 = vmatprep.subr.msk.bf16.mxu1 %vm1364_vm2, %v5048_v35 }
 0x12f   : > { %4039 = vmatpush3.bf16.xpose.msra.mxu1 %v1393_v38 }
 0x130   : > { %4309 = vmatprep.subr.msk.bf16.mxu1 %vm1364_vm2, %v5054_v39 }
 0x137   : > { %4041 = vmatpush3.bf16.xpose.msra.mxu1 %v1390_v42 }
 0x13e   : > { %4043 = vmatmul.mubr.msk.bf16.vlgmr.msra.gmra.mxu1 %vm1364_vm2, %v4963_v3 }
 0x13f   : > { %4046 = vmatprep.mubr.msk.bf16.mxu1 %vm1364_vm2, %v5062_v48 }
 0x146   : > { %4047 = vmatmul.mubr.msk.bf16.gmra.mxu1 %vm1364_vm2, %v5072_v55 }
 0x147   : > { %4050 = vmatprep.mubr.msk.bf16.mxu1 %vm1364_vm2, %v5074_v56 }
 0x14e   : > { %4051 = vmatmul.mubr.msk.bf16.gmra.mxu1 %vm1364_vm2, %v5084_v62 }
 0x14f   : > { %4054 = vmatprep.mubr.msk.bf16.mxu1 %vm1364_vm2, %v5086_v63 }
 0x156   : > { %4055 = vmatmul.mubr.msk.bf16.gmra.mxu1 %vm1364_vm2, %v5094_v2 }
 0x170   : > { %v5098_v4 = vpop.permute.xlu0 %1853 }
 0x171   : > { %4310 = vmatprep.subr.msk.bf16.mxu0 %vm1364_vm2, %v5098_v4 }
 0x172   : > { %v5164_v5 = vpop.permute.xlu1 %1851 }
 0x1fe   : > { %v4044_v14 = vpop.f32.mrf.mxu1 }
 0x1ff   : > { %v1456_v47 = vadd.f32 %v4044_v14, %v5106_v12 }
 0x200   : > { %v1447_v19 = vpop.f32.mrf.mxu1 }
 0x201   : > { %v1448_v23 = vadd.f32 %v1447_v19, %v5106_v12  ;;  %1514 = vmax.xlane.f32.xlu1 %v1456_v47 }
 0x202   : > { %v4045_v26 = vpop.f32.mrf.mxu1 }
 0x203   : > { %v1459_v28 = vadd.f32 %v4045_v26, %v5106_v12  ;;  %1510 = vmax.xlane.f32.xlu0 %v1448_v23 }
 0x204   : > { %v1450_v31 = vpop.f32.mrf.mxu1 }
 0x205   : > { %v1451_v33 = vadd.f32 %v1450_v31, %v5106_v12  ;;  %1516 = vmax.xlane.f32.xlu1 %v1459_v28 }
 0x206   : > { %v4048_v34 = vpop.f32.mrf.mxu1 }
 0x207   : > { %v5113_v36 = vadd.f32 %v4048_v34, %v5106_v12  ;;  %1512 = vmax.xlane.f32.xlu0 %v1451_v33 }
 0x208   : > { %v1463_v37 = vpop.f32.mrf.mxu1 }
 0x209   : > { %v5120_v42 = vadd.f32 %v1463_v37, %v5106_v12 }
 0x20a   : > { %v4049_v38 = vpop.f32.mrf.mxu1 }
 0x20b   : > { %v5116_v40 = vadd.f32 %v4049_v38, %v5106_v12  ;;  %1522 = vmax.xlane.f32.xlu0 %v5113_v36 }
 0x20c   : > { %v1466_v41 = vpop.f32.mrf.mxu1 }
 0x20d   : > { %1524 = vmax.xlane.f32.xlu1 %v5116_v40  ;;  %v5124_v44 = vadd.f32 %v1466_v41, %v5106_v12 }
 0x20e   : > { %v4052_v43 = vpop.f32.mrf.mxu1 }
 0x20f   : > { %v5127_v45 = vadd.f32 %v4052_v43, %v5106_v12  ;;  %1518 = vmax.xlane.f32.xlu0 %v5120_v42 }
 0x210   : > { %v1479_v46 = vpop.f32.mrf.mxu1 }
 0x211   : > { %1520 = vmax.xlane.f32.xlu1 %v5124_v44  ;;  %v5136_v53 = vadd.f32 %v1479_v46, %v5106_v12 }
 0x212   : > { %v4053_v49 = vpop.f32.mrf.mxu1 }
 0x213   : > { %v5132_v51 = vadd.f32 %v4053_v49, %v5106_v12  ;;  %1530 = vmax.xlane.f32.xlu0 %v5127_v45 }
 0x214   : > { %v1482_v52 = vpop.f32.mrf.mxu1 }
 0x215   : > { %1532 = vmax.xlane.f32.xlu1 %v5132_v51  ;;  %v5140_v54 = vadd.f32 %v1482_v52, %v5106_v12 }
 0x216   : > { %v4056_v30 = vpop.f32.mrf.mxu1 }
 0x217   : > { %1526 = vmax.xlane.f32.xlu0 %v5136_v53  ;;  %v5144_v57 = vadd.f32 %v4056_v30, %v5106_v12 }
 0x218   : > { %v1495_v58 = vpop.f32.mrf.mxu1 }
 0x219   : > { %1528 = vmax.xlane.f32.xlu1 %v5140_v54  ;;  %v5149_v59 = vadd.f32 %v1495_v58, %v5106_v12 }
 0x21a   : > { %v4057_v60 = vpop.f32.mrf.mxu1 }
 0x21b   : > { %1538 = vmax.xlane.f32.xlu0 %v5144_v57  ;;  %v5157_v61 = vadd.f32 %v4057_v60, %v5106_v12 }
 0x21c   : > { %v1498_v0 = vpop.f32.mrf.mxu1 }
 0x21d   : > { %v5161_v1 = vadd.f32 %v1498_v0, %v5106_v12 }
 0x21f   : > { %1534 = vmax.xlane.f32.xlu0 %v5149_v59 }
 0x22a   : > { %1847 = vrot.lane.b32.xlu1 %v5008_v20, %s4713_s25 }
 0x235   : > { %1849 = vrot.lane.b32.xlu0 %v4992_v15, %s4713_s25 }
 0x24e   : > { %1540 = vmax.xlane.f32.xlu1 %v5157_v61 }
 0x252   : > { %1536 = vmax.xlane.f32.xlu1 %v5161_v1 }
 0x28a   : > { %v1515_v6 = vpop.xlane.xlu1 %1514 }
 0x28b   : > { %v1544_v50 = vsub.f32 %v1456_v47, %v1515_v6 }
 0x28c   : > { %v1511_v8 = vpop.xlane.xlu0 %1510 }
 0x28d   : > { %v1562_v10 = vmul.f32 1.442695, %v1544_v50  ;;  %v1542_v11 = vsub.f32 %v1448_v23, %v1511_v8 }
 0x28e   : > { %v1517_v14 = vpop.xlane.xlu1 %1516 }
 0x28f   : > { %4413 = vpow2.f32 %v1562_v10  ;;  %v1558_v19 = vmul.f32 1.442695, %v1542_v11  ;;  %v1545_v26 = vsub.f32 %v1459_v28, %v1517_v14 }
 0x290   : > { %v1513_v31 = vpop.xlane.xlu0 %1512 }
 0x291   : > { %v1564_v34 = vmul.f32 1.442695, %v1545_v26  ;;  %v1543_v37 = vsub.f32 %v1451_v33, %v1513_v31  ;;  %4415 = vpow2.f32 %v1558_v19 }
 0x293   : > { %4417 = vpow2.f32 %v1564_v34  ;;  %v1560_v38 = vmul.f32 1.442695, %v1543_v37 }
 0x294   : > { %v1523_v28 = vpop.xlane.xlu0 %1522 }
 0x295   : > { %4419 = vpow2.f32 %v1560_v38  ;;  %v1548_v30 = vsub.f32 %v5113_v36, %v1523_v28 }
 0x296   : > { %v1525_v49 = vpop.xlane.xlu1 %1524 }
 0x297   : > { %v1570_v6 = vmul.f32 1.442695, %v1548_v30  ;;  %v1549_v8 = vsub.f32 %v5116_v40, %v1525_v49 }
 0x298   : > { %v1519_v33 = vpop.xlane.xlu0 %1518 }
 0x299   : > { %v1546_v60 = vsub.f32 %v5120_v42, %v1519_v33  ;;  %4421 = vpow2.f32 %v1570_v6  ;;  %v1572_v31 = vmul.f32 1.442695, %v1549_v8 }
 0x29a   : > { %v1521_v58 = vpop.xlane.xlu1 %1520 }
 0x29b   : > { %v1547_v50 = vsub.f32 %v5124_v44, %v1521_v58  ;;  %v1566_v10 = vmul.f32 1.442695, %v1546_v60 }
 0x29c   : > { %v5166_v41 = vpop.eup %4413  ;;  %v1531_v46 = vpop.xlane.xlu0 %1530 }
 0x29d   : > { %1594 = vadd.xlane.f32.xlu0 %v5166_v41  ;;  %v1568_v14 = vmul.f32 1.442695, %v1547_v50  ;;  %4423 = vpow2.f32 %v1566_v10  ;;  %v1552_v36 = vsub.f32 %v5127_v45, %v1531_v46 }
 0x29e   : > { %v5169_v43 = vpop.eup %4415  ;;  %v1533_v11 = vpop.xlane.xlu1 %1532 }
 0x29f   : > { %4425 = vpow2.f32 %v1568_v14  ;;  %v1578_v44 = vmul.f32 1.442695, %v1552_v36  ;;  %v1553_v28 = vsub.f32 %v5132_v51, %v1533_v11 }
 0x2a0   : > { %v5171_v47 = vpop.eup %4417  ;;  %v1527_v52 = vpop.xlane.xlu0 %1526  ;;  %4427 = vpow2.f32 %v1572_v31 }
 0x2a1   : > { %1596 = vadd.xlane.f32.xlu1 %v5171_v47  ;;  %1590 = vadd.xlane.f32.xlu0 %v5169_v43  ;;  %v1550_v40 = vsub.f32 %v5136_v53, %v1527_v52  ;;  %v1580_v45 = vmul.f32 1.442695, %v1553_v28 }
 0x2a2   : > { %v5175_v23 = vpop.eup %4419  ;;  %v1529_v37 = vpop.xlane.xlu1 %1528 }
 0x2a3   : > { %v1574_v33 = vmul.f32 1.442695, %v1550_v40  ;;  %v1551_v53 = vsub.f32 %v5140_v54, %v1529_v37 }
 0x2a4   : > { %v1539_v0 = vpop.xlane.xlu0 %1538 }
 0x2a5   : > { %1592 = vadd.xlane.f32.xlu1 %v5175_v23  ;;  %v1556_v19 = vsub.f32 %v5144_v57, %v1539_v0  ;;  %v1576_v0 = vmul.f32 1.442695, %v1551_v53 }
 0x2a6   : > { %v5191_v57 = vpop.permute.xlu1 %1847  ;;  %v5193_v49 = vpop.eup %4421 }
 0x2a7   : > { %v1586_v34 = vmul.f32 1.442695, %v1556_v19 }
 0x2a8   : > { %v1535_v26 = vpop.xlane.xlu0 %1534 }
 0x2a9   : > { %v1554_v42 = vsub.f32 %v5149_v59, %v1535_v26  ;;  %4429 = vpow2.f32 %v1586_v34 }
 0x2aa   : > { %4431 = vpow2.f32 %v1578_v44  ;;  %v5196_v46 = vpop.eup %4423  ;;  %v1901_v44 = vsel %vm1364_vm2, %v5098_v4, 0 }
 0x2ab   : > { %v1582_v38 = vmul.f32 1.442695, %v1554_v42 }
 0x2ac   : > { %v5200_v30 = vpop.eup %4425 }
 0x2ad   : > { %4433 = vpow2.f32 %v1582_v38  ;;  %v5204_v60 = vpop.eup %4427 }
 0x2ae   : > { %4435 = vpow2.f32 %v1574_v33 }
 0x2af   : > { %4437 = vpow2.f32 %v1580_v45 }
 0x2b6   : > { %1843 = vrot.lane.b32.xlu1 %v5036_v29, %s4713_s25  ;;  %v5207_v50 = vpop.eup %4429 }
 0x2b7   : > { %1845 = vrot.lane.b32.xlu0 %v5022_v24, %s4713_s25  ;;  %v5211_v54 = vpop.eup %4431 }
 0x2ba   : > { %v5213_v8 = vpop.eup %4433 }
 0x2bb   : > { %v5217_v10 = vpop.eup %4435 }
 0x2d6   : > { %1602 = vadd.xlane.f32.xlu0 %v5193_v49 }
 0x2d7   : > { %v1541_v59 = vpop.xlane.xlu1 %1540 }
 0x2d8   : > { %v1557_v52 = vsub.f32 %v5157_v61, %v1541_v59 }
 0x2da   : > { %v1588_v51 = vmul.f32 1.442695, %v1557_v52  ;;  %1600 = vadd.xlane.f32.xlu0 %v5200_v30  ;;  %1598 = vadd.xlane.f32.xlu1 %v5196_v46 }
 0x2db   : > { %v1537_v58 = vpop.xlane.xlu1 %1536 }
 0x2dc   : > { %4439 = vpow2.f32 %v1588_v51  ;;  %v1555_v6 = vsub.f32 %v5161_v1, %v1537_v58  ;;  %v5220_v1 = vpop.eup %4437 }
 0x2dd   : > { %4441 = vpow2.f32 %v1576_v0 }
 0x2de   : > { %1604 = vadd.xlane.f32.xlu1 %v5204_v60  ;;  %1618 = vadd.xlane.f32.xlu0 %v5207_v50  ;;  %v1584_v61 = vmul.f32 1.442695, %v1555_v6 }
 0x2e0   : > { %4443 = vpow2.f32 %v1584_v61 }
 0x2e2   : > { %1610 = vadd.xlane.f32.xlu1 %v5211_v54  ;;  %1614 = vadd.xlane.f32.xlu0 %v5213_v8 }
 0x2e6   : > { %1606 = vadd.xlane.f32.xlu1 %v5217_v10 }
 0x2e9   : > { %v5222_v11 = vpop.eup %4439 }
 0x2ea   : > { %1612 = vadd.xlane.f32.xlu1 %v5220_v1  ;;  %1620 = vadd.xlane.f32.xlu0 %v5222_v11  ;;  %v5226_v14 = vpop.eup %4441 }
 0x2ed   : > { %v5229_v19 = vpop.eup %4443 }
 0x2ee   : > { %1608 = vadd.xlane.f32.xlu1 %v5226_v14 }
 0x2f2   : > { %1616 = vadd.xlane.f32.xlu1 %v5229_v19 }
 0x300   : > { %1841 = vrot.lane.b32.xlu0 %v5048_v35, %s4713_s25  ;;  %v1850_v35 = vpop.permute.xlu0 %1849 }
 0x303   : > { %1839 = vrot.lane.b32.xlu1 %v5054_v39, %s4713_s25 }
 0x304   : > { %1823 = vrot.lane.b32.xlu0 %v4970_v9, %s4713_s25 }
 0x307   : > { %1825 = vrot.lane.b32.xlu1 %v4963_v3, %s4713_s25 }
 0x308   : > { %1827 = vrot.lane.b32.xlu0 %v5062_v48, %s4713_s25 }
 0x30b   : > { %1829 = vrot.lane.b32.xlu1 %v5072_v55, %s4713_s25 }
 0x30c   : > { %1831 = vrot.lane.b32.xlu0 %v5074_v56, %s4713_s25 }
 0x30f   : > { %1833 = vrot.lane.b32.xlu1 %v5084_v62, %s4713_s25 }
 0x310   : > { %1835 = vrot.lane.b32.xlu0 %v5086_v63, %s4713_s25 }
 0x313   : > { %1837 = vrot.lane.b32.xlu1 %v5094_v2, %s4713_s25 }
 0x314   : > { %2166 = vrot.lane.b32.xlu0 %v4994_v16, %s4713_s25 }
 0x317   : > { %2164 = vrot.lane.b32.xlu1 %v4999_v17, %s4713_s25 }
 0x318   : > { %2162 = vrot.lane.b32.xlu0 %v5003_v18, %s4713_s25 }
 0x31b   : > { %2156 = vrot.lane.b32.xlu1 %v5025_v25, %s4713_s25 }
 0x31c   : > { %2160 = vrot.lane.b32.xlu0 %v5011_v21, %s4713_s25 }
 0x31f   : > { %2152 = vrot.lane.b32.xlu1 %v5039_v32, %s4713_s25 }
 0x320   : > { %2158 = vrot.lane.b32.xlu0 %v5017_v22, %s4713_s25 }
 0x326   : > { %v1595_v16 = vpop.xlane.xlu0 %1594 }
 0x32a   : > { %v1597_v39 = vpop.xlane.xlu1 %1596  ;;  %v1591_v26 = vpop.xlane.xlu0 %1590 }
 0x32b   : > { %4445 = vrcp.f32 %v1597_v39 }
 0x32c   : > { %4447 = vrcp.f32 %v1591_v26 }
 0x32d   : > { %4449 = vrcp.f32 %v1595_v16 }
 0x32e   : > { %v1593_v17 = vpop.xlane.xlu1 %1592  ;;  %v1846_v4 = vpop.permute.xlu0 %1845 }
 0x32f   : > { %4451 = vrcp.f32 %v1593_v17 }
 0x338   : > { %v4446_v18 = vpop.eup %4445 }
 0x339   : > { %v4448_v25 = vpop.eup %4447  ;;  %v1641_v21 = vmul.f32 %v4446_v18, %v5171_v47  ;;  %v1898_v47 = vsel %vm1364_vm2, %v5164_v5, 0 }
 0x33a   : > { %v4450_v31 = vpop.eup %4449  ;;  %v1638_v32 = vmul.f32 %v4448_v25, %v5169_v43  ;;  %v1895_v43 = vsel %vm1364_vm2, %v1850_v35, 0 }
 0x33b   : > { %v1640_v22 = vmul.f32 %v4450_v31, %v5166_v41  ;;  %v1892_v41 = vsel %vm1364_vm2, %v5191_v57, 0 }
 0x33c   : > { %v4452_v36 = vpop.eup %4451 }
 0x33d   : > { %v1639_v34 = vmul.f32 %v4452_v36, %v5175_v23  ;;  %v1655_v37 = vpack.c.bf16 %v1641_v21, %v1640_v22  ;;  %v1844_v23 = vpop.permute.xlu1 %1843 }
 0x33f   : > { %v1654_v42 = vpack.c.bf16 %v1639_v34, %v1638_v32 }
 0x341   : > { %4074 = vmatprep.mubr.bf16.mxu0 %v1654_v42 }
 0x342   : > { %4075 = vmatmul.mubr.bf16.vlgmr.msra.gmra.mxu0 %v1655_v37 }
 0x343   : > { %4091 = vmatpush3.bf16.xpose.msra.mxu0 %v1901_v44 }
 0x344   : > { %4311 = vmatprep.subr.msk.bf16.mxu0 %vm1364_vm2, %v5164_v5  ;;  %v1889_v5 = vsel %vm1364_vm2, %v1846_v4, 0 }
 0x34b   : > { %4093 = vmatpush3.bf16.xpose.msra.mxu0 %v1898_v47 }
 0x34c   : > { %4312 = vmatprep.subr.msk.bf16.mxu0 %vm1364_vm2, %v1850_v35 }
 0x353   : > { %4095 = vmatpush3.bf16.xpose.msra.mxu0 %v1895_v43 }
 0x354   : > { %4313 = vmatprep.subr.msk.bf16.mxu0 %vm1364_vm2, %v5191_v57  ;;  %v1886_v57 = vsel %vm1364_vm2, %v1844_v23, 0 }
 0x35b   : > { %4097 = vmatpush3.bf16.xpose.msra.mxu0 %v1892_v41 }
 0x35c   : > { %4314 = vmatprep.subr.msk.bf16.mxu0 %vm1364_vm2, %v1846_v4 }
 0x35f   : > { %v1603_v40 = vpop.xlane.xlu0 %1602 }
 0x363   : > { %4099 = vmatpush3.bf16.xpose.msra.mxu0 %v1889_v5  ;;  %v1599_v38 = vpop.xlane.xlu1 %1598  ;;  %v1601_v28 = vpop.xlane.xlu0 %1600 }
 0x364   : > { %4453 = vrcp.f32 %v1599_v38  ;;  %4315 = vmatprep.subr.msk.bf16.mxu0 %vm1364_vm2, %v1844_v23 }
 0x365   : > { %4455 = vrcp.f32 %v1601_v28 }
 0x366   : > { %4457 = vrcp.f32 %v1603_v40 }
 0x367   : > { %v1605_v33 = vpop.xlane.xlu1 %1604  ;;  %v1619_v45 = vpop.xlane.xlu0 %1618 }
 0x368   : > { %4459 = vrcp.f32 %v1605_v33 }
 0x36b   : > { %4101 = vmatpush3.bf16.xpose.msra.mxu0 %v1886_v57  ;;  %v1611_v59 = vpop.xlane.xlu1 %1610  ;;  %v1615_v53 = vpop.xlane.xlu0 %1614 }
 0x36f   : > { %v1607_v52 = vpop.xlane.xlu1 %1606 }
 0x371   : > { %v4454_v51 = vpop.eup %4453 }
 0x372   : > { %v4456_v58 = vpop.eup %4455  ;;  %v1642_v0 = vmul.f32 %v4454_v51, %v5196_v46 }
 0x373   : > { %v4458_v6 = vpop.eup %4457  ;;  %v1613_v61 = vpop.xlane.xlu1 %1612  ;;  %v1643_v16 = vmul.f32 %v4456_v58, %v5200_v30 }
 0x374   : > { %v1621_v35 = vpop.xlane.xlu0 %1620  ;;  %4461 = vrcp.f32 %v1613_v61  ;;  %v1644_v17 = vmul.f32 %v4458_v6, %v5193_v49 }
 0x375   : > { %v4460_v39 = vpop.eup %4459  ;;  %v1656_v26 = vpack.c.bf16 %v1643_v16, %v1642_v0  ;;  %4463 = vrcp.f32 %v1607_v52 }
 0x376   : > { %v1645_v18 = vmul.f32 %v4460_v39, %v5204_v60  ;;  %4465 = vrcp.f32 %v1611_v59 }
 0x377   : > { %4078 = vmatprep.mubr.bf16.mxu0 %v1656_v26  ;;  %v1609_v25 = vpop.xlane.xlu1 %1608 }
 0x378   : > { %v1842_v31 = vpop.permute.xlu0 %1841  ;;  %4467 = vrcp.f32 %v1609_v25  ;;  %v1657_v36 = vpack.c.bf16 %v1645_v18, %v1644_v17 }
 0x379   : > { %4316 = vmatprep.subr.msk.bf16.mxu0 %vm1364_vm2, %v1842_v31  ;;  %v1883_v46 = vsel %vm1364_vm2, %v1842_v31, 0  ;;  %4469 = vrcp.f32 %v1615_v53 }
 0x37a   : > { %4103 = vmatpush3.bf16.xpose.msra.mxu0 %v1883_v46 }
 0x37b   : > { %4079 = vmatmul.mubr.bf16.gmra.mxu0 %v1657_v36  ;;  %v1617_v30 = vpop.xlane.xlu1 %1616 }
 0x37c   : > { %v1824_v21 = vpop.permute.xlu0 %1823  ;;  %4471 = vrcp.f32 %v1617_v30 }
 0x37d   : > { %4473 = vrcp.f32 %v1621_v35 }
 0x37e   : > { %4475 = vrcp.f32 %v1619_v45 }
 0x37f   : > { %v1840_v49 = vpop.permute.xlu1 %1839 }
 0x380   : > { %v1828_v60 = vpop.permute.xlu0 %1827  ;;  %4317 = vmatprep.subr.msk.bf16.mxu0 %vm1364_vm2, %v1840_v49  ;;  %v1880_v32 = vsel %vm1364_vm2, %v1840_v49, 0 }
 0x381   : > { %v4462_v34 = vpop.eup %4461 }
 0x382   : > { %4105 = vmatpush3.bf16.xpose.msra.mxu0 %v1880_v32  ;;  %v4464_v22 = vpop.eup %4463  ;;  %v1649_v43 = vmul.f32 %v4462_v34, %v5220_v1 }
 0x383   : > { %v1826_v42 = vpop.permute.xlu1 %1825  ;;  %v4466_v44 = vpop.eup %4465  ;;  %v1646_v41 = vmul.f32 %v4464_v22, %v5217_v10 }
 0x384   : > { %v1832_v37 = vpop.permute.xlu0 %1831  ;;  %v1648_v38 = vmul.f32 %v4466_v44, %v5211_v54 }
 0x385   : > { %v4468_v47 = vpop.eup %4467 }
 0x386   : > { %v1647_v4 = vmul.f32 %v4468_v47, %v5226_v14  ;;  %v4470_v23 = vpop.eup %4469  ;;  %v1659_v45 = vpack.c.bf16 %v1649_v43, %v1648_v38 }
 0x387   : > { %v1830_v40 = vpop.permute.xlu1 %1829  ;;  %v1650_v59 = vmul.f32 %v4470_v23, %v5213_v8 }
 0x388   : > { %v1836_v5 = vpop.permute.xlu0 %1835  ;;  %v1658_v28 = vpack.c.bf16 %v1647_v4, %v1646_v41 }
 0x389   : > { %v4472_v33 = vpop.eup %4471 }
 0x38a   : > { %v4474_v57 = vpop.eup %4473  ;;  %4082 = vmatprep.mubr.bf16.mxu0 %v1658_v28  ;;  %v1651_v53 = vmul.f32 %v4472_v33, %v5229_v19 }
 0x38b   : > { %v1834_v52 = vpop.permute.xlu1 %1833  ;;  %4083 = vmatmul.mubr.bf16.gmra.mxu0 %v1659_v45  ;;  %v4476_v10 = vpop.eup %4475  ;;  %v1653_v51 = vmul.f32 %v4474_v57, %v5222_v11 }
 0x38c   : > { %v2167_v1 = vpop.permute.xlu0 %2166  ;;  %v1660_v14 = vpack.c.bf16 %v1651_v53, %v1650_v59  ;;  %v1652_v58 = vmul.f32 %v4476_v10, %v5207_v50 }
 0x38d   : > { %4122 = vmatprep.subr.bf16.mxu1 %v2167_v1 }
 0x38e   : > { %4123 = vmatpush3.bf16.msra.mxu1 %v2167_v1  ;;  %4086 = vmatprep.mubr.bf16.mxu0 %v1660_v14  ;;  %v1661_v6 = vpack.c.bf16 %v1653_v51, %v1652_v58 }
 0x38f   : > { %v1838_v54 = vpop.permute.xlu1 %1837 }
 0x390   : > { %v2163_v0 = vpop.permute.xlu0 %2162 }
 0x393   : > { %v2165_v61 = vpop.permute.xlu1 %2164  ;;  %4087 = vmatmul.mubr.bf16.gmra.mxu0 %v1661_v6 }
 0x394   : > { %4106 = vmatprep.mubr.msk.bf16.mxu0 %vm1364_vm2, %v1824_v21  ;;  %4124 = vmatprep.subr.bf16.mxu1 %v2165_v61  ;;  %v2161_v8 = vpop.permute.xlu0 %2160 }
 0x395   : > { %4125 = vmatpush3.bf16.msra.mxu1 %v2165_v61 }
 0x396   : > { %4126 = vmatprep.subr.bf16.mxu1 %v2163_v0 }
 0x397   : > { %v2157_v50 = vpop.permute.xlu1 %2156 }
 0x398   : > { %v2159_v11 = vpop.permute.xlu0 %2158 }
 0x399   : > { %4127 = vmatpush3.bf16.msra.mxu1 %v2163_v0 }
 0x39a   : > { %4128 = vmatprep.subr.bf16.mxu1 %v2161_v8 }
 0x39b   : > { %4107 = vmatmul.mubr.msk.bf16.vlgmr.msra.gmra.mxu0 %vm1364_vm2, %v1826_v42 }
 0x39c   : > { %4110 = vmatprep.mubr.msk.bf16.mxu0 %vm1364_vm2, %v1828_v60 }
 0x39d   : > { %4129 = vmatpush3.bf16.msra.mxu1 %v2161_v8 }
 0x39e   : > { %4130 = vmatprep.subr.bf16.mxu1 %v2159_v11 }
 0x3a1   : > { %4131 = vmatpush3.bf16.msra.mxu1 %v2159_v11 }
 0x3a2   : > { %4132 = vmatprep.subr.bf16.mxu1 %v2157_v50 }
 0x3a3   : > { %4111 = vmatmul.mubr.msk.bf16.gmra.mxu0 %vm1364_vm2, %v1830_v40 }
 0x3a4   : > { %4114 = vmatprep.mubr.msk.bf16.mxu0 %vm1364_vm2, %v1832_v37 }
 0x3a5   : > { %4133 = vmatpush3.bf16.msra.mxu1 %v2157_v50 }
 0x3ab   : > { %4115 = vmatmul.mubr.msk.bf16.gmra.mxu0 %vm1364_vm2, %v1834_v52 }
 0x3ac   : > { %4118 = vmatprep.mubr.msk.bf16.mxu0 %vm1364_vm2, %v1836_v5 }
 0x3b3   : > { %4119 = vmatmul.mubr.msk.bf16.gmra.mxu0 %vm1364_vm2, %v1838_v54 }
 0x402   : > { %v5310_v19 = vpop.f32.mrf.mxu0 }
 0x403   : > { %6222 = vst [vmem:[#allocation4_spill] sm:$0xff] %v5310_v19 }
 0x404   : > { %v5312_v35 = vpop.f32.mrf.mxu0 }
 0x405   : > { %6223 = vst [vmem:[#allocation5_spill] sm:$0xff] %v5312_v35 }
 0x406   : > { %v5314_v16 = vpop.f32.mrf.mxu0 }
 0x407   : > { %6224 = vst [vmem:[#allocation6_spill] sm:$0xff] %v5314_v16 }
 0x408   : > { %v5318_v26 = vpop.f32.mrf.mxu0 }
 0x409   : > { %6225 = vst [vmem:[#allocation7_spill] sm:$0xff] %v5318_v26 }
 0x43b   : > { %v5322_v18 = vpop.f32.mrf.mxu0 }
 0x43c   : > { %6226 = vst [vmem:[#allocation8_spill] sm:$0xff] %v5322_v18 }
 0x43d   : > { %v5324_v25 = vpop.f32.mrf.mxu0 }
 0x43e   : > { %6227 = vst [vmem:[#allocation9_spill] sm:$0xff] %v5324_v25 }
 0x43f   : > { %v5326_v31 = vpop.f32.mrf.mxu0 }
 0x440   : > { %6228 = vst [vmem:[#allocation10_spill] sm:$0xff] %v5326_v31 }
 0x441   : > { %v5330_v36 = vpop.f32.mrf.mxu0 }
 0x442   : > { %6229 = vst [vmem:[#allocation11_spill] sm:$0xff] %v5330_v36 }
 0x44b   : > { %v5334_v21 = vpop.f32.mrf.mxu0 }
 0x44c   : > { %6230 = vst [vmem:[#allocation12_spill] sm:$0xff] %v5334_v21 }
 0x44d   : > { %v5336_v49 = vpop.f32.mrf.mxu0 }
 0x44e   : > { %6231 = vst [vmem:[#allocation13_spill] sm:$0xff] %v5336_v49 }
 0x44f   : > { %v5338_v60 = vpop.f32.mrf.mxu0 }
 0x450   : > { %6232 = vst [vmem:[#allocation14_spill] sm:$0xff] %v5338_v60 }
 0x451   : > { %v5342_v34 = vpop.f32.mrf.mxu0 }
 0x452   : > { %6233 = vst [vmem:[#allocation15_spill] sm:$0xff] %v5342_v34 }
 0x453   : > { %v5346_v42 = vpop.f32.mrf.mxu0 }
 0x454   : > { %6234 = vst [vmem:[#allocation16_spill] sm:$0xff] %v5346_v42 }
 0x455   : > { %v5348_v37 = vpop.f32.mrf.mxu0 }
 0x456   : > { %6235 = vst [vmem:[#allocation17_spill] sm:$0xff] %v5348_v37 }
 0x457   : > { %v5350_v44 = vpop.f32.mrf.mxu0 }
 0x458   : > { %6236 = vst [vmem:[#allocation18_spill] sm:$0xff] %v5350_v44  ;;  %v4682_v44 = vld [vmem:[#allocation2 + $0x28] sm:$0xff]  }
 0x459   : > { %v5354_v43 = vpop.f32.mrf.mxu0 }
 0x45a   : > { %6237 = vst [vmem:[#allocation19_spill] sm:$0xff] %v5354_v43 }
 0x45b   : > { %v4108_v4 = vpop.f32.mrf.mxu0 }
 0x45c   : > { %v1946_v23 = vadd.f32 %v4108_v4, %v5106_v12 }
 0x45d   : > { %v1937_v40 = vpop.f32.mrf.mxu0 }
 0x45e   : > { %2004 = vmax.xlane.f32.xlu0 %v1946_v23  ;;  %v1938_v38 = vadd.f32 %v1937_v40, %v5106_v12 }
 0x45f   : > { %v4109_v5 = vpop.f32.mrf.mxu0 }
 0x460   : > { %v1949_v57 = vadd.f32 %v4109_v5, %v5106_v12 }
 0x461   : > { %v1940_v28 = vpop.f32.mrf.mxu0 }
 0x462   : > { %v5361_v33 = vadd.f32 %v1940_v28, %v5106_v12  ;;  %2000 = vmax.xlane.f32.xlu0 %v1938_v38 }
 0x463   : > { %v4112_v45 = vpop.f32.mrf.mxu0 }
 0x464   : > { %2002 = vmax.xlane.f32.xlu1 %v5361_v33  ;;  %v1962_v61 = vadd.f32 %v4112_v45, %v5106_v12 }
 0x465   : > { %v1953_v59 = vpop.f32.mrf.mxu0 }
 0x466   : > { %2006 = vmax.xlane.f32.xlu0 %v1949_v57  ;;  %v5389_v8 = vadd.f32 %v1953_v59, %v5106_v12 }
 0x467   : > { %v4113_v53 = vpop.f32.mrf.mxu0 }
 0x468   : > { %v5366_v52 = vadd.f32 %v4113_v53, %v5106_v12 }
 0x469   : > { %v1956_v1 = vpop.f32.mrf.mxu0 }
 0x46a   : > { %2014 = vmax.xlane.f32.xlu1 %v5366_v52  ;;  %v5370_v14 = vadd.f32 %v1956_v1, %v5106_v12  ;;  %v2153_v1 = vpop.permute.xlu1 %2152 }
 0x46b   : > { %v4116_v10 = vpop.f32.mrf.mxu0 }
 0x46c   : > { %v5393_v11 = vadd.f32 %v4116_v10, %v5106_v12 }
 0x46d   : > { %v1969_v51 = vpop.f32.mrf.mxu0 }
 0x46e   : > { %2010 = vmax.xlane.f32.xlu1 %v5370_v14 }
 0x46f   : > { %v4117_v54 = vpop.f32.mrf.mxu0 }
 0x470   : > { %v5374_v58 = vadd.f32 %v4117_v54, %v5106_v12 }
 0x471   : > { %v1972_v0 = vpop.f32.mrf.mxu0 }
 0x472   : > { %2022 = vmax.xlane.f32.xlu1 %v5374_v58  ;;  %v5378_v6 = vadd.f32 %v1972_v0, %v5106_v12 }
 0x473   : > { %v4120_v50 = vpop.f32.mrf.mxu0 }
 0x476   : > { %2018 = vmax.xlane.f32.xlu1 %v5378_v6 }
 0x47c   : > { %2154 = vrot.lane.b32.xlu0 %v5031_v27, %s4713_s25  ;;  %v5397_v27 = vadd.f32 %v1969_v51, %v5106_v12 }
 0x487   : > { %2309 = vrot.lane.b32.xlu1 %v4980_v13, %s4715_s30  ;;  %v1985_v13 = vpop.f32.mrf.mxu0 }
 0x488   : > { %v5405_v40 = vadd.f32 %v1985_v13, %v5106_v12 }
 0x489   : > { %v4121_v4 = vpop.f32.mrf.mxu0 }
 0x48a   : > { %v5408_v5 = vadd.f32 %v4121_v4, %v5106_v12 }
 0x48b   : > { %2305 = vrot.lane.b32.xlu1 %v5008_v20, %s4715_s30  ;;  %v5401_v20 = vadd.f32 %v4120_v50, %v5106_v12  ;;  %v1988_v28 = vpop.f32.mrf.mxu0 }
 0x48c   : > { %v5413_v45 = vadd.f32 %v1988_v28, %v5106_v12 }
 0x49b   : > { %2012 = vmax.xlane.f32.xlu0 %v1962_v61 }
 0x49f   : > { %2008 = vmax.xlane.f32.xlu0 %v5389_v8 }
 0x4a3   : > { %2020 = vmax.xlane.f32.xlu0 %v5393_v11 }
 0x4a7   : > { %2016 = vmax.xlane.f32.xlu0 %v5397_v27 }
 0x4ab   : > { %2028 = vmax.xlane.f32.xlu0 %v5401_v20 }
 0x4af   : > { %2030 = vmax.xlane.f32.xlu1 %v5408_v5  ;;  %2024 = vmax.xlane.f32.xlu0 %v5405_v40 }
 0x4b3   : > { %2026 = vmax.xlane.f32.xlu1 %v5413_v45 }
 0x4c5   : > { %2311 = vrot.lane.b32.xlu0 %v4968_v7, %s4715_s30 }
 0x4c9   : > { %2307 = vrot.lane.b32.xlu0 %v4992_v15, %s4715_s30 }
 0x4cd   : > { %2303 = vrot.lane.b32.xlu0 %v5022_v24, %s4715_s30 }
 0x4e7   : > { %v2005_v59 = vpop.xlane.xlu0 %2004 }
 0x4e8   : > { %v2034_v53 = vsub.f32 %v1946_v23, %v2005_v59 }
 0x4ea   : > { %v2052_v10 = vmul.f32 1.442695, %v2034_v53 }
 0x4eb   : > { %v2001_v51 = vpop.xlane.xlu0 %2000 }
 0x4ec   : > { %4477 = vpow2.f32 %v2052_v10  ;;  %v2032_v54 = vsub.f32 %v1938_v38, %v2001_v51 }
 0x4ed   : > { %v2003_v0 = vpop.xlane.xlu1 %2002 }
 0x4ee   : > { %v2048_v50 = vmul.f32 1.442695, %v2032_v54  ;;  %v2033_v4 = vsub.f32 %v5361_v33, %v2003_v0 }
 0x4ef   : > { %v2007_v13 = vpop.xlane.xlu0 %2006 }
 0x4f0   : > { %4479 = vpow2.f32 %v2048_v50  ;;  %v2035_v7 = vsub.f32 %v1949_v57, %v2007_v13  ;;  %v2050_v15 = vmul.f32 1.442695, %v2033_v4 }
 0x4f2   : > { %v2054_v28 = vmul.f32 1.442695, %v2035_v7 }
 0x4f3   : > { %v2155_v41 = vpop.permute.xlu0 %2154 }
 0x4f4   : > { %4481 = vpow2.f32 %v2054_v28  ;;  %4134 = vmatprep.subr.bf16.mxu1 %v2155_v41 }
 0x4f5   : > { %4135 = vmatpush3.bf16.msra.mxu1 %v2155_v41  ;;  %4483 = vpow2.f32 %v2050_v15  ;;  %v2015_v41 = vpop.xlane.xlu1 %2014 }
 0x4f6   : > { %4136 = vmatprep.subr.bf16.mxu1 %v2153_v1  ;;  %v2039_v54 = vsub.f32 %v5366_v52, %v2015_v41 }
 0x4f8   : > { %v2062_v28 = vmul.f32 1.442695, %v2039_v54 }
 0x4f9   : > { %v5423_v24 = vpop.eup %4477  ;;  %4137 = vmatpush3.bf16.msra.mxu1 %v2153_v1  ;;  %v2011_v57 = vpop.xlane.xlu1 %2010 }
 0x4fa   : > { %2084 = vadd.xlane.f32.xlu1 %v5423_v24  ;;  %v2037_v53 = vsub.f32 %v5370_v14, %v2011_v57 }
 0x4fc   : > { %v2058_v0 = vmul.f32 1.442695, %v2037_v53 }
 0x4fd   : > { %v5426_v23 = vpop.eup %4479  ;;  %v2023_v59 = vpop.xlane.xlu1 %2022 }
 0x4fe   : > { %2080 = vadd.xlane.f32.xlu1 %v5426_v23 }
 0x501   : > { %v5429_v38 = vpop.eup %4481  ;;  %v2019_v50 = vpop.xlane.xlu1 %2018 }
 0x502   : > { %2086 = vadd.xlane.f32.xlu1 %v5429_v38  ;;  %v5432_v33 = vpop.eup %4483 }
 0x505   : > { %v5441_v47 = vpop.permute.xlu1 %2309 }
 0x506   : > { %2082 = vadd.xlane.f32.xlu1 %v5432_v33 }
 0x517   : > { %2301 = vrot.lane.b32.xlu1 %v5036_v29, %s4715_s30 }
 0x524   : > { %v2013_v1 = vpop.xlane.xlu0 %2012 }
 0x525   : > { %v2038_v10 = vsub.f32 %v1962_v61, %v2013_v1  ;;  %v2043_v61 = vsub.f32 %v5374_v58, %v2023_v59 }
 0x527   : > { %v2060_v51 = vmul.f32 1.442695, %v2038_v10  ;;  %v2070_v53 = vmul.f32 1.442695, %v2043_v61  ;;  %v2041_v10 = vsub.f32 %v5378_v6, %v2019_v50 }
 0x528   : > { %v2009_v13 = vpop.xlane.xlu0 %2008 }
 0x529   : > { %4485 = vpow2.f32 %v2060_v51  ;;  %v2036_v4 = vsub.f32 %v5389_v8, %v2009_v13  ;;  %v5445_v8 = vpop.permute.xlu1 %2305 }
 0x52a   : > { %4487 = vpow2.f32 %v2058_v0 }
 0x52b   : > { %v2056_v7 = vmul.f32 1.442695, %v2036_v4 }
 0x52c   : > { %v2021_v15 = vpop.xlane.xlu0 %2020 }
 0x52d   : > { %4489 = vpow2.f32 %v2056_v7  ;;  %v2042_v29 = vsub.f32 %v5393_v11, %v2021_v15 }
 0x52e   : > { %4491 = vpow2.f32 %v2062_v28 }
 0x52f   : > { %v2068_v14 = vmul.f32 1.442695, %v2042_v29 }
 0x530   : > { %v2017_v52 = vpop.xlane.xlu0 %2016 }
 0x531   : > { %4493 = vpow2.f32 %v2068_v14  ;;  %v2040_v41 = vsub.f32 %v5397_v27, %v2017_v52  ;;  %v2066_v27 = vmul.f32 1.442695, %v2041_v10  ;;  %v5498_v10 = vld [vmem:[#allocation2 + $0x8] sm:$0xff]  }
 0x533   : > { %v2064_v57 = vmul.f32 1.442695, %v2040_v41 }
 0x534   : > { %v2029_v1 = vpop.xlane.xlu0 %2028 }
 0x535   : > { %4495 = vpow2.f32 %v2064_v57  ;;  %v2046_v11 = vsub.f32 %v5401_v20, %v2029_v1  ;;  %v5492_v1 = vld [vmem:[#allocation2] sm:$0xff]  }
 0x536   : > { %v5449_v51 = vpop.eup %4485  ;;  %4497 = vpow2.f32 %v2070_v53 }
 0x537   : > { %v2076_v54 = vmul.f32 1.442695, %v2046_v11  ;;  %2092 = vadd.xlane.f32.xlu0 %v5449_v51  ;;  %v5452_v0 = vpop.eup %4487  ;;  %v5514_v11 = vld [vmem:[#allocation3 + $0x30] sm:$0xff]  }
 0x538   : > { %v2031_v58 = vpop.xlane.xlu1 %2030  ;;  %v2025_v59 = vpop.xlane.xlu0 %2024 }
 0x539   : > { %4499 = vpow2.f32 %v2076_v54  ;;  %v2044_v13 = vsub.f32 %v5405_v40, %v2025_v59  ;;  %v2047_v6 = vsub.f32 %v5408_v5, %v2031_v58  ;;  %v4672_v54 = vld [vmem:[#allocation3 + $0x10] sm:$0xff]   ;;  %v5521_v58 = vld [vmem:[#allocation3 + $0x38] sm:$0xff]   ;;  %v4674_v59 = vld [vmem:[#allocation3] sm:$0xff]  }
 0x53a   : > { %v5455_v4 = vpop.eup %4489  ;;  %4501 = vpow2.f32 %v2066_v27  ;;  %v5526_v27 = vld [vmem:[#allocation3 + $0x28] sm:$0xff]  }
 0x53b   : > { %v2072_v50 = vmul.f32 1.442695, %v2044_v13  ;;  %2090 = vadd.xlane.f32.xlu1 %v5452_v0  ;;  %2088 = vadd.xlane.f32.xlu0 %v5455_v4  ;;  %v5462_v28 = vpop.eup %4491  ;;  %v2078_v29 = vmul.f32 1.442695, %v2047_v6  ;;  %v4676_v13 = vld [vmem:[#allocation3 + $0x20] sm:$0xff]  }
 0x53c   : > { %v2027_v20 = vpop.xlane.xlu1 %2026  ;;  %v5460_v7 = vpop.permute.xlu0 %2311 }
 0x53d   : > { %v2045_v15 = vsub.f32 %v5413_v45, %v2027_v20  ;;  %4318 = vmatprep.subr.msk.bf16.mxu1 %vm1364_vm2, %v5460_v7  ;;  %4503 = vpow2.f32 %v2072_v50  ;;  %v4677_v50 = vld [vmem:[#allocation3 + $0x18] sm:$0xff]  }
 0x53e   : > { %v5467_v40 = vpop.eup %4493 }
 0x53f   : > { %v2074_v5 = vmul.f32 1.442695, %v2045_v15  ;;  %2094 = vadd.xlane.f32.xlu0 %v5462_v28  ;;  %2100 = vadd.xlane.f32.xlu1 %v5467_v40 }
 0x541   : > { %4505 = vpow2.f32 %v2074_v5 }
 0x542   : > { %v5471_v14 = vpop.eup %4495  ;;  %4507 = vpow2.f32 %v2078_v29 }
 0x543   : > { %2096 = vadd.xlane.f32.xlu1 %v5471_v14  ;;  %v5474_v61 = vpop.eup %4497 }
 0x546   : > { %v5476_v45 = vpop.eup %4499 }
 0x547   : > { %2102 = vadd.xlane.f32.xlu1 %v5474_v61  ;;  %2108 = vadd.xlane.f32.xlu0 %v5476_v45  ;;  %v5480_v52 = vpop.eup %4501 }
 0x54a   : > { %v5482_v41 = vpop.eup %4503 }
 0x54b   : > { %2098 = vadd.xlane.f32.xlu1 %v5480_v52  ;;  %2104 = vadd.xlane.f32.xlu0 %v5482_v41 }
 0x54e   : > { %v5486_v57 = vpop.eup %4505 }
 0x54f   : > { %v5488_v53 = vpop.eup %4507  ;;  %2106 = vadd.xlane.f32.xlu1 %v5486_v57 }
 0x550   : > { %2110 = vadd.xlane.f32.xlu0 %v5488_v53 }
 0x560   : > { %2297 = vrot.lane.b32.xlu1 %v5492_v1, %s4715_s30 }
 0x564   : > { %2283 = vrot.lane.b32.xlu1 %v4963_v3, %s4715_s30 }
 0x566   : > { %2299 = vrot.lane.b32.xlu0 %v5498_v10, %s4715_s30 }
 0x568   : > { %2287 = vrot.lane.b32.xlu1 %v5072_v55, %s4715_s30 }
 0x56a   : > { %2281 = vrot.lane.b32.xlu0 %v4970_v9, %s4715_s30 }
 0x56c   : > { %2291 = vrot.lane.b32.xlu1 %v5084_v62, %s4715_s30 }
 0x56e   : > { %2285 = vrot.lane.b32.xlu0 %v5062_v48, %s4715_s30 }
 0x570   : > { %2295 = vrot.lane.b32.xlu1 %v5094_v2, %s4715_s30 }
 0x572   : > { %2289 = vrot.lane.b32.xlu0 %v5074_v56, %s4715_s30 }
 0x574   : > { %2622 = vrot.lane.b32.xlu1 %v5514_v11, %s4715_s30 }
 0x576   : > { %2293 = vrot.lane.b32.xlu0 %v5086_v63, %s4715_s30 }
 0x578   : > { %2614 = vrot.lane.b32.xlu1 %v4672_v54, %s4715_s30 }
 0x57a   : > { %2624 = vrot.lane.b32.xlu0 %v5521_v58, %s4715_s30 }
 0x57c   : > { %2610 = vrot.lane.b32.xlu1 %v4674_v59, %s4715_s30 }
 0x57e   : > { %2620 = vrot.lane.b32.xlu0 %v5526_v27, %s4715_s30 }
 0x582   : > { %2618 = vrot.lane.b32.xlu0 %v4676_v13, %s4715_s30 }
 0x583   : > { %v2085_v6 = vpop.xlane.xlu1 %2084 }
 0x586   : > { %2616 = vrot.lane.b32.xlu0 %v4677_v50, %s4715_s30 }
 0x587   : > { %v2081_v20 = vpop.xlane.xlu1 %2080 }
 0x58b   : > { %v2087_v15 = vpop.xlane.xlu1 %2086 }
 0x58c   : > { %4509 = vrcp.f32 %v2087_v15 }
 0x58d   : > { %4511 = vrcp.f32 %v2081_v20  ;;  %v2308_v20 = vpop.permute.xlu0 %2307 }
 0x58e   : > { %4513 = vrcp.f32 %v2085_v6  ;;  %v2359_v6 = vsel %vm1364_vm2, %v5460_v7, 0 }
 0x58f   : > { %v2083_v29 = vpop.xlane.xlu1 %2082 }
 0x590   : > { %4515 = vrcp.f32 %v2083_v29 }
 0x599   : > { %v4510_v5 = vpop.eup %4509 }
 0x59a   : > { %v4512_v54 = vpop.eup %4511  ;;  %v2131_v22 = vmul.f32 %v4510_v5, %v5429_v38  ;;  %v2356_v38 = vsel %vm1364_vm2, %v5441_v47, 0 }
 0x59b   : > { %v4514_v59 = vpop.eup %4513  ;;  %v2128_v46 = vmul.f32 %v4512_v54, %v5426_v23 }
 0x59c   : > { %v2130_v30 = vmul.f32 %v4514_v59, %v5423_v24 }
 0x59d   : > { %v4516_v32 = vpop.eup %4515 }
 0x59e   : > { %v2129_v13 = vmul.f32 %v4516_v32, %v5432_v33  ;;  %v2145_v39 = vpack.c.bf16 %v2131_v22, %v2130_v30  ;;  %v2353_v32 = vsel %vm1364_vm2, %v2308_v20, 0  ;;  %v2302_v30 = vpop.permute.xlu1 %2301 }
 0x5a0   : > { %v2144_v50 = vpack.c.bf16 %v2129_v13, %v2128_v46  ;;  %v2304_v46 = vpop.permute.xlu0 %2303 }
 0x5a2   : > { %4138 = vmatprep.mubr.bf16.mxu1 %v2144_v50 }
 0x5a3   : > { %4139 = vmatmul.mubr.bf16.vlgmr.msra.gmra.mxu1 %v2145_v39  ;;  %v2350_v39 = vsel %vm1364_vm2, %v5445_v8, 0 }
 0x5a4   : > { %4155 = vmatpush3.bf16.xpose.msra.mxu1 %v2359_v6 }
 0x5a5   : > { %4319 = vmatprep.subr.msk.bf16.mxu1 %vm1364_vm2, %v5441_v47  ;;  %v2347_v47 = vsel %vm1364_vm2, %v2304_v46, 0 }
 0x5ac   : > { %4157 = vmatpush3.bf16.xpose.msra.mxu1 %v2356_v38 }
 0x5ad   : > { %4320 = vmatprep.subr.msk.bf16.mxu1 %vm1364_vm2, %v2308_v20 }
 0x5b4   : > { %4159 = vmatpush3.bf16.xpose.msra.mxu1 %v2353_v32 }
 0x5b5   : > { %4321 = vmatprep.subr.msk.bf16.mxu1 %vm1364_vm2, %v5445_v8  ;;  %v2344_v8 = vsel %vm1364_vm2, %v2302_v30, 0 }
 0x5bc   : > { %4161 = vmatpush3.bf16.xpose.msra.mxu1 %v2350_v39 }
 0x5bd   : > { %4322 = vmatprep.subr.msk.bf16.mxu1 %vm1364_vm2, %v2304_v46 }
 0x5c0   : > { %v2093_v22 = vpop.xlane.xlu0 %2092 }
 0x5c4   : > { %4163 = vmatpush3.bf16.xpose.msra.mxu1 %v2347_v47  ;;  %v2091_v24 = vpop.xlane.xlu1 %2090  ;;  %v2089_v23 = vpop.xlane.xlu0 %2088 }
 0x5c5   : > { %4517 = vrcp.f32 %v2091_v24  ;;  %4323 = vmatprep.subr.msk.bf16.mxu1 %vm1364_vm2, %v2302_v30 }
 0x5c6   : > { %4519 = vrcp.f32 %v2089_v23 }
 0x5c7   : > { %4521 = vrcp.f32 %v2093_v22 }
 0x5c8   : > { %v2101_v33 = vpop.xlane.xlu1 %2100  ;;  %v2095_v7 = vpop.xlane.xlu0 %2094 }
 0x5c9   : > { %4523 = vrcp.f32 %v2095_v7 }
 0x5cc   : > { %4165 = vmatpush3.bf16.xpose.msra.mxu1 %v2344_v8  ;;  %v2097_v15 = vpop.xlane.xlu1 %2096 }
 0x5d0   : > { %v2103_v29 = vpop.xlane.xlu1 %2102  ;;  %v2109_v5 = vpop.xlane.xlu0 %2108 }
 0x5d1   : > { %4525 = vrcp.f32 %v2103_v29 }
 0x5d2   : > { %v4518_v54 = vpop.eup %4517  ;;  %4527 = vrcp.f32 %v2097_v15 }
 0x5d3   : > { %v4520_v59 = vpop.eup %4519  ;;  %v2133_v13 = vmul.f32 %v4518_v54, %v5452_v0  ;;  %4529 = vrcp.f32 %v2101_v33 }
 0x5d4   : > { %v2099_v50 = vpop.xlane.xlu1 %2098  ;;  %v2132_v6 = vmul.f32 %v4520_v59, %v5455_v4  ;;  %v4522_v38 = vpop.eup %4521 }
 0x5d5   : > { %4531 = vrcp.f32 %v2099_v50  ;;  %v2105_v20 = vpop.xlane.xlu0 %2104  ;;  %v2134_v30 = vmul.f32 %v4522_v38, %v5449_v51 }
 0x5d6   : > { %v2146_v32 = vpack.c.bf16 %v2133_v13, %v2132_v6  ;;  %v4524_v39 = vpop.eup %4523  ;;  %4533 = vrcp.f32 %v2105_v20 }
 0x5d7   : > { %v2135_v22 = vmul.f32 %v4524_v39, %v5462_v28 }
 0x5d8   : > { %4142 = vmatprep.mubr.bf16.mxu1 %v2146_v32  ;;  %v2107_v46 = vpop.xlane.xlu1 %2106 }
 0x5d9   : > { %4535 = vrcp.f32 %v2107_v46  ;;  %v2111_v47 = vpop.xlane.xlu0 %2110  ;;  %v2147_v0 = vpack.c.bf16 %v2135_v22, %v2134_v30 }
 0x5da   : > { %4537 = vrcp.f32 %v2111_v47 }
 0x5db   : > { %4539 = vrcp.f32 %v2109_v5  ;;  %4143 = vmatmul.mubr.bf16.gmra.mxu1 %v2147_v0 }
 0x5dc   : > { %v2298_v24 = vpop.permute.xlu1 %2297 }
 0x5dd   : > { %v2300_v4 = vpop.permute.xlu0 %2299  ;;  %v2338_v32 = vsel %vm1364_vm2, %v2298_v24, 0 }
 0x5de   : > { %4324 = vmatprep.subr.msk.bf16.mxu1 %vm1364_vm2, %v2300_v4  ;;  %v2341_v23 = vsel %vm1364_vm2, %v2300_v4, 0  ;;  %v4526_v33 = vpop.eup %4525 }
 0x5df   : > { %4167 = vmatpush3.bf16.xpose.msra.mxu1 %v2341_v23  ;;  %v4528_v7 = vpop.eup %4527  ;;  %v2139_v29 = vmul.f32 %v4526_v33, %v5474_v61 }
 0x5e0   : > { %4325 = vmatprep.subr.msk.bf16.mxu1 %vm1364_vm2, %v2298_v24  ;;  %v2284_v51 = vpop.permute.xlu1 %2283  ;;  %v4530_v8 = vpop.eup %4529  ;;  %v2136_v5 = vmul.f32 %v4528_v7, %v5471_v14 }
 0x5e1   : > { %v2282_v28 = vpop.permute.xlu0 %2281  ;;  %v2138_v50 = vmul.f32 %v4530_v8, %v5467_v40 }
 0x5e2   : > { %v4532_v15 = vpop.eup %4531 }
 0x5e3   : > { %v2137_v54 = vmul.f32 %v4532_v15, %v5480_v52  ;;  %v4534_v59 = vpop.eup %4533  ;;  %v2149_v39 = vpack.c.bf16 %v2139_v29, %v2138_v50  ;;  %v4680_v50 = vld [vmem:[#allocation2 + $0x20] sm:$0xff]  }
 0x5e4   : > { %v2288_v13 = vpop.permute.xlu1 %2287  ;;  %v2140_v30 = vmul.f32 %v4534_v59, %v5482_v41 }
 0x5e5   : > { %v2286_v6 = vpop.permute.xlu0 %2285  ;;  %v2148_v38 = vpack.c.bf16 %v2137_v54, %v2136_v5 }
 0x5e6   : > { %v4536_v20 = vpop.eup %4535 }
 0x5e7   : > { %v4538_v46 = vpop.eup %4537  ;;  %4169 = vmatpush3.bf16.xpose.msra.mxu1 %v2338_v32  ;;  %4146 = vmatprep.mubr.bf16.mxu1 %v2148_v38  ;;  %v2141_v61 = vmul.f32 %v4536_v20, %v5486_v57 }
 0x5e8   : > { %v2292_v14 = vpop.permute.xlu1 %2291  ;;  %4147 = vmatmul.mubr.bf16.gmra.mxu1 %v2149_v39  ;;  %v4540_v52 = vpop.eup %4539  ;;  %v2143_v40 = vmul.f32 %v4538_v46, %v5488_v53  ;;  %v5656_v46 = vld [vmem:[#allocation3 + $0x8] sm:$0xff]  }
 0x5e9   : > { %v2290_v22 = vpop.permute.xlu0 %2289  ;;  %v2150_v47 = vpack.c.bf16 %v2141_v61, %v2140_v30  ;;  %v2142_v0 = vmul.f32 %v4540_v52, %v5476_v45 }
 0x5eb   : > { %4150 = vmatprep.mubr.bf16.mxu1 %v2150_v47  ;;  %v2151_v23 = vpack.c.bf16 %v2143_v40, %v2142_v0 }
 0x5ec   : > { %v2296_v4 = vpop.permute.xlu1 %2295 }
 0x5ed   : > { %v2294_v24 = vpop.permute.xlu0 %2293 }
 0x5f0   : > { %4151 = vmatmul.mubr.bf16.gmra.mxu1 %v2151_v23  ;;  %v2623_v41 = vpop.permute.xlu1 %2622 }
 0x5f1   : > { %v2625_v33 = vpop.permute.xlu0 %2624  ;;  %4170 = vmatprep.mubr.msk.bf16.mxu1 %vm1364_vm2, %v2282_v28 }
 0x5f2   : > { %4186 = vmatprep.subr.bf16.mxu0 %v2625_v33 }
 0x5f3   : > { %4187 = vmatpush3.bf16.msra.mxu0 %v2625_v33 }
 0x5f4   : > { %4188 = vmatprep.subr.bf16.mxu0 %v2623_v41  ;;  %v2615_v7 = vpop.permute.xlu1 %2614 }
 0x5f5   : > { %v2621_v57 = vpop.permute.xlu0 %2620 }
 0x5f7   : > { %4189 = vmatpush3.bf16.msra.mxu0 %v2623_v41 }
 0x5f8   : > { %4190 = vmatprep.subr.bf16.mxu0 %v2621_v57  ;;  %4171 = vmatmul.mubr.msk.bf16.vlgmr.msra.gmra.mxu1 %vm1364_vm2, %v2284_v51  ;;  %v2611_v60 = vpop.permute.xlu1 %2610 }
 0x5f9   : > { %v2619_v53 = vpop.permute.xlu0 %2618  ;;  %4174 = vmatprep.mubr.msk.bf16.mxu1 %vm1364_vm2, %v2286_v6 }
 0x5fb   : > { %4191 = vmatpush3.bf16.msra.mxu0 %v2621_v57 }
 0x5fc   : > { %4192 = vmatprep.subr.bf16.mxu0 %v2619_v53 }
 0x5fd   : > { %v2617_v45 = vpop.permute.xlu0 %2616 }
 0x5ff   : > { %4193 = vmatpush3.bf16.msra.mxu0 %v2619_v53 }
 0x600   : > { %4194 = vmatprep.subr.bf16.mxu0 %v2617_v45  ;;  %4175 = vmatmul.mubr.msk.bf16.gmra.mxu1 %vm1364_vm2, %v2288_v13 }
 0x601   : > { %4178 = vmatprep.mubr.msk.bf16.mxu1 %vm1364_vm2, %v2290_v22 }
 0x603   : > { %4195 = vmatpush3.bf16.msra.mxu0 %v2617_v45 }
 0x604   : > { %4196 = vmatprep.subr.bf16.mxu0 %v2615_v7 }
 0x607   : > { %4197 = vmatpush3.bf16.msra.mxu0 %v2615_v7 }
 0x608   : > { %4179 = vmatmul.mubr.msk.bf16.gmra.mxu1 %vm1364_vm2, %v2292_v14 }
 0x609   : > { %4182 = vmatprep.mubr.msk.bf16.mxu1 %vm1364_vm2, %v2294_v24 }
 0x610   : > { %4183 = vmatmul.mubr.msk.bf16.gmra.mxu1 %vm1364_vm2, %v2296_v4 }
 0x663   : > { %v5576_v51 = vpop.f32.mrf.mxu1 }
 0x665   : > { %v5578_v8 = vpop.f32.mrf.mxu1 }
 0x667   : > { %v5580_v28 = vpop.f32.mrf.mxu1 }
 0x669   : > { %v5584_v29 = vpop.f32.mrf.mxu1 }
 0x69b   : > { %v5588_v54 = vpop.f32.mrf.mxu1 }
 0x69d   : > { %v5590_v59 = vpop.f32.mrf.mxu1 }
 0x69f   : > { %v5592_v13 = vpop.f32.mrf.mxu1 }
 0x6a1   : > { %v5596_v6 = vpop.f32.mrf.mxu1 }
 0x6a8   : > { %v5600_v20 = vpop.f32.mrf.mxu1 }
 0x6aa   : > { %v5602_v32 = vpop.f32.mrf.mxu1 }
 0x6ac   : > { %v5604_v39 = vpop.f32.mrf.mxu1 }
 0x6ae   : > { %v5608_v30 = vpop.f32.mrf.mxu1 }
 0x6b0   : > { %v5612_v14 = vpop.f32.mrf.mxu1 }
 0x6b2   : > { %v5614_v52 = vpop.f32.mrf.mxu1 }
 0x6b4   : > { %v5616_v22 = vpop.f32.mrf.mxu1 }
 0x6b6   : > { %v5620_v40 = vpop.f32.mrf.mxu1 }
 0x6b8   : > { %v4172_v4 = vpop.f32.mrf.mxu1 }
 0x6b9   : > { %v5625_v24 = vadd.f32 %v4172_v4, %v5106_v12 }
 0x6ba   : > { %v2395_v23 = vpop.f32.mrf.mxu1 }
 0x6bb   : > { %2462 = vmax.xlane.f32.xlu0 %v5625_v24  ;;  %v5629_v41 = vadd.f32 %v2395_v23, %v5106_v12 }
 0x6bc   : > { %v4173_v33 = vpop.f32.mrf.mxu1 }
 0x6bd   : > { %v5636_v7 = vadd.f32 %v4173_v33, %v5106_v12 }
 0x6be   : > { %v2398_v57 = vpop.f32.mrf.mxu1 }
 0x6bf   : > { %v5632_v53 = vadd.f32 %v2398_v57, %v5106_v12  ;;  %2458 = vmax.xlane.f32.xlu0 %v5629_v41 }
 0x6c0   : > { %v4176_v45 = vpop.f32.mrf.mxu1 }
 0x6c1   : > { %2460 = vmax.xlane.f32.xlu1 %v5632_v53 }
 0x6c2   : > { %v2411_v4 = vpop.f32.mrf.mxu1 }
 0x6c3   : > { %2464 = vmax.xlane.f32.xlu0 %v5636_v7 }
 0x6c4   : > { %v4177_v17 = vpop.f32.mrf.mxu1 }
 0x6c5   : > { %v5641_v0 = vadd.f32 %v4177_v17, %v5106_v12 }
 0x6c6   : > { %v2414_v23 = vpop.f32.mrf.mxu1 }
 0x6c7   : > { %2472 = vmax.xlane.f32.xlu1 %v5641_v0  ;;  %v5645_v47 = vadd.f32 %v2414_v23, %v5106_v12  ;;  %v4679_v23 = vld [vmem:[#allocation2 + $0x30] sm:$0xff]  }
 0x6c8   : > { %v4180_v57 = vpop.f32.mrf.mxu1 }
 0x6c9   : > { %v5671_v15 = vadd.f32 %v4180_v57, %v5106_v12 }
 0x6ca   : > { %v2427_v61 = vpop.f32.mrf.mxu1 }
 0x6cb   : > { %2468 = vmax.xlane.f32.xlu1 %v5645_v47 }
 0x6cc   : > { %v4181_v33 = vpop.f32.mrf.mxu1 }
 0x6cd   : > { %v5649_v38 = vadd.f32 %v4181_v33, %v5106_v12  ;;  %v5663_v33 = vadd.f32 %v4176_v45, %v5106_v12 }
 0x6ce   : > { %v2430_v5 = vpop.f32.mrf.mxu1 }
 0x6cf   : > { %2480 = vmax.xlane.f32.xlu1 %v5649_v38  ;;  %v5653_v17 = vadd.f32 %v2430_v5, %v5106_v12  ;;  %v5667_v5 = vadd.f32 %v2411_v4, %v5106_v12 }
 0x6d0   : > { %v4184_v37 = vpop.f32.mrf.mxu1 }
 0x6d1   : > { %v5679_v45 = vadd.f32 %v4184_v37, %v5106_v12  ;;  %v4681_v37 = vld [vmem:[#allocation2 + $0x38] sm:$0xff]  }
 0x6d3   : > { %2476 = vmax.xlane.f32.xlu1 %v5653_v17 }
 0x6d9   : > { %2612 = vrot.lane.b32.xlu0 %v5656_v46, %s4715_s30  ;;  %s6147_s30 = scalar_lea.vmem %s6202_s12, %s3765_s20 }
 0x6e4   : > { %2767 = vrot.lane.b32.xlu1 %v4679_v23, %s4716_s13  ;;  %v5675_v23 = vadd.f32 %v2427_v61, %v5106_v12 }
 0x6e8   : > { %2763 = vrot.lane.b32.xlu1 %v4680_v50, %s4716_s13  ;;  %v2443_v50 = vpop.f32.mrf.mxu1 }
 0x6e9   : > { %v5683_v4 = vadd.f32 %v2443_v50, %v5106_v12  ;;  %v4683_v50 = vld [vmem:[#allocation2 + $0x18] sm:$0xff]  }
 0x6ea   : > { %v4185_v43 = vpop.f32.mrf.mxu1 }
 0x6eb   : > { %v5686_v57 = vadd.f32 %v4185_v43, %v5106_v12 }
 0x6ec   : > { %v2446_v42 = vpop.f32.mrf.mxu1 }
 0x6ed   : > { %v5691_v61 = vadd.f32 %v2446_v42, %v5106_v12 }
 0x6f8   : > { %2470 = vmax.xlane.f32.xlu0 %v5663_v33 }
 0x6fc   : > { %2466 = vmax.xlane.f32.xlu0 %v5667_v5 }
 0x700   : > { %2478 = vmax.xlane.f32.xlu0 %v5671_v15 }
 0x704   : > { %2474 = vmax.xlane.f32.xlu0 %v5675_v23 }
 0x708   : > { %2486 = vmax.xlane.f32.xlu0 %v5679_v45 }
 0x70c   : > { %2488 = vmax.xlane.f32.xlu1 %v5686_v57  ;;  %2482 = vmax.xlane.f32.xlu0 %v5683_v4 }
 0x710   : > { %2484 = vmax.xlane.f32.xlu1 %v5691_v61 }
 0x722   : > { %2769 = vrot.lane.b32.xlu0 %v4681_v37, %s4716_s13 }
 0x726   : > { %2765 = vrot.lane.b32.xlu0 %v4682_v44, %s4716_s13 }
 0x72a   : > { %2761 = vrot.lane.b32.xlu0 %v4683_v50, %s4716_s13 }
 0x744   : > { %v2463_v43 = vpop.xlane.xlu0 %2462 }
 0x745   : > { %v2492_v21 = vsub.f32 %v5625_v24, %v2463_v43 }
 0x747   : > { %v2510_v49 = vmul.f32 1.442695, %v2492_v21 }
 0x748   : > { %v2459_v34 = vpop.xlane.xlu0 %2458 }
 0x749   : > { %4541 = vpow2.f32 %v2510_v49  ;;  %v2490_v42 = vsub.f32 %v5629_v41, %v2459_v34 }
 0x74a   : > { %v2461_v18 = vpop.xlane.xlu1 %2460 }
 0x74b   : > { %v2506_v31 = vmul.f32 1.442695, %v2490_v42  ;;  %v2491_v37 = vsub.f32 %v5632_v53, %v2461_v18 }
 0x74c   : > { %v2465_v25 = vpop.xlane.xlu0 %2464 }
 0x74d   : > { %4543 = vpow2.f32 %v2506_v31  ;;  %v2493_v44 = vsub.f32 %v5636_v7, %v2465_v25  ;;  %v2508_v50 = vmul.f32 1.442695, %v2491_v37  ;;  %v4684_v31 = vld [vmem:[#allocation2 + $0x10] sm:$0xff]  }
 0x74f   : > { %v2512_v36 = vmul.f32 1.442695, %v2493_v44 }
 0x750   : > { %v2613_v19 = vpop.permute.xlu0 %2612 }
 0x751   : > { %4545 = vpow2.f32 %v2512_v36  ;;  %4198 = vmatprep.subr.bf16.mxu0 %v2613_v19 }
 0x752   : > { %4199 = vmatpush3.bf16.msra.mxu0 %v2613_v19  ;;  %4547 = vpow2.f32 %v2508_v50  ;;  %v2473_v19 = vpop.xlane.xlu1 %2472 }
 0x753   : > { %4200 = vmatprep.subr.bf16.mxu0 %v2611_v60  ;;  %v2497_v7 = vsub.f32 %v5641_v0, %v2473_v19 }
 0x755   : > { %v2520_v16 = vmul.f32 1.442695, %v2497_v7 }
 0x756   : > { %v5701_v21 = vpop.eup %4541  ;;  %4201 = vmatpush3.bf16.msra.mxu0 %v2611_v60  ;;  %v2469_v36 = vpop.xlane.xlu1 %2468 }
 0x757   : > { %2542 = vadd.xlane.f32.xlu1 %v5701_v21  ;;  %v2495_v34 = vsub.f32 %v5645_v47, %v2469_v36 }
 0x759   : > { %v2516_v43 = vmul.f32 1.442695, %v2495_v34 }
 0x75a   : > { %v5704_v49 = vpop.eup %4543  ;;  %v2481_v60 = vpop.xlane.xlu1 %2480 }
 0x75b   : > { %2538 = vadd.xlane.f32.xlu1 %v5704_v49 }
 0x75e   : > { %v5707_v18 = vpop.eup %4545  ;;  %v2477_v42 = vpop.xlane.xlu1 %2476 }
 0x75f   : > { %2544 = vadd.xlane.f32.xlu1 %v5707_v18  ;;  %v5710_v25 = vpop.eup %4547 }
 0x762   : > { %v5719_v47 = vpop.permute.xlu1 %2767 }
 0x763   : > { %2540 = vadd.xlane.f32.xlu1 %v5710_v25 }
 0x774   : > { %2759 = vrot.lane.b32.xlu1 %v4684_v31, %s4716_s13 }
 0x781   : > { %v2471_v24 = vpop.xlane.xlu0 %2470 }
 0x782   : > { %v2496_v41 = vsub.f32 %v5663_v33, %v2471_v24  ;;  %v2501_v33 = vsub.f32 %v5649_v38, %v2481_v60 }
 0x784   : > { %v2518_v53 = vmul.f32 1.442695, %v2496_v41  ;;  %v2528_v24 = vmul.f32 1.442695, %v2501_v33 }
 0x785   : > { %v2467_v37 = vpop.xlane.xlu0 %2466 }
 0x786   : > { %4549 = vpow2.f32 %v2518_v53  ;;  %v2494_v44 = vsub.f32 %v5667_v5, %v2467_v37  ;;  %v5723_v5 = vpop.permute.xlu1 %2763  ;;  %v2499_v53 = vsub.f32 %v5653_v17, %v2477_v42 }
 0x787   : > { %4551 = vpow2.f32 %v2516_v43 }
 0x788   : > { %v2514_v50 = vmul.f32 1.442695, %v2494_v44 }
 0x789   : > { %v2479_v31 = vpop.xlane.xlu0 %2478 }
 0x78a   : > { %4553 = vpow2.f32 %v2514_v50  ;;  %v2500_v35 = vsub.f32 %v5671_v15, %v2479_v31 }
 0x78b   : > { %4555 = vpow2.f32 %v2520_v16 }
 0x78c   : > { %v2526_v36 = vmul.f32 1.442695, %v2500_v35 }
 0x78d   : > { %v2475_v0 = vpop.xlane.xlu0 %2474 }
 0x78e   : > { %4557 = vpow2.f32 %v2526_v36  ;;  %v2498_v19 = vsub.f32 %v5675_v23, %v2475_v0  ;;  %v2524_v23 = vmul.f32 1.442695, %v2499_v53 }
 0x790   : > { %v2522_v34 = vmul.f32 1.442695, %v2498_v19 }
 0x791   : > { %v2487_v41 = vpop.xlane.xlu0 %2486 }
 0x792   : > { %4559 = vpow2.f32 %v2522_v34  ;;  %v2504_v15 = vsub.f32 %v5679_v45, %v2487_v41 }
 0x793   : > { %v5727_v7 = vpop.eup %4549  ;;  %4561 = vpow2.f32 %v2528_v24 }
 0x794   : > { %v2534_v35 = vmul.f32 1.442695, %v2504_v15  ;;  %2550 = vadd.xlane.f32.xlu0 %v5727_v7  ;;  %v5730_v60 = vpop.eup %4551 }
 0x795   : > { %v2489_v16 = vpop.xlane.xlu1 %2488  ;;  %v2483_v38 = vpop.xlane.xlu0 %2482 }
 0x796   : > { %4563 = vpow2.f32 %v2534_v35  ;;  %v2502_v43 = vsub.f32 %v5683_v4, %v2483_v38  ;;  %v2505_v17 = vsub.f32 %v5686_v57, %v2489_v16  ;;  %v2814_v35 = vsel %vm1364_vm2, %v5719_v47, 0 }
 0x797   : > { %v5733_v37 = vpop.eup %4553  ;;  %4565 = vpow2.f32 %v2524_v23 }
 0x798   : > { %v2530_v42 = vmul.f32 1.442695, %v2502_v43  ;;  %2548 = vadd.xlane.f32.xlu1 %v5730_v60  ;;  %2546 = vadd.xlane.f32.xlu0 %v5733_v37  ;;  %v5738_v50 = vpop.eup %4555  ;;  %v2536_v4 = vmul.f32 1.442695, %v2505_v17 }
 0x799   : > { %v2485_v45 = vpop.xlane.xlu1 %2484  ;;  %v2770_v44 = vpop.permute.xlu0 %2769 }
 0x79a   : > { %v2503_v31 = vsub.f32 %v5691_v61, %v2485_v45  ;;  %4326 = vmatprep.subr.msk.bf16.mxu0 %vm1364_vm2, %v2770_v44  ;;  %4567 = vpow2.f32 %v2530_v42  ;;  %v2817_v15 = vsel %vm1364_vm2, %v2770_v44, 0 }
 0x79b   : > { %v5742_v36 = vpop.eup %4557 }
 0x79c   : > { %v2532_v33 = vmul.f32 1.442695, %v2503_v31  ;;  %2552 = vadd.xlane.f32.xlu0 %v5738_v50  ;;  %2558 = vadd.xlane.f32.xlu1 %v5742_v36 }
 0x79e   : > { %4569 = vpow2.f32 %v2532_v33 }
 0x79f   : > { %v5746_v57 = vpop.eup %4559  ;;  %4571 = vpow2.f32 %v2536_v4 }
 0x7a0   : > { %2554 = vadd.xlane.f32.xlu1 %v5746_v57  ;;  %v5749_v0 = vpop.eup %4561 }
 0x7a3   : > { %v5751_v61 = vpop.eup %4563 }
 0x7a4   : > { %2560 = vadd.xlane.f32.xlu1 %v5749_v0  ;;  %2566 = vadd.xlane.f32.xlu0 %v5751_v61  ;;  %v5755_v19 = vpop.eup %4565 }
 0x7a7   : > { %v5757_v34 = vpop.eup %4567 }
 0x7a8   : > { %2556 = vadd.xlane.f32.xlu1 %v5755_v19  ;;  %2562 = vadd.xlane.f32.xlu0 %v5757_v34 }
 0x7ab   : > { %v5761_v24 = vpop.eup %4569 }
 0x7ac   : > { %v5763_v41 = vpop.eup %4571  ;;  %2564 = vadd.xlane.f32.xlu1 %v5761_v24 }
 0x7ad   : > { %2568 = vadd.xlane.f32.xlu0 %v5763_v41 }
 0x7bd   : > { %2755 = vrot.lane.b32.xlu1 %v5492_v1, %s4716_s13 }
 0x7c1   : > { %2741 = vrot.lane.b32.xlu1 %v4963_v3, %s4716_s13 }
 0x7c3   : > { %2757 = vrot.lane.b32.xlu0 %v5498_v10, %s4716_s13 }
 0x7c5   : > { %2745 = vrot.lane.b32.xlu1 %v5072_v55, %s4716_s13 }
 0x7c7   : > { %2739 = vrot.lane.b32.xlu0 %v4970_v9, %s4716_s13 }
 0x7c9   : > { %2749 = vrot.lane.b32.xlu1 %v5084_v62, %s4716_s13 }
 0x7cb   : > { %2743 = vrot.lane.b32.xlu0 %v5062_v48, %s4716_s13 }
 0x7cd   : > { %2753 = vrot.lane.b32.xlu1 %v5094_v2, %s4716_s13 }
 0x7cf   : > { %2747 = vrot.lane.b32.xlu0 %v5074_v56, %s4716_s13 }
 0x7d1   : > { %3080 = vrot.lane.b32.xlu1 %v5514_v11, %s4716_s13 }
 0x7d3   : > { %2751 = vrot.lane.b32.xlu0 %v5086_v63, %s4716_s13 }
 0x7d7   : > { %3082 = vrot.lane.b32.xlu0 %v5521_v58, %s4716_s13 }
 0x7db   : > { %3078 = vrot.lane.b32.xlu0 %v5526_v27, %s4716_s13 }
 0x7e0   : > { %v2543_v3 = vpop.xlane.xlu1 %2542 }
 0x7e4   : > { %v2539_v9 = vpop.xlane.xlu1 %2538 }
 0x7e8   : > { %v2545_v48 = vpop.xlane.xlu1 %2544 }
 0x7e9   : > { %4573 = vrcp.f32 %v2545_v48 }
 0x7ea   : > { %4575 = vrcp.f32 %v2539_v9 }
 0x7eb   : > { %4577 = vrcp.f32 %v2543_v3 }
 0x7ec   : > { %v2541_v55 = vpop.xlane.xlu1 %2540 }
 0x7ed   : > { %4579 = vrcp.f32 %v2541_v55 }
 0x7f0   : > { %v2760_v16 = vpop.permute.xlu1 %2759 }
 0x7f6   : > { %v4574_v56 = vpop.eup %4573 }
 0x7f7   : > { %v4576_v62 = vpop.eup %4575  ;;  %v2589_v63 = vmul.f32 %v4574_v56, %v5707_v18  ;;  %v2766_v18 = vpop.permute.xlu0 %2765 }
 0x7f8   : > { %v4578_v2 = vpop.eup %4577  ;;  %v2586_v10 = vmul.f32 %v4576_v62, %v5704_v49  ;;  %v2811_v49 = vsel %vm1364_vm2, %v2766_v18, 0 }
 0x7f9   : > { %v2588_v58 = vmul.f32 %v4578_v2, %v5701_v21  ;;  %v2808_v21 = vsel %vm1364_vm2, %v5723_v5, 0 }
 0x7fa   : > { %v4580_v1 = vpop.eup %4579 }
 0x7fb   : > { %v2587_v11 = vmul.f32 %v4580_v1, %v5710_v25  ;;  %v2603_v53 = vpack.c.bf16 %v2589_v63, %v2588_v58  ;;  %v2762_v25 = vpop.permute.xlu0 %2761 }
 0x7fd   : > { %v2602_v27 = vpack.c.bf16 %v2587_v11, %v2586_v10 }
 0x7ff   : > { %4202 = vmatprep.mubr.bf16.mxu0 %v2602_v27 }
 0x800   : > { %4203 = vmatmul.mubr.bf16.vlgmr.msra.gmra.mxu0 %v2603_v53 }
 0x801   : > { %4219 = vmatpush3.bf16.xpose.msra.mxu0 %v2817_v15 }
 0x802   : > { %4327 = vmatprep.subr.msk.bf16.mxu0 %vm1364_vm2, %v5719_v47  ;;  %v2805_v47 = vsel %vm1364_vm2, %v2762_v25, 0 }
 0x809   : > { %4221 = vmatpush3.bf16.xpose.msra.mxu0 %v2814_v35 }
 0x80a   : > { %4328 = vmatprep.subr.msk.bf16.mxu0 %vm1364_vm2, %v2766_v18 }
 0x811   : > { %4223 = vmatpush3.bf16.xpose.msra.mxu0 %v2811_v49 }
 0x812   : > { %4329 = vmatprep.subr.msk.bf16.mxu0 %vm1364_vm2, %v5723_v5  ;;  %v2802_v5 = vsel %vm1364_vm2, %v2760_v16, 0 }
 0x819   : > { %4225 = vmatpush3.bf16.xpose.msra.mxu0 %v2808_v21 }
 0x81a   : > { %4330 = vmatprep.subr.msk.bf16.mxu0 %vm1364_vm2, %v2762_v25 }
 0x81d   : > { %v2551_v38 = vpop.xlane.xlu0 %2550 }
 0x821   : > { %4227 = vmatpush3.bf16.xpose.msra.mxu0 %v2805_v47  ;;  %v2549_v23 = vpop.xlane.xlu1 %2548  ;;  %v2547_v43 = vpop.xlane.xlu0 %2546 }
 0x822   : > { %4581 = vrcp.f32 %v2549_v23  ;;  %4331 = vmatprep.subr.msk.bf16.mxu0 %vm1364_vm2, %v2760_v16 }
 0x823   : > { %4583 = vrcp.f32 %v2547_v43 }
 0x824   : > { %4585 = vrcp.f32 %v2551_v38 }
 0x825   : > { %v2559_v17 = vpop.xlane.xlu1 %2558  ;;  %v2553_v42 = vpop.xlane.xlu0 %2552 }
 0x826   : > { %4587 = vrcp.f32 %v2553_v42 }
 0x829   : > { %4229 = vmatpush3.bf16.xpose.msra.mxu0 %v2802_v5  ;;  %v2555_v45 = vpop.xlane.xlu1 %2554 }
 0x82d   : > { %v2561_v44 = vpop.xlane.xlu1 %2560  ;;  %v2567_v31 = vpop.xlane.xlu0 %2566 }
 0x82e   : > { %4589 = vrcp.f32 %v2561_v44 }
 0x82f   : > { %v4582_v4 = vpop.eup %4581  ;;  %4591 = vrcp.f32 %v2555_v45 }
 0x830   : > { %v4584_v33 = vpop.eup %4583  ;;  %v2591_v3 = vmul.f32 %v4582_v4, %v5730_v60  ;;  %4593 = vrcp.f32 %v2559_v17 }
 0x831   : > { %v2557_v9 = vpop.xlane.xlu1 %2556  ;;  %v2590_v48 = vmul.f32 %v4584_v33, %v5733_v37  ;;  %v4586_v55 = vpop.eup %4585 }
 0x832   : > { %4595 = vrcp.f32 %v2557_v9  ;;  %v2563_v56 = vpop.xlane.xlu0 %2562  ;;  %v2592_v63 = vmul.f32 %v4586_v55, %v5727_v7 }
 0x833   : > { %v2604_v62 = vpack.c.bf16 %v2591_v3, %v2590_v48  ;;  %v4588_v2 = vpop.eup %4587  ;;  %4597 = vrcp.f32 %v2563_v56 }
 0x834   : > { %v2593_v10 = vmul.f32 %v4588_v2, %v5738_v50 }
 0x835   : > { %4206 = vmatprep.mubr.bf16.mxu0 %v2604_v62  ;;  %v2565_v1 = vpop.xlane.xlu1 %2564 }
 0x836   : > { %4599 = vrcp.f32 %v2565_v1  ;;  %v2569_v11 = vpop.xlane.xlu0 %2568  ;;  %v2605_v60 = vpack.c.bf16 %v2593_v10, %v2592_v63 }
 0x837   : > { %4601 = vrcp.f32 %v2569_v11 }
 0x838   : > { %4603 = vrcp.f32 %v2567_v31  ;;  %4207 = vmatmul.mubr.bf16.gmra.mxu0 %v2605_v60 }
 0x839   : > { %v2756_v58 = vpop.permute.xlu1 %2755 }
 0x83a   : > { %v2758_v37 = vpop.permute.xlu0 %2757  ;;  %v2796_v42 = vsel %vm1364_vm2, %v2756_v58, 0 }
 0x83b   : > { %v2799_v27 = vsel %vm1364_vm2, %v2758_v37, 0  ;;  %4332 = vmatprep.subr.msk.bf16.mxu0 %vm1364_vm2, %v2758_v37  ;;  %v4590_v53 = vpop.eup %4589 }
 0x83c   : > { %4231 = vmatpush3.bf16.xpose.msra.mxu0 %v2799_v27  ;;  %v4592_v15 = vpop.eup %4591  ;;  %v2597_v49 = vmul.f32 %v4590_v53, %v5749_v0 }
 0x83d   : > { %4333 = vmatprep.subr.msk.bf16.mxu0 %vm1364_vm2, %v2756_v58  ;;  %v2742_v7 = vpop.permute.xlu1 %2741  ;;  %v4594_v35 = vpop.eup %4593  ;;  %v2594_v21 = vmul.f32 %v4592_v15, %v5746_v57 }
 0x83e   : > { %v2740_v50 = vpop.permute.xlu0 %2739  ;;  %v2596_v47 = vmul.f32 %v4594_v35, %v5742_v36 }
 0x83f   : > { %v4596_v18 = vpop.eup %4595 }
 0x840   : > { %v2595_v25 = vmul.f32 %v4596_v18, %v5755_v19  ;;  %v4598_v16 = vpop.eup %4597  ;;  %v2607_v5 = vpack.c.bf16 %v2597_v49, %v2596_v47 }
 0x841   : > { %v2746_v38 = vpop.permute.xlu1 %2745  ;;  %v2598_v44 = vmul.f32 %v4598_v16, %v5757_v34 }
 0x842   : > { %v2744_v23 = vpop.permute.xlu0 %2743  ;;  %v2606_v43 = vpack.c.bf16 %v2595_v25, %v2594_v21 }
 0x843   : > { %v4600_v17 = vpop.eup %4599 }
 0x844   : > { %v4602_v45 = vpop.eup %4601  ;;  %4233 = vmatpush3.bf16.xpose.msra.mxu0 %v2796_v42  ;;  %4210 = vmatprep.mubr.bf16.mxu0 %v2606_v43  ;;  %v2599_v0 = vmul.f32 %v4600_v17, %v5761_v24 }
 0x845   : > { %v2750_v57 = vpop.permute.xlu1 %2749  ;;  %4211 = vmatmul.mubr.bf16.gmra.mxu0 %v2607_v5  ;;  %v4604_v19 = vpop.eup %4603  ;;  %v2601_v36 = vmul.f32 %v4602_v45, %v5763_v41 }
 0x846   : > { %v2748_v31 = vpop.permute.xlu0 %2747  ;;  %v2608_v4 = vpack.c.bf16 %v2599_v0, %v2598_v44  ;;  %v2600_v33 = vmul.f32 %v4604_v19, %v5751_v61 }
 0x848   : > { %4214 = vmatprep.mubr.bf16.mxu0 %v2608_v4  ;;  %v2609_v48 = vpack.c.bf16 %v2601_v36, %v2600_v33 }
 0x849   : > { %v2754_v3 = vpop.permute.xlu1 %2753 }
 0x84a   : > { %v2752_v9 = vpop.permute.xlu0 %2751 }
 0x84d   : > { %4215 = vmatmul.mubr.bf16.gmra.mxu0 %v2609_v48  ;;  %v3081_v34 = vpop.permute.xlu1 %3080 }
 0x84e   : > { %v3083_v55 = vpop.permute.xlu0 %3082  ;;  %4234 = vmatprep.mubr.msk.bf16.mxu0 %vm1364_vm2, %v2740_v50 }
 0x84f   : > { %4250 = vmatprep.subr.bf16.mxu1 %v3083_v55 }
 0x850   : > { %4251 = vmatpush3.bf16.msra.mxu1 %v3083_v55 }
 0x851   : > { %4252 = vmatprep.subr.bf16.mxu1 %v3081_v34 }
 0x852   : > { %v3079_v24 = vpop.permute.xlu0 %3078 }
 0x854   : > { %4253 = vmatpush3.bf16.msra.mxu1 %v3081_v34 }
 0x855   : > { %4254 = vmatprep.subr.bf16.mxu1 %v3079_v24  ;;  %4235 = vmatmul.mubr.msk.bf16.vlgmr.msra.gmra.mxu0 %vm1364_vm2, %v2742_v7 }
 0x856   : > { %4238 = vmatprep.mubr.msk.bf16.mxu0 %vm1364_vm2, %v2744_v23 }
 0x858   : > { %4255 = vmatpush3.bf16.msra.mxu1 %v3079_v24 }
 0x85d   : > { %4239 = vmatmul.mubr.msk.bf16.gmra.mxu0 %vm1364_vm2, %v2746_v38 }
 0x85e   : > { %4242 = vmatprep.mubr.msk.bf16.mxu0 %vm1364_vm2, %v2748_v31 }
 0x865   : > { %4243 = vmatmul.mubr.msk.bf16.gmra.mxu0 %vm1364_vm2, %v2750_v57 }
 0x866   : > { %4246 = vmatprep.mubr.msk.bf16.mxu0 %vm1364_vm2, %v2752_v9 }
 0x86d   : > { %4247 = vmatmul.mubr.msk.bf16.gmra.mxu0 %vm1364_vm2, %v2754_v3 }
 0x8c0   : > { %v5836_v61 = vpop.f32.mrf.mxu0 }
 0x8c2   : > { %v5838_v41 = vpop.f32.mrf.mxu0 }
 0x8c4   : > { %v5840_v56 = vpop.f32.mrf.mxu0 }
 0x8c6   : > { %v5844_v2 = vpop.f32.mrf.mxu0 }
 0x8f8   : > { %v5848_v63 = vpop.f32.mrf.mxu0 }
 0x8fa   : > { %v5850_v10 = vpop.f32.mrf.mxu0 }
 0x8fc   : > { %v5852_v11 = vpop.f32.mrf.mxu0 }
 0x8fe   : > { %v5856_v58 = vpop.f32.mrf.mxu0 }
 0x905   : > { %v5860_v27 = vpop.f32.mrf.mxu0 }
 0x907   : > { %v5862_v53 = vpop.f32.mrf.mxu0 }
 0x909   : > { %v5864_v15 = vpop.f32.mrf.mxu0 }
 0x90b   : > { %v5868_v35 = vpop.f32.mrf.mxu0 }
 0x90d   : > { %v5872_v18 = vpop.f32.mrf.mxu0 }
 0x90e   : > { %6238 = vst [vmem:[#allocation20_spill] sm:$0xff] %v5872_v18 }
 0x90f   : > { %v5874_v49 = vpop.f32.mrf.mxu0 }
 0x910   : > { %6239 = vst [vmem:[#allocation21_spill] sm:$0xff] %v5874_v49 }
 0x911   : > { %v5876_v21 = vpop.f32.mrf.mxu0 }
 0x913   : > { %v5880_v16 = vpop.f32.mrf.mxu0 }
 0x914   : > { %6240 = vst [vmem:[#allocation22_spill] sm:$0xff] %v5880_v16 }
 0x915   : > { %v4236_v47 = vpop.f32.mrf.mxu0 }
 0x916   : > { %v2862_v23 = vadd.f32 %v4236_v47, %v5106_v12 }
 0x917   : > { %v2853_v43 = vpop.f32.mrf.mxu0 }
 0x918   : > { %2920 = vmax.xlane.f32.xlu0 %v2862_v23  ;;  %v2854_v42 = vadd.f32 %v2853_v43, %v5106_v12 }
 0x919   : > { %v4237_v17 = vpop.f32.mrf.mxu0 }
 0x91a   : > { %v2865_v0 = vadd.f32 %v4237_v17, %v5106_v12 }
 0x91b   : > { %v2856_v5 = vpop.f32.mrf.mxu0 }
 0x91c   : > { %v2857_v45 = vadd.f32 %v2856_v5, %v5106_v12  ;;  %2916 = vmax.xlane.f32.xlu0 %v2854_v42 }
 0x91d   : > { %v4240_v44 = vpop.f32.mrf.mxu0 }
 0x91e   : > { %2918 = vmax.xlane.f32.xlu1 %v2857_v45  ;;  %v2878_v31 = vadd.f32 %v4240_v44, %v5106_v12 }
 0x91f   : > { %v2869_v57 = vpop.f32.mrf.mxu0 }
 0x920   : > { %2922 = vmax.xlane.f32.xlu0 %v2865_v0  ;;  %v2870_v3 = vadd.f32 %v2869_v57, %v5106_v12 }
 0x921   : > { %v4241_v19 = vpop.f32.mrf.mxu0 }
 0x922   : > { %v5890_v4 = vadd.f32 %v4241_v19, %v5106_v12 }
 0x923   : > { %v2872_v36 = vpop.f32.mrf.mxu0 }
 0x924   : > { %2928 = vmax.xlane.f32.xlu0 %v2878_v31  ;;  %2930 = vmax.xlane.f32.xlu1 %v5890_v4  ;;  %v2873_v9 = vadd.f32 %v2872_v36, %v5106_v12  ;;  %v4685_v36 = vld [vmem:[#allocation3 + $0x18] sm:$0xff]  }
 0x925   : > { %v4244_v33 = vpop.f32.mrf.mxu0 }
 0x926   : > { %v5896_v34 = vadd.f32 %v4244_v33, %v5106_v12  ;;  %v4686_v33 = vld [vmem:[#allocation3 + $0x20] sm:$0xff]  }
 0x927   : > { %v2885_v48 = vpop.f32.mrf.mxu0 }
 0x928   : > { %2926 = vmax.xlane.f32.xlu1 %v2873_v9  ;;  %2924 = vmax.xlane.f32.xlu0 %v2870_v3  ;;  %v5904_v43 = vadd.f32 %v2885_v48, %v5106_v12 }
 0x929   : > { %v4245_v55 = vpop.f32.mrf.mxu0 }
 0x92a   : > { %v5899_v24 = vadd.f32 %v4245_v55, %v5106_v12 }
 0x92b   : > { %v2888_v47 = vpop.f32.mrf.mxu0 }
 0x92c   : > { %2936 = vmax.xlane.f32.xlu0 %v5896_v34  ;;  %2938 = vmax.xlane.f32.xlu1 %v5899_v24  ;;  %v5907_v17 = vadd.f32 %v2888_v47, %v5106_v12 }
 0x92d   : > { %v4248_v5 = vpop.f32.mrf.mxu0 }
 0x92e   : > { %v5912_v44 = vadd.f32 %v4248_v5, %v5106_v12 }
 0x92f   : > { %v2901_v57 = vpop.f32.mrf.mxu0 }
 0x930   : > { %2934 = vmax.xlane.f32.xlu1 %v5907_v17  ;;  %2932 = vmax.xlane.f32.xlu0 %v5904_v43  ;;  %v5916_v19 = vadd.f32 %v2901_v57, %v5106_v12  ;;  %v4687_v57 = vld [vmem:[#allocation3 + $0x10] sm:$0xff]  }
 0x931   : > { %v4249_v48 = vpop.f32.mrf.mxu0 }
 0x932   : > { %v5922_v55 = vadd.f32 %v4249_v48, %v5106_v12 }
 0x933   : > { %v2904_v47 = vpop.f32.mrf.mxu0 }
 0x934   : > { %2944 = vmax.xlane.f32.xlu0 %v5912_v44  ;;  %v5926_v5 = vadd.f32 %v2904_v47, %v5106_v12 }
 0x938   : > { %2940 = vmax.xlane.f32.xlu0 %v5916_v19 }
 0x941   : > { %3074 = vrot.lane.b32.xlu1 %v4685_v36, %s4716_s13 }
 0x94e   : > { %3076 = vrot.lane.b32.xlu0 %v4686_v33, %s4716_s13 }
 0x965   : > { %2946 = vmax.xlane.f32.xlu1 %v5922_v55 }
 0x969   : > { %2942 = vmax.xlane.f32.xlu1 %v5926_v5 }
 0x97a   : > { %3072 = vrot.lane.b32.xlu1 %v4687_v57, %s4716_s13 }
 0x9a1   : > { %v2921_v38 = vpop.xlane.xlu0 %2920 }
 0x9a2   : > { %v2950_v36 = vsub.f32 %v2862_v23, %v2921_v38 }
 0x9a4   : > { %v2968_v25 = vmul.f32 1.442695, %v2950_v36 }
 0x9a5   : > { %v2917_v50 = vpop.xlane.xlu0 %2916 }
 0x9a6   : > { %4605 = vpow2.f32 %v2968_v25  ;;  %v2948_v33 = vsub.f32 %v2854_v42, %v2917_v50 }
 0x9a7   : > { %v2919_v7 = vpop.xlane.xlu1 %2918 }
 0x9a8   : > { %v2964_v48 = vmul.f32 1.442695, %v2948_v33  ;;  %v2949_v60 = vsub.f32 %v2857_v45, %v2919_v7 }
 0x9a9   : > { %v2923_v37 = vpop.xlane.xlu0 %2922 }
 0x9aa   : > { %4607 = vpow2.f32 %v2964_v48  ;;  %v2951_v62 = vsub.f32 %v2865_v0, %v2923_v37  ;;  %v2966_v26 = vmul.f32 1.442695, %v2949_v60 }
 0x9ac   : > { %v2970_v1 = vmul.f32 1.442695, %v2951_v62 }
 0x9ad   : > { %v2931_v12 = vpop.xlane.xlu1 %2930  ;;  %v2929_v47 = vpop.xlane.xlu0 %2928 }
 0x9ae   : > { %4609 = vpow2.f32 %v2970_v1  ;;  %v2954_v49 = vsub.f32 %v2878_v31, %v2929_v47  ;;  %v2955_v50 = vsub.f32 %v5890_v4, %v2931_v12 }
 0x9af   : > { %4611 = vpow2.f32 %v2966_v26 }
 0x9b0   : > { %v2976_v16 = vmul.f32 1.442695, %v2954_v49  ;;  %v2978_v49 = vmul.f32 1.442695, %v2955_v50 }
 0x9b1   : > { %v2927_v57 = vpop.xlane.xlu1 %2926  ;;  %v2925_v18 = vpop.xlane.xlu0 %2924 }
 0x9b2   : > { %v2953_v38 = vsub.f32 %v2873_v9, %v2927_v57  ;;  %v2952_v23 = vsub.f32 %v2870_v3, %v2925_v18  ;;  %4613 = vpow2.f32 %v2976_v16 }
 0x9b3   : > { %v5930_v25 = vpop.eup %4605 }
 0x9b4   : > { %v2974_v42 = vmul.f32 1.442695, %v2953_v38  ;;  %v2972_v7 = vmul.f32 1.442695, %v2952_v23  ;;  %3000 = vadd.xlane.f32.xlu1 %v5930_v25 }
 0x9b5   : > { %v2937_v62 = vpop.xlane.xlu0 %2936  ;;  %v2939_v60 = vpop.xlane.xlu1 %2938 }
 0x9b6   : > { %4615 = vpow2.f32 %v2974_v42  ;;  %v2958_v1 = vsub.f32 %v5896_v34, %v2937_v62  ;;  %v2959_v0 = vsub.f32 %v5899_v24, %v2939_v60 }
 0x9b7   : > { %v5935_v37 = vpop.eup %4607  ;;  %4617 = vpow2.f32 %v2972_v7 }
 0x9b8   : > { %2996 = vadd.xlane.f32.xlu1 %v5935_v37  ;;  %v2984_v18 = vmul.f32 1.442695, %v2958_v1  ;;  %4619 = vpow2.f32 %v2978_v49  ;;  %v2986_v36 = vmul.f32 1.442695, %v2959_v0  ;;  %v4688_v49 = vld [vmem:[#allocation3] sm:$0xff]   ;;  %v6243_v0 = vpack.c.bf16 %v5840_v56, %v5836_v61 }
 0x9b9   : > { %v2933_v26 = vpop.xlane.xlu0 %2932  ;;  %v2935_v31 = vpop.xlane.xlu1 %2934  ;;  %v6246_v56 = vpack.c.bf16 %v5604_v39, %v5600_v20  ;;  %v6249_v20 = vpack.c.bf16 %v5856_v58, %v5850_v10  ;;  %v6250_v39 = vpack.c.bf16 %v5608_v30, %v5602_v32 }
 0x9ba   : > { %v2956_v45 = vsub.f32 %v5904_v43, %v2933_v26  ;;  %4621 = vpow2.f32 %v2984_v18  ;;  %v2957_v33 = vsub.f32 %v5907_v17, %v2935_v31  ;;  %v6241_v26 = vpack.c.bf16 %v5580_v28, %v5576_v51 }
 0x9bb   : > { %v5939_v16 = vpop.eup %4609  ;;  %v6242_v18 = vpack.c.bf16 %v5844_v2, %v5838_v41  ;;  %v6244_v51 = vpack.c.bf16 %v5592_v13, %v5588_v54  ;;  %v6245_v2 = vpack.c.bf16 %v5852_v11, %v5848_v63  ;;  %v6247_v63 = vpack.c.bf16 %v5584_v29, %v5578_v8 }
 0x9bc   : > { %v2980_v4 = vmul.f32 1.442695, %v2956_v45  ;;  %3002 = vadd.xlane.f32.xlu1 %v5939_v16  ;;  %v5944_v34 = vpop.eup %4611  ;;  %v6248_v11 = vpack.c.bf16 %v5596_v6, %v5590_v59 }
 0x9bd   : > { %v2945_v3 = vpop.xlane.xlu0 %2944  ;;  %v3075_v23 = vpop.permute.xlu1 %3074 }
 0x9be   : > { %v2962_v9 = vsub.f32 %v5912_v44, %v2945_v3  ;;  %4623 = vpow2.f32 %v2980_v4  ;;  %v2982_v44 = vmul.f32 1.442695, %v2957_v33 }
 0x9bf   : > { %v5947_v43 = vpop.eup %4613 }
 0x9c0   : > { %v2992_v48 = vmul.f32 1.442695, %v2962_v9  ;;  %2998 = vadd.xlane.f32.xlu1 %v5944_v34  ;;  %3008 = vadd.xlane.f32.xlu0 %v5947_v43 }
 0x9c1   : > { %v2941_v24 = vpop.xlane.xlu0 %2940 }
 0x9c2   : > { %4625 = vpow2.f32 %v2992_v48  ;;  %v2960_v12 = vsub.f32 %v5916_v19, %v2941_v24 }
 0x9c3   : > { %v5952_v47 = vpop.eup %4615  ;;  %4627 = vpow2.f32 %v2986_v36 }
 0x9c4   : > { %v5954_v57 = vpop.eup %4617  ;;  %v2988_v38 = vmul.f32 1.442695, %v2960_v12  ;;  %3006 = vadd.xlane.f32.xlu1 %v5952_v47 }
 0x9c5   : > { %3004 = vadd.xlane.f32.xlu0 %v5954_v57  ;;  %v3077_v17 = vpop.permute.xlu0 %3076  ;;  %v5958_v50 = vpop.eup %4619 }
 0x9c6   : > { %4629 = vpow2.f32 %v2988_v38  ;;  %4256 = vmatprep.subr.bf16.mxu1 %v3077_v17 }
 0x9c7   : > { %4631 = vpow2.f32 %v2982_v44  ;;  %4257 = vmatpush3.bf16.msra.mxu1 %v3077_v17  ;;  %v5961_v19 = vpop.eup %4621 }
 0x9c8   : > { %4258 = vmatprep.subr.bf16.mxu1 %v3075_v23 }
 0x9c9   : > { %3010 = vadd.xlane.f32.xlu0 %v5958_v50 }
 0x9cb   : > { %4259 = vmatpush3.bf16.msra.mxu1 %v3075_v23  ;;  %v5963_v42 = vpop.eup %4623 }
 0x9cc   : > { %3012 = vadd.xlane.f32.xlu1 %v5963_v42 }
 0x9cd   : > { %3016 = vadd.xlane.f32.xlu0 %v5961_v19 }
 0x9cf   : > { %v5967_v7 = vpop.eup %4625 }
 0x9d0   : > { %v5969_v62 = vpop.eup %4627  ;;  %3024 = vadd.xlane.f32.xlu1 %v5967_v7 }
 0x9d1   : > { %3018 = vadd.xlane.f32.xlu0 %v5969_v62 }
 0x9d3   : > { %v5973_v60 = vpop.eup %4629 }
 0x9d4   : > { %v5975_v1 = vpop.eup %4631  ;;  %3020 = vadd.xlane.f32.xlu1 %v5973_v60 }
 0x9d5   : > { %3014 = vadd.xlane.f32.xlu0 %v5975_v1 }
 0x9e5   : > { %3068 = vrot.lane.b32.xlu1 %v4688_v49, %s4716_s13 }
 0x9e9   : > { %3207 = vrot.lane.b32.xlu1 %v6241_v26, %s4717_s14 }
 0x9eb   : > { %3070 = vrot.lane.b32.xlu0 %v5656_v46, %s4716_s13 }
 0x9ed   : > { %3229 = vrot.lane.b32.xlu1 %v6242_v18, %s4718_s15 }
 0x9ee   : > { %v2947_v45 = vpop.xlane.xlu1 %2946 }
 0x9ef   : > { %v2963_v46 = vsub.f32 %v5922_v55, %v2947_v45 }
 0x9f1   : > { %3231 = vrot.lane.b32.xlu1 %v6243_v0, %s4718_s15  ;;  %v2994_v61 = vmul.f32 1.442695, %v2963_v46 }
 0x9f2   : > { %v2943_v31 = vpop.xlane.xlu1 %2942 }
 0x9f3   : > { %v2961_v4 = vsub.f32 %v5926_v5, %v2943_v31 }
 0x9f5   : > { %3211 = vrot.lane.b32.xlu1 %v6244_v51, %s4717_s14  ;;  %v2990_v41 = vmul.f32 1.442695, %v2961_v4 }
 0x9f6   : > { %v3073_v28 = vpop.permute.xlu1 %3072 }
 0x9f7   : > { %4260 = vmatprep.subr.bf16.mxu1 %v3073_v28  ;;  %4633 = vpow2.f32 %v2990_v41 }
 0x9f8   : > { %4261 = vmatpush3.bf16.msra.mxu1 %v3073_v28  ;;  %4635 = vpow2.f32 %v2994_v61 }
 0x9f9   : > { %3235 = vrot.lane.b32.xlu1 %v6245_v2, %s4718_s15 }
 0x9fd   : > { %3215 = vrot.lane.b32.xlu1 %v6246_v56, %s4717_s14 }
 0xa04   : > { %v6008_v54 = vpop.eup %4633 }
 0xa05   : > { %v6011_v13 = vpop.eup %4635 }
 0xa0a   : > { %3022 = vadd.xlane.f32.xlu0 %v6008_v54 }
 0xa0e   : > { %3026 = vadd.xlane.f32.xlu0 %v6011_v13 }
 0xa24   : > { %3205 = vrot.lane.b32.xlu0 %v6247_v63, %s4717_s14 }
 0xa28   : > { %3209 = vrot.lane.b32.xlu0 %v6248_v11, %s4717_s14 }
 0xa2c   : > { %3233 = vrot.lane.b32.xlu0 %v6249_v20, %s4718_s15 }
 0xa30   : > { %3213 = vrot.lane.b32.xlu0 %v6250_v39, %s4717_s14 }
 0xa3d   : > { %v3001_v55 = vpop.xlane.xlu1 %3000 }
 0xa41   : > { %v2997_v5 = vpop.xlane.xlu1 %2996 }
 0xa42   : > { %4637 = vrcp.f32 %v2997_v5 }
 0xa45   : > { %v3003_v3 = vpop.xlane.xlu1 %3002 }
 0xa49   : > { %v2999_v8 = vpop.xlane.xlu1 %2998  ;;  %v3009_v29 = vpop.xlane.xlu0 %3008 }
 0xa4a   : > { %4639 = vrcp.f32 %v2999_v8 }
 0xa4b   : > { %4641 = vrcp.f32 %v3003_v3 }
 0xa4d   : > { %v3007_v59 = vpop.xlane.xlu1 %3006 }
 0xa4e   : > { %v3005_v9 = vpop.xlane.xlu0 %3004  ;;  %4643 = vrcp.f32 %v3007_v59 }
 0xa4f   : > { %v4638_v36 = vpop.eup %4637  ;;  %4645 = vrcp.f32 %v3005_v9 }
 0xa50   : > { %4647 = vrcp.f32 %v3001_v55  ;;  %v3044_v32 = vmul.f32 %v4638_v36, %v5935_v37 }
 0xa52   : > { %v3011_v6 = vpop.xlane.xlu0 %3010 }
 0xa53   : > { %4649 = vrcp.f32 %v3011_v6  ;;  %v4411_v6 = vld [vmem:[%s6200_s10 + $0x8] sm:$0xff]  }
 0xa54   : > { %4651 = vrcp.f32 %v3009_v29 }
 0xa55   : > { %v3013_v10 = vpop.xlane.xlu1 %3012 }
 0xa56   : > { %v3017_v58 = vpop.xlane.xlu0 %3016  ;;  %4653 = vrcp.f32 %v3013_v10 }
 0xa57   : > { %v4640_v33 = vpop.eup %4639 }
 0xa58   : > { %v3045_v30 = vmul.f32 %v4640_v33, %v5944_v34  ;;  %v4642_v17 = vpop.eup %4641 }
 0xa59   : > { %v3025_v48 = vpop.xlane.xlu1 %3024  ;;  %v3047_v37 = vmul.f32 %v4642_v17, %v5939_v16 }
 0xa5a   : > { %v3019_v24 = vpop.xlane.xlu0 %3018  ;;  %v3060_v12 = vpack.c.bf16 %v3045_v30, %v3044_v32  ;;  %v6251_v30 = vpack.c.bf16 %v5864_v15, %v5860_v27  ;;  %v6253_v27 = vpack.c.bf16 %v5616_v22, %v5612_v14  ;;  %v6257_v14 = vld [vmem:[#allocation22_spill] sm:$0xff]  ;;  %v6258_v22 = vld [vmem:[#allocation21_spill] sm:$0xff] }
 0xa5b   : > { %v4644_v23 = vpop.eup %4643 }
 0xa5c   : > { %4266 = vmatprep.mubr.bf16.mxu1 %v3060_v12  ;;  %v4646_v26 = vpop.eup %4645  ;;  %v3049_v0 = vmul.f32 %v4644_v23, %v5952_v47  ;;  %v6252_v12 = vpack.c.bf16 %v5868_v35, %v5862_v53  ;;  %v6254_v53 = vpack.c.bf16 %v5620_v40, %v5614_v52 }
 0xa5d   : > { %v3021_v44 = vpop.xlane.xlu1 %3020  ;;  %v4648_v18 = vpop.eup %4647  ;;  %v3048_v34 = vmul.f32 %v4646_v26, %v5954_v57 }
 0xa5e   : > { %v3015_v38 = vpop.xlane.xlu0 %3014  ;;  %v3046_v31 = vmul.f32 %v4648_v18, %v5930_v25  ;;  %v6255_v18 = vld [vmem:[#allocation20_spill] sm:$0xff] }
 0xa5f   : > { %4655 = vrcp.f32 %v3015_v38  ;;  %v3062_v28 = vpack.c.bf16 %v3049_v0, %v3048_v34 }
 0xa60   : > { %4657 = vrcp.f32 %v3019_v24  ;;  %v3061_v4 = vpack.c.bf16 %v3047_v37, %v3046_v31  ;;  %v4650_v51 = vpop.eup %4649  ;;  %v6259_v37 = vpack.c.bf16 %v6257_v14, %v6258_v22  ;;  %v6278_v14 = vld [vmem:[#allocation18_spill] sm:$0xff]  ;;  %v6279_v22 = vld [vmem:[#allocation16_spill] sm:$0xff] }
 0xa61   : > { %v3069_v45 = vpop.permute.xlu1 %3068  ;;  %4659 = vrcp.f32 %v3017_v58  ;;  %v4652_v46 = vpop.eup %4651  ;;  %v3051_v61 = vmul.f32 %v4650_v51, %v5958_v50 }
 0xa62   : > { %v3071_v49 = vpop.permute.xlu0 %3070  ;;  %v3050_v57 = vmul.f32 %v4652_v46, %v5947_v43  ;;  %4661 = vrcp.f32 %v3021_v44 }
 0xa63   : > { %4262 = vmatprep.subr.bf16.mxu1 %v3071_v49  ;;  %v4654_v41 = vpop.eup %4653 }
 0xa64   : > { %4263 = vmatpush3.bf16.msra.mxu1 %v3071_v49  ;;  %v3052_v47 = vmul.f32 %v4654_v41, %v5963_v42  ;;  %v3063_v56 = vpack.c.bf16 %v3051_v61, %v3050_v57 }
 0xa65   : > { %4264 = vmatprep.subr.bf16.mxu1 %v3069_v45  ;;  %v3208_v51 = vpop.permute.xlu1 %3207 }
 0xa68   : > { %4265 = vmatpush3.bf16.msra.mxu1 %v3069_v45  ;;  %v6256_v45 = vpack.c.bf16 %v5876_v21, %v6255_v18 }
 0xa69   : > { %4282 = vmatprep.subr.bf16.mxu1 %v4411_v6 }
 0xa6b   : > { %4267 = vmatmul.mubr.bf16.vlgmr.msra.gmra.mxu1 %v3061_v4 }
 0xa6c   : > { %4270 = vmatprep.mubr.bf16.mxu1 %v3062_v28  ;;  %v4656_v2 = vpop.eup %4655  ;;  %4283 = vmatpush3.bf16.msra.mxu1 %v4411_v6  ;;  %v3230_v28 = vpop.permute.xlu1 %3229 }
 0xa6d   : > { %v3053_v16 = vmul.f32 %v4656_v2, %v5975_v1  ;;  %v4658_v63 = vpop.eup %4657 }
 0xa6e   : > { %v4660_v11 = vpop.eup %4659  ;;  %v3055_v20 = vmul.f32 %v4658_v63, %v5969_v62  ;;  %v6261_v63 = vld [vmem:[#allocation5_spill] sm:$0xff] }
 0xa6f   : > { %v3064_v25 = vpack.c.bf16 %v3053_v16, %v3052_v47  ;;  %v3054_v39 = vmul.f32 %v4660_v11, %v5961_v19  ;;  %v4662_v43 = vpop.eup %4661 }
 0xa70   : > { %v3056_v5 = vmul.f32 %v4662_v43, %v5973_v60  ;;  %v4412_v60 = vld [vmem:[%s6200_s10] sm:$0xff]   ;;  %v3232_v46 = vpop.permute.xlu1 %3231 }
 0xa71   : > { %v3065_v55 = vpack.c.bf16 %v3055_v20, %v3054_v39  ;;  %4284 = vmatprep.subr.bf16.mxu1 %v4412_v60  ;;  %v6263_v39 = vld [vmem:[#allocation6_spill] sm:$0xff] }
 0xa72   : > { %4285 = vmatpush3.bf16.msra.mxu1 %v4412_v60 }
 0xa73   : > { %4271 = vmatmul.mubr.bf16.gmra.mxu1 %v3063_v56  ;;  %v6260_v56 = vld [vmem:[#allocation7_spill] sm:$0xff] }
 0xa74   : > { %4274 = vmatprep.mubr.bf16.mxu1 %v3064_v25  ;;  %v3212_v41 = vpop.permute.xlu1 %3211  ;;  %v6262_v25 = vpack.c.bf16 %v6260_v56, %v6261_v63 }
 0xa78   : > { %v3236_v61 = vpop.permute.xlu1 %3235 }
 0xa7b   : > { %4275 = vmatmul.mubr.bf16.gmra.mxu1 %v3065_v55  ;;  %v6264_v55 = vld [vmem:[#allocation4_spill] sm:$0xff] }
 0xa7c   : > { %v3216_v57 = vpop.permute.xlu1 %3215 }
 0xa93   : > { %v3023_v50 = vpop.xlane.xlu0 %3022 }
 0xa94   : > { %4663 = vrcp.f32 %v3023_v50  ;;  %v6265_v50 = vpack.c.bf16 %v6263_v39, %v6264_v55 }
 0xa95   : > { %4665 = vrcp.f32 %v3025_v48 }
 0xa97   : > { %v3027_v1 = vpop.xlane.xlu0 %3026 }
 0xa98   : > { %4667 = vrcp.f32 %v3027_v1  ;;  %v3274_v1 = vsel %vm1364_vm2, %v6265_v50, %v3208_v51  ;;  %v6281_v51 = vld [vmem:[#allocation19_spill] sm:$0xff] }
 0xa9b   : > { %v3206_v21 = vpop.permute.xlu0 %3205 }
 0xa9c   : > { %v3271_v11 = vsel %vm1364_vm2, %v6262_v25, %v3206_v21 }
 0xa9d   : > { %v3295_v43 = vsel %vm3293_vm4, %v3271_v11, %v3230_v28  ;;  %v6282_v28 = vld [vmem:[#allocation17_spill] sm:$0xff] }
 0xa9f   : > { %v3210_v2 = vpop.permute.xlu0 %3209 }
 0xaa1   : > { %v4664_v42 = vpop.eup %4663 }
 0xaa2   : > { %v3057_v3 = vmul.f32 %v4664_v42, %v6008_v54  ;;  %v4666_v8 = vpop.eup %4665 }
 0xaa3   : > { %v3058_v19 = vmul.f32 %v4666_v8, %v5967_v7  ;;  %v3234_v16 = vpop.permute.xlu0 %3233 }
 0xaa4   : > { %v3066_v29 = vpack.c.bf16 %v3057_v3, %v3056_v5  ;;  %v3297_v5 = vsel %vm3293_vm4, %v3274_v1, %v3232_v46  ;;  %v6283_v46 = vpack.c.bf16 %v6281_v51, %v6282_v28 }
 0xaa5   : > { %v4668_v9 = vpop.eup %4667 }
 0xaa6   : > { %4278 = vmatprep.mubr.bf16.mxu1 %v3066_v29  ;;  %v3059_v62 = vmul.f32 %v4668_v9, %v6011_v13 }
 0xaa7   : > { %v3214_v47 = vpop.permute.xlu0 %3213 }
 0xaa8   : > { %v3067_v59 = vpack.c.bf16 %v3059_v62, %v3058_v19  ;;  %v6266_v62 = vld [vmem:[#allocation11_spill] sm:$0xff] }
 0xaaa   : > { %4279 = vmatmul.mubr.bf16.gmra.mxu1 %v3067_v59  ;;  %v6267_v59 = vld [vmem:[#allocation9_spill] sm:$0xff] }
 0xaab   : > { %v6268_v6 = vpack.c.bf16 %v6266_v62, %v6267_v59 }
 0xaad   : > { %v3277_v60 = vsel %vm1364_vm2, %v6268_v6, %v3210_v2 }
 0xb2b   : > { %v4268_v54 = vpop.f32.mrf.mxu1 }
 0xb2d   : > { %v3126_v36 = vpop.f32.mrf.mxu1 }
 0xb2f   : > { %v4269_v10 = vpop.f32.mrf.mxu1 }
 0xb30   : > { %v3190_v7 = vpack.c.bf16 %v4269_v10, %v4268_v54  ;;  %v6269_v54 = vld [vmem:[#allocation10_spill] sm:$0xff] }
 0xb31   : > { %v3129_v58 = vpop.f32.mrf.mxu1 }
 0xb32   : > { %v3189_v13 = vpack.c.bf16 %v3129_v58, %v3126_v36  ;;  %3255 = vrot.lane.b32.xlu1 %v3190_v7, %s4719_s19  ;;  %v6270_v36 = vld [vmem:[#allocation8_spill] sm:$0xff]  ;;  %v3299_v58 = vsel %vm3293_vm4, %v3277_v60, %v3234_v16 }
 0xb33   : > { %v4272_v33 = vpop.f32.mrf.mxu1  ;;  %v6271_v10 = vpack.c.bf16 %v6269_v54, %v6270_v36 }
 0xb34   : > { %3253 = vrot.lane.b32.xlu0 %v3189_v13, %s4719_s19 }
 0xb35   : > { %v3142_v32 = vpop.f32.mrf.mxu1  ;;  %v3280_v7 = vsel %vm1364_vm2, %v6271_v10, %v3212_v41 }
 0xb36   : > { %3239 = vrot.lane.b32.xlu1 %v6251_v30, %s4718_s15 }
 0xb37   : > { %v4273_v48 = vpop.f32.mrf.mxu1 }
 0xb38   : > { %v3192_v24 = vpack.c.bf16 %v4273_v48, %v4272_v33  ;;  %3237 = vrot.lane.b32.xlu0 %v6252_v12, %s4718_s15  ;;  %v3301_v33 = vsel %vm3293_vm4, %v3280_v7, %v3236_v61 }
 0xb39   : > { %v3145_v44 = vpop.f32.mrf.mxu1 }
 0xb3a   : > { %v3191_v38 = vpack.c.bf16 %v3145_v44, %v3142_v32  ;;  %3259 = vrot.lane.b32.xlu1 %v3192_v24, %s4719_s19  ;;  %v6272_v44 = vld [vmem:[#allocation15_spill] sm:$0xff] }
 0xb3b   : > { %v4276_v17 = vpop.f32.mrf.mxu1 }
 0xb3c   : > { %3257 = vrot.lane.b32.xlu0 %v3191_v38, %s4719_s19  ;;  %v6273_v38 = vld [vmem:[#allocation13_spill] sm:$0xff] }
 0xb3d   : > { %v3158_v23 = vpop.f32.mrf.mxu1 }
 0xb3e   : > { %3219 = vrot.lane.b32.xlu1 %v6253_v27, %s4717_s14  ;;  %v6275_v27 = vld [vmem:[#allocation14_spill] sm:$0xff] }
 0xb3f   : > { %v4277_v15 = vpop.f32.mrf.mxu1 }
 0xb40   : > { %v3194_v49 = vpack.c.bf16 %v4277_v15, %v4276_v17  ;;  %3217 = vrot.lane.b32.xlu0 %v6254_v53, %s4717_s14  ;;  %v6274_v17 = vpack.c.bf16 %v6272_v44, %v6273_v38  ;;  %v6276_v15 = vld [vmem:[#allocation12_spill] sm:$0xff] }
 0xb41   : > { %v3161_v35 = vpop.f32.mrf.mxu1 }
 0xb42   : > { %v3193_v26 = vpack.c.bf16 %v3161_v35, %v3158_v23  ;;  %3263 = vrot.lane.b32.xlu1 %v3194_v49, %s4719_s19  ;;  %v3283_v23 = vsel %vm1364_vm2, %v6274_v17, %v3214_v47  ;;  %v6277_v49 = vpack.c.bf16 %v6275_v27, %v6276_v15 }
 0xb44   : > { %3261 = vrot.lane.b32.xlu0 %v3193_v26, %s4719_s19  ;;  %v3286_v53 = vsel %vm1364_vm2, %v6277_v49, %v3216_v57  ;;  %v3749_v57 = vld [vmem:[%s6201_s11] ss:$0 sm:$0xff] }
 0xb46   : > { %3243 = vrot.lane.b32.xlu1 %v6256_v45, %s4718_s15 }
 0xb48   : > { %3241 = vrot.lane.b32.xlu0 %v6259_v37, %s4718_s15  ;;  %v6280_v37 = vpack.c.bf16 %v6278_v14, %v6279_v22 }
 0xb6a   : > { %v4280_v34 = vpop.f32.mrf.mxu1 }
 0xb6c   : > { %v3174_v0 = vpop.f32.mrf.mxu1 }
 0xb6e   : > { %v4281_v52 = vpop.f32.mrf.mxu1 }
 0xb6f   : > { %v3196_v40 = vpack.c.bf16 %v4281_v52, %v4280_v34 }
 0xb70   : > { %v3177_v31 = vpop.f32.mrf.mxu1 }
 0xb71   : > { %v3195_v4 = vpack.c.bf16 %v3177_v31, %v3174_v0  ;;  %3267 = vrot.lane.b32.xlu1 %v3196_v40, %s4719_s19 }
 0xb73   : > { %3265 = vrot.lane.b32.xlu0 %v3195_v4, %s4719_s19 }
 0xba4   : > { %v3256_v20 = vpop.permute.xlu1 %3255 }
 0xba5   : > { %v3314_v8 = vsel %vm3310_vm5, %v3297_v5, %v3256_v20 }
 0xba6   : > { %v3254_v42 = vpop.permute.xlu0 %3253 }
 0xba7   : > { %v3312_v3 = vsel %vm3310_vm5, %v3295_v43, %v3254_v42 }
 0xba8   : > { %v3240_v29 = vpop.permute.xlu1 %3239  ;;  %4286 = vmatprep.mubr.msk.bf16.mxu1 %vm591_vm0, %v3312_v3 }
 0xba9   : > { %4287 = vmatmul.mubr.msk.bf16.vlgmr.msra.gmra.mxu1 %vm591_vm0, %v3314_v8  ;;  %v3305_v18 = vsel %vm3293_vm4, %v3286_v53, %v3240_v29 }
 0xbaa   : > { %v3238_v9 = vpop.permute.xlu0 %3237 }
 0xbab   : > { %v3303_v35 = vsel %vm3293_vm4, %v3283_v23, %v3238_v9 }
 0xbac   : > { %v3260_v19 = vpop.permute.xlu1 %3259 }
 0xbad   : > { %v3318_v30 = vsel %vm3310_vm5, %v3301_v33, %v3260_v19 }
 0xbae   : > { %v3258_v13 = vpop.permute.xlu0 %3257 }
 0xbaf   : > { %v3316_v32 = vsel %vm3310_vm5, %v3299_v58, %v3258_v13 }
 0xbb0   : > { %v3220_v48 = vpop.permute.xlu1 %3219  ;;  %4290 = vmatprep.mubr.msk.bf16.mxu1 %vm591_vm0, %v3316_v32 }
 0xbb1   : > { %4291 = vmatmul.mubr.msk.bf16.gmra.mxu1 %vm591_vm0, %v3318_v30  ;;  %v3292_v34 = vsel %vm1364_vm2, %v6280_v37, %v3220_v48 }
 0xbb2   : > { %v3218_v24 = vpop.permute.xlu0 %3217 }
 0xbb3   : > { %v3289_v21 = vsel %vm1364_vm2, %v6283_v46, %v3218_v24 }
 0xbb4   : > { %v3264_v12 = vpop.permute.xlu1 %3263 }
 0xbb5   : > { %v3322_v0 = vsel %vm3310_vm5, %v3305_v18, %v3264_v12 }
 0xbb6   : > { %v3262_v26 = vpop.permute.xlu0 %3261 }
 0xbb7   : > { %v3320_v45 = vsel %vm3310_vm5, %v3303_v35, %v3262_v26 }
 0xbb8   : > { %v3244_v52 = vpop.permute.xlu1 %3243  ;;  %4294 = vmatprep.mubr.msk.bf16.mxu1 %vm591_vm0, %v3320_v45 }
 0xbb9   : > { %v3309_v40 = vsel %vm3293_vm4, %v3292_v34, %v3244_v52  ;;  %4295 = vmatmul.mubr.msk.bf16.gmra.mxu1 %vm591_vm0, %v3322_v0 }
 0xbba   : > { %v3242_v31 = vpop.permute.xlu0 %3241 }
 0xbbb   : > { %v3307_v2 = vsel %vm3293_vm4, %v3289_v21, %v3242_v31 }
 0xbe3   : > { %v3268_v4 = vpop.permute.xlu1 %3267 }
 0xbe4   : > { %v3326_v41 = vsel %vm3310_vm5, %v3309_v40, %v3268_v4 }
 0xbe5   : > { %v3266_v61 = vpop.permute.xlu0 %3265 }
 0xbe6   : > { %v3324_v16 = vsel %vm3310_vm5, %v3307_v2, %v3266_v61 }
 0xbe7   : > { %4298 = vmatprep.mubr.msk.bf16.mxu1 %vm591_vm0, %v3324_v16 }
 0xbe8   : > { %4299 = vmatmul.mubr.msk.bf16.gmra.mxu1 %vm591_vm0, %v3326_v41 }
 0xc69   : > { %v4288_v47 = vpop.f32.mrf.mxu1 }
 0xc6a   : > { %v3409_v56 = vadd.f32 %v4288_v47, %v3749_v57 }
 0xc6b   : > { %v3400_v63 = vpop.f32.mrf.mxu1 }
 0xc6c   : > { %3465 = vst.msk [vmem:[%s6147_s30 + $0x10] sm:$0xff] %vm591_vm0, %v3409_v56  ;;  %v3401_v25 = vadd.f32 %v3749_v57, %v3400_v63 }
 0xc6d   : > { %v4289_v11 = vpop.f32.mrf.mxu1 }
 0xc6e   : > { %3463 = vst.msk [vmem:[%s6147_s30] sm:$0xff] %vm591_vm0, %v3401_v25  ;;  %v3412_v20 = vadd.f32 %v4289_v11, %v3749_v57 }
 0xc6f   : > { %v3403_v39 = vpop.f32.mrf.mxu1 }
 0xc70   : > { %3466 = vst.msk [vmem:[%s6147_s30 + $0x18] sm:$0xff] %vm591_vm0, %v3412_v20  ;;  %v3404_v55 = vadd.f32 %v3749_v57, %v3403_v39 }
 0xc71   : > { %v4292_v50 = vpop.f32.mrf.mxu1 }
 0xc72   : > { %3464 = vst.msk [vmem:[%s6147_s30 + $0x8] sm:$0xff] %vm591_vm0, %v3404_v55  ;;  %v3425_v1 = vadd.f32 %v4292_v50, %v3749_v57 }
 0xc73   : > { %v3416_v43 = vpop.f32.mrf.mxu1 }
 0xc74   : > { %3469 = vst.msk [vmem:[%s6147_s30 + $0x30] sm:$0xff] %vm591_vm0, %v3425_v1  ;;  %v3417_v42 = vadd.f32 %v3749_v57, %v3416_v43 }
 0xc75   : > { %v4293_v5 = vpop.f32.mrf.mxu1 }
 0xc76   : > { %3467 = vst.msk [vmem:[%s6147_s30 + $0x20] sm:$0xff] %vm591_vm0, %v3417_v42  ;;  %v3428_v3 = vadd.f32 %v4293_v5, %v3749_v57 }
 0xc77   : > { %v3419_v8 = vpop.f32.mrf.mxu1 }
 0xc78   : > { %3470 = vst.msk [vmem:[%s6147_s30 + $0x38] sm:$0xff] %vm591_vm0, %v3428_v3  ;;  %v3420_v29 = vadd.f32 %v3749_v57, %v3419_v8 }
 0xc79   : > { %v4296_v9 = vpop.f32.mrf.mxu1 }
 0xc7a   : > { %3468 = vst.msk [vmem:[%s6147_s30 + $0x28] sm:$0xff] %vm591_vm0, %v3420_v29  ;;  %v3441_v19 = vadd.f32 %v4296_v9, %v3749_v57 }
 0xc7b   : > { %v3432_v62 = vpop.f32.mrf.mxu1 }
 0xc7c   : > { %3473 = vst.msk [vmem:[%s6147_s30 + $0x50] sm:$0xff] %vm591_vm0, %v3441_v19  ;;  %v3433_v59 = vadd.f32 %v3749_v57, %v3432_v62 }
 0xc7d   : > { %v4297_v6 = vpop.f32.mrf.mxu1 }
 0xc7e   : > { %3471 = vst.msk [vmem:[%s6147_s30 + $0x40] sm:$0xff] %vm591_vm0, %v3433_v59  ;;  %v3444_v60 = vadd.f32 %v4297_v6, %v3749_v57 }
 0xc7f   : > { %v3435_v54 = vpop.f32.mrf.mxu1 }
 0xc80   : > { %3474 = vst.msk [vmem:[%s6147_s30 + $0x58] sm:$0xff] %vm591_vm0, %v3444_v60  ;;  %v3436_v36 = vadd.f32 %v3749_v57, %v3435_v54 }
 0xc82   : > { %3472 = vst.msk [vmem:[%s6147_s30 + $0x48] sm:$0xff] %vm591_vm0, %v3436_v36 }
 0xca8   : > { %v4300_v10 = vpop.f32.mrf.mxu1 }
 0xca9   : > { %v3457_v7 = vadd.f32 %v4300_v10, %v3749_v57 }
 0xcaa   : > { %v3448_v58 = vpop.f32.mrf.mxu1 }
 0xcab   : > { %3477 = vst.msk [vmem:[%s6147_s30 + $0x70] sm:$0xff] %vm591_vm0, %v3457_v7  ;;  %v3449_v13 = vadd.f32 %v3749_v57, %v3448_v58 }
 0xcac   : > { %v4301_v33 = vpop.f32.mrf.mxu1 }
 0xcad   : > { %3475 = vst.msk [vmem:[%s6147_s30 + $0x60] sm:$0xff] %vm591_vm0, %v3449_v13  ;;  %v3460_v32 = vadd.f32 %v4301_v33, %v3749_v57 }
 0xcae   : > { %v3451_v30 = vpop.f32.mrf.mxu1 }
 0xcaf   : > { %3478 = vst.msk [vmem:[%s6147_s30 + $0x78] sm:$0xff] %vm591_vm0, %v3460_v32  ;;  %v3452_v48 = vadd.f32 %v3749_v57, %v3451_v30 }
 0xcb1   : > { %3476 = vst.msk [vmem:[%s6147_s30 + $0x68] sm:$0xff] %vm591_vm0, %v3452_v48 }
 0xcb2 PF: > { %s22_s23 = sadd.s32 1, %s4711_s23   ;;  %s6284_s21 = smov %s4707_s22 }
 0xcb3   : > { %p19_p5 = scmp.ge.s32.totalorder %s22_s23, 4   ;;  %s6285_s22 = smov %s6287_s24 }
 0xcb5   :  { %21 = sbr.rel (!%p19_p5) target bundleno = 2 (0x2), region = 111 }

</bundles_post_ra>
